<compile_context>
chip_gen: v6e
topology: v6e:2x2x1
jax: 0.10.0
libtpu: 0.0.40
codegen_flags: <defaults>
</compile_context>

<pallas_src>
import jax
import jax.numpy as jnp
import numpy as np
from jax.experimental import pallas as pl
from jax.experimental.pallas import tpu as pltpu

NUM_CLASSES = 20
NUM_ANCHORS = 3
STRIDES = (8, 16, 32)
# Standard YOLOv3 anchor sizes, grouped per pyramid level (static constants).
ANCHOR_SIZE = (
    ((10.0, 13.0), (16.0, 30.0), (33.0, 23.0)),
    ((30.0, 61.0), (62.0, 45.0), (59.0, 119.0)),
    ((116.0, 90.0), (156.0, 198.0), (373.0, 326.0)),
)

NOUT = NUM_ANCHORS * (4 + NUM_CLASSES)   # 72 decoded values per grid cell
NOUT_PAD = 128                           # lane-dense, unmasked stores
_LEAKY_SLOPE = 0.1                       # YOLOv3 convention


def _round_up(x, m):
    return ((x + m - 1) // m) * m


def _cdiv(a, b):
    return -(-a // b)


def _default_vmem_limit():
    """Device-aware scoped-VMEM budget (<=48 MiB on 64 MiB parts, 96 MiB on 128 MiB)."""
    try:
        cap = int(pltpu.get_tpu_info().vmem_capacity_bytes)
    except Exception:
        return 32 * 1024 * 1024
    if cap <= 64 * 1024 * 1024:          # v7x-class: leave headroom
        return 48 * 1024 * 1024
    return 96 * 1024 * 1024              # v5e / v6e (128 MiB physical)


_VMEM_LIMIT = _default_vmem_limit()


def _choose_m_tiling(M, tm_cap):
    """16-aligned M tiles; >=2 blocks whenever possible so the parallel axis spans
    both v7x TensorCores (harmless on single-TC v5e/v6e)."""
    Mr = _round_up(M, 16)
    if Mr <= 16:
        return Mr, Mr
    tm = min(tm_cap, _round_up(_cdiv(Mr, 2), 16))
    Mp = _round_up(Mr, tm)
    return tm, Mp


# ----------------------------------------------------------------------------
# Fused tiled GEMM kernel: out = leaky(x @ w + b) [+ residual]
# (gk == 1 path writes the output directly; gk > 1 accumulates into f32 scratch)
# ----------------------------------------------------------------------------
def fused_gemm(x, w, b, *, act="leaky", residual=None, out_dtype=jnp.bfloat16,
               tm_cap=1024, tk_cap=512):
    M, K = x.shape
    Kw, N = w.shape
    assert K == Kw and b.shape == (N,)

    tm, Mp = _choose_m_tiling(M, tm_cap)
    gm = Mp // tm

    # --- K tiling: never balloon the padding (e.g. K=576 stays a single 576 tile) ---
    if K <= 640:
        tk, Kp, gk = K, K, 1
    else:
        gk = _cdiv(K, tk_cap)
        tk = _round_up(_cdiv(K, gk), 128)
        Kp = tk * gk

    xb = x.astype(jnp.bfloat16)
    wb = w.astype(jnp.bfloat16)
    if Mp != M or Kp != K:
        xb = jnp.pad(xb, ((0, Mp - M), (0, Kp - K)))
    if Kp != K:
        wb = jnp.pad(wb, ((0, Kp - K), (0, 0)))
    b2 = b.astype(jnp.float32).reshape(1, N)

    has_res = residual is not None
    if has_res:
        rb = residual
        if Mp != M:
            rb = jnp.pad(rb, ((0, Mp - M), (0, 0)))

    def _epilogue(y, r_ref):
        if act == "leaky":
            y = jnp.where(y > 0, y, _LEAKY_SLOPE * y)
        if r_ref is not None:
            y = y + r_ref[...].astype(jnp.float32)
        return y

    if gk == 1:
        # single K step: no scratch accumulator, direct store
        def kernel(*refs):
            if has_res:
                x_ref, w_ref, b_ref, r_ref, o_ref = refs
            else:
                x_ref, w_ref, b_ref, o_ref = refs
                r_ref = None
            y = jnp.dot(x_ref[...], w_ref[...],
                        preferred_element_type=jnp.float32) + b_ref[...]
            o_ref[...] = _epilogue(y, r_ref).astype(o_ref.dtype)

        in_specs = [
            pl.BlockSpec((tm, tk), lambda i: (i, 0)),
            pl.BlockSpec((tk, N), lambda i: (0, 0)),
            pl.BlockSpec((1, N), lambda i: (0, 0)),
        ]
        operands = [xb, wb, b2]
        if has_res:
            in_specs.append(pl.BlockSpec((tm, N), lambda i: (i, 0)))
            operands.append(rb)

        out = pl.pallas_call(
            kernel,
            out_shape=jax.ShapeDtypeStruct((Mp, N), out_dtype),
            grid=(gm,),
            in_specs=in_specs,
            out_specs=pl.BlockSpec((tm, N), lambda i: (i, 0)),
            compiler_params=pltpu.CompilerParams(
                dimension_semantics=("parallel",),
                vmem_limit_bytes=_VMEM_LIMIT),
        )(*operands)
    else:
        def kernel(*refs):
            if has_res:
                x_ref, w_ref, b_ref, r_ref, o_ref, acc_ref = refs
            else:
                x_ref, w_ref, b_ref, o_ref, acc_ref = refs
                r_ref = None
            k = pl.program_id(1)

            @pl.when(k == 0)
            def _init():
                acc_ref[...] = jnp.zeros_like(acc_ref)

            acc_ref[...] += jnp.dot(x_ref[...], w_ref[...],
                                    preferred_element_type=jnp.float32)

            @pl.when(k == pl.num_programs(1) - 1)
            def _finalize():
                y = acc_ref[...] + b_ref[...]
                o_ref[...] = _epilogue(y, r_ref).astype(o_ref.dtype)

        in_specs = [
            pl.BlockSpec((tm, tk), lambda i, k: (i, k)),
            pl.BlockSpec((tk, N), lambda i, k: (k, 0)),
            pl.BlockSpec((1, N), lambda i, k: (0, 0)),
        ]
        operands = [xb, wb, b2]
        if has_res:
            in_specs.append(pl.BlockSpec((tm, N), lambda i, k: (i, 0)))
            operands.append(rb)

        out = pl.pallas_call(
            kernel,
            out_shape=jax.ShapeDtypeStruct((Mp, N), out_dtype),
            grid=(gm, gk),
            in_specs=in_specs,
            out_specs=pl.BlockSpec((tm, N), lambda i, k: (i, 0)),
            scratch_shapes=[pltpu.VMEM((tm, N), jnp.float32)],
            compiler_params=pltpu.CompilerParams(
                dimension_semantics=("parallel", "arbitrary"),
                vmem_limit_bytes=_VMEM_LIMIT),
        )(*operands)

    return out[:M] if Mp != M else out


# ----------------------------------------------------------------------------
# Fused head + YOLO decode kernel: one pallas_call for ALL pyramid levels.
#   grid = (3,) over levels ("parallel" -> both v7x TensorCores get work)
#   per level:  feat (Mp,32) -> head0 GEMM -> head1 GEMM -> pred GEMM ->
#               vectorized sigmoid/exp decode -> one lane-dense (Mp,128) store.
# Prediction columns (reordered at weight-fusion time):
#   [cls 60 (anchor-major) | obj 3 | tx,ty 6 (anchor-major) | tw,th 6 (anchor-major)]
# aux per row: [gx*stride, gy*stride, stride, 0, aw0,ah0,aw1,ah1,aw2,ah2, 0...]
# ----------------------------------------------------------------------------
def _head_decode_kernel(f_ref, w0_ref, b0_ref, w1_ref, b1_ref, wp_ref, bp_ref,
                        aux_ref, o_ref):
    ncls, na = NUM_CLASSES, NUM_ANCHORS
    obj0 = na * ncls                 # 60
    xy0 = na * ncls + na             # 63
    wh0 = na * ncls + na + 2 * na    # 69

    x = f_ref[...]                                                   # (Mp, 32) bf16
    h0 = jnp.dot(x, w0_ref[...], preferred_element_type=jnp.float32) + b0_ref[...]
    h0 = jnp.where(h0 > 0, h0, _LEAKY_SLOPE * h0).astype(jnp.bfloat16)
    h1 = jnp.dot(h0, w1_ref[...], preferred_element_type=jnp.float32) + b1_ref[...]
    h1 = jnp.where(h1 > 0, h1, _LEAKY_SLOPE * h1).astype(jnp.bfloat16)
    p = jnp.dot(h1, wp_ref[...], preferred_element_type=jnp.float32) + bp_ref[...]

    sig = jax.nn.sigmoid(p[:, :wh0])          # one sigmoid over [Mp, 69]
    ex = jnp.exp(p[:, wh0:])                  # one exp over [Mp, 6]

    aux = aux_ref[...]                        # (Mp, 16) f32
    gxs, gys, strd = aux[:, 0:1], aux[:, 1:2], aux[:, 2:3]

    pieces = []
    for a in range(na):
        cx = sig[:, xy0 + 2 * a:xy0 + 2 * a + 1] * strd + gxs
        cy = sig[:, xy0 + 2 * a + 1:xy0 + 2 * a + 2] * strd + gys
        bw = ex[:, 2 * a:2 * a + 1] * aux[:, 4 + 2 * a:5 + 2 * a]
        bh = ex[:, 2 * a + 1:2 * a + 2] * aux[:, 5 + 2 * a:6 + 2 * a]
        sc = jnp.sqrt(sig[:, obj0 + a:obj0 + a + 1] * sig[:, a * ncls:(a + 1) * ncls])
        pieces.append(jnp.concatenate(
            [cx - 0.5 * bw, cy - 0.5 * bh, cx + 0.5 * bw, cy + 0.5 * bh, sc],
            axis=-1))                                                # (Mp, 24)
    y = jnp.concatenate(
        pieces + [jnp.zeros((x.shape[0], NOUT_PAD - NOUT), jnp.float32)], axis=-1)
    o_ref[...] = y                            # single lane-dense (Mp, 128) store


def _build_aux(fmp_sizes, Mp):
    """Per-level, per-row decode constants (computed at trace time)."""
    aux = np.zeros((3, Mp, 16), np.float32)
    for lvl, (H, W) in enumerate(fmp_sizes):
        s = float(STRIDES[lvl])
        ys, xs = np.meshgrid(np.arange(H), np.arange(W), indexing="ij")
        m = H * W
        aux[lvl, :m, 0] = xs.reshape(-1) * s
        aux[lvl, :m, 1] = ys.reshape(-1) * s
        aux[lvl, :m, 2] = s
        aux[lvl, :, 4:10] = np.asarray(ANCHOR_SIZE[lvl], np.float32).reshape(-1)
    return jnp.asarray(aux)


def head_and_decode(pyramid, params):
    fmp_sizes = [(int(f.shape[1]), int(f.shape[2])) for f in pyramid]
    Ms = [h * w for h, w in fmp_sizes]
    Mp = _round_up(max(Ms), 16)
    C = int(pyramid[0].shape[-1])

    feats = jnp.stack([
        jnp.pad(f.reshape(Ms[l], C), ((0, Mp - Ms[l]), (0, 0)))
        for l, f in enumerate(pyramid)]).astype(jnp.bfloat16)             # (3, Mp, 32)
    w0 = jnp.stack([params[f"head0_{l}"][0] for l in range(3)])            # (3, 32, 64)
    b0 = jnp.stack([params[f"head0_{l}"][1].reshape(1, -1) for l in range(3)])
    w1 = jnp.stack([params[f"head1_{l}"][0] for l in range(3)])            # (3, 64, 64)
    b1 = jnp.stack([params[f"head1_{l}"][1].reshape(1, -1) for l in range(3)])
    wp = jnp.stack([params[f"pred_{l}"][0] for l in range(3)])             # (3, 64, 75)
    bp = jnp.stack([params[f"pred_{l}"][1].reshape(1, -1) for l in range(3)])
    aux = _build_aux(fmp_sizes, Mp)                                        # (3, Mp, 16)

    Npred = int(wp.shape[-1])
    out = pl.pallas_call(
        _head_decode_kernel,
        out_shape=jax.ShapeDtypeStruct((3, Mp, NOUT_PAD), jnp.float32),
        grid=(3,),
        in_specs=[
            pl.BlockSpec((None, Mp, C), lambda l: (l, 0, 0)),
            pl.BlockSpec((None, C, 2 * C), lambda l: (l, 0, 0)),
            pl.BlockSpec((None, 1, 2 * C), lambda l: (l, 0, 0)),
            pl.BlockSpec((None, 2 * C, 2 * C), lambda l: (l, 0, 0)),
            pl.BlockSpec((None, 1, 2 * C), lambda l: (l, 0, 0)),
            pl.BlockSpec((None, 2 * C, Npred), lambda l: (l, 0, 0)),
            pl.BlockSpec((None, 1, Npred), lambda l: (l, 0, 0)),
            pl.BlockSpec((None, Mp, 16), lambda l: (l, 0, 0)),
        ],
        out_specs=pl.BlockSpec((None, Mp, NOUT_PAD), lambda l: (l, 0, 0)),
        compiler_params=pltpu.CompilerParams(
            dimension_semantics=("parallel",),
            vmem_limit_bytes=_VMEM_LIMIT),
    )(feats, w0, b0, w1, b1, wp, bp, aux)

    outs = [out[l, :Ms[l], :NOUT].reshape(Ms[l] * NUM_ANCHORS, 4 + NUM_CLASSES)
            for l in range(3)]
    return jnp.concatenate(outs, axis=0)       # [M_total, 4 + num_classes]


# ----------------------------------------------------------------------------
# Conv wrappers (glue: im2col / reshape; the GEMM runs in the Pallas kernel)
# ----------------------------------------------------------------------------
def conv1x1(x_nhwc, wb, act="leaky", residual=None):
    w, b = wb
    B, H, W, C = x_nhwc.shape
    res = residual.reshape(B * H * W, -1) if residual is not None else None
    y = fused_gemm(x_nhwc.reshape(B * H * W, C), w, b, act=act, residual=res)
    return y.reshape(B, H, W, -1)


def conv3x3_s2(x_nhwc, wb, act="leaky"):
    """3x3, stride 2, pad 1 conv: bf16 im2col (XLA glue) + tiled Pallas GEMM."""
    w, b = wb
    B, H, W, C = x_nhwc.shape
    Ho, Wo = H // 2, W // 2
    xp = jnp.pad(x_nhwc, ((0, 0), (1, 1), (1, 1), (0, 0)))
    cols = [xp[:, ky:ky + 2 * Ho:2, kx:kx + 2 * Wo:2, :]
            for ky in range(3) for kx in range(3)]
    patches = jnp.concatenate(cols, axis=-1).reshape(B * Ho * Wo, 9 * C)
    y = fused_gemm(patches, w, b, act=act)
    return y.reshape(B, Ho, Wo, -1)


def _upsample2x(x):
    return jnp.repeat(jnp.repeat(x, 2, axis=1), 2, axis=2)


# ----------------------------------------------------------------------------
# Parameters (deterministic, synthetic; weights bf16, biases f32; head/pred
# weights pre-fused and prediction columns reordered for the decode kernel)
# ----------------------------------------------------------------------------
def build_params(key, in_channels=4):
    keys = iter(jax.random.split(key, 64))

    def rnd(shape):
        return (jax.random.normal(next(keys), shape, jnp.float32) * 0.05
                ).astype(jnp.bfloat16)

    def conv(cin, cout, k=1):
        return rnd((k * k * cin, cout)), jnp.zeros((cout,), jnp.float32)

    p = {}
    # backbone: 5 stride-2 stages; features taken at strides 8/16/32
    chans = [(in_channels, 8), (8, 16), (16, 32), (32, 64), (64, 64)]
    for i, (ci, co) in enumerate(chans):
        p[f"bb{i}"] = conv(ci, co, 3)
    # neck on C5
    p["neck"] = conv(64, 64)
    # FPN (out_dim = 32 at every level)
    p["lat5"] = conv(64, 32)
    p["lat4"] = conv(64, 32)
    p["lat3"] = conv(32, 32)
    p["smooth4"] = conv(32, 32)
    p["smooth3"] = conv(32, 32)

    HD = 32
    # reorder reg-pred columns [tx,ty,tw,th]*3 -> [tx,ty]*3 + [tw,th]*3
    perm = ([4 * a + i for a in range(NUM_ANCHORS) for i in (0, 1)]
            + [4 * a + i for a in range(NUM_ANCHORS) for i in (2, 3)])
    perm = jnp.asarray(perm, jnp.int32)

    for lvl in range(3):
        # head conv 0: cls & reg branches fused along N  -> (32, 64)
        w_cls0, b_cls0 = conv(HD, HD)
        w_reg0, b_reg0 = conv(HD, HD)
        p[f"head0_{lvl}"] = (jnp.concatenate([w_cls0, w_reg0], axis=1),
                             jnp.concatenate([b_cls0, b_reg0], axis=0))
        # head conv 1: block-diagonal [cls branch | reg branch] -> (64, 64)
        w_cls1, b_cls1 = conv(HD, HD)
        w_reg1, b_reg1 = conv(HD, HD)
        z = jnp.zeros((HD, HD), jnp.bfloat16)
        p[f"head1_{lvl}"] = (jnp.block([[w_cls1, z], [z, w_reg1]]),
                             jnp.concatenate([b_cls1, b_reg1], axis=0))
        # prediction convs fused & column-reordered:
        #   cols = [cls 60 | obj 3 | tx,ty 6 | tw,th 6]   (rows: [cls feat | reg feat])
        w_clsp, b_clsp = conv(HD, NUM_CLASSES * NUM_ANCHORS)
        w_objp, b_objp = conv(HD, 1 * NUM_ANCHORS)
        w_regp, b_regp = conv(HD, 4 * NUM_ANCHORS)
        w_regp = w_regp[:, perm]
        b_regp = b_regp[perm]
        top = jnp.concatenate(
            [w_clsp, jnp.zeros((HD, (1 + 4) * NUM_ANCHORS), jnp.bfloat16)], axis=1)
        bot = jnp.concatenate(
            [jnp.zeros((HD, NUM_CLASSES * NUM_ANCHORS), jnp.bfloat16),
             w_objp, w_regp], axis=1)
        p[f"pred_{lvl}"] = (jnp.concatenate([top, bot], axis=0),
                            jnp.concatenate([b_clsp, b_objp, b_regp], axis=0))
    return p


# ----------------------------------------------------------------------------
# Forward (deploy-mode inference path of YOLOv3_McuNet)
# ----------------------------------------------------------------------------
def yolov3_mcunet_forward(params, x_nchw):
    x = jnp.transpose(x_nchw, (0, 2, 3, 1)).astype(jnp.bfloat16)  # NCHW -> NHWC bf16

    # ---- backbone (full batch, as in the reference) ----
    c = x
    feats = []
    for i in range(5):
        c = conv3x3_s2(c, params[f"bb{i}"], act="leaky")
        if i >= 2:
            feats.append(c)
    # deploy path decodes only batch element 0 -> drop the rest before neck/FPN/heads
    c3, c4, c5 = (f[0:1] for f in feats)  # strides 8, 16, 32

    # ---- neck ----
    c5 = conv1x1(c5, params["neck"], act="leaky")

    # ---- FPN (top-down); upsample-add fused as residual into the LINEAR lateral GEMM ----
    p5 = conv1x1(c5, params["lat5"], act="leaky")
    t4 = conv1x1(c4, params["lat4"], act=None, residual=_upsample2x(p5))
    p4 = conv1x1(t4, params["smooth4"], act="leaky")
    t3 = conv1x1(c3, params["lat3"], act=None, residual=_upsample2x(p4))
    p3 = conv1x1(t3, params["smooth3"], act="leaky")

    # ---- fused heads + prediction + YOLO decode (one kernel, grid over levels) ----
    # output rows: [x1, y1, x2, y2, joint scores] per (cell, anchor), levels 8/16/32
    return head_and_decode([p3, p4, p5], params)


if __name__ == "__main__":
    key = jax.random.PRNGKey(0)
    pkey, xkey = jax.random.split(key)

    params = build_params(pkey, in_channels=4)
    x = jax.random.normal(xkey, (2, 4, 32, 32), jnp.float32)  # NCHW, small shapes

    fwd = jax.jit(yolov3_mcunet_forward)
    out = jax.block_until_ready(fwd(params, x))

    # 32x32 input -> fmp sizes 4x4, 2x2, 1x1; (16+4+1)*3 anchors = 63 rows
    assert out.shape == (63, 4 + NUM_CLASSES), out.shape
    assert bool(jnp.all(jnp.isfinite(out)))
    print("KERNEL_OK")
</pallas_src>

<mosaic_0001>
module attributes {stable_mosaic.version = 11 : i64} {
  func.func @kernel(%arg0: i32, %arg1: memref<256x36xbf16, #tpu.memory_space<vmem>>, %arg2: memref<36x8xbf16, #tpu.memory_space<vmem>>, %arg3: memref<1x8xf32, #tpu.memory_space<vmem>>, %arg4: memref<256x8xbf16, #tpu.memory_space<vmem>>) attributes {dimension_semantics = [#tpu.dimension_semantics<parallel>], iteration_bounds = array<i64: 2>, scalar_prefetch = 0 : i64, scratch_operands = 0 : i64, tpu.core_type = #tpu.core_type<tc>, window_params = [{transform_indices = @transform_0, window_bounds = array<i64: 256, 36>}, {pipeline_mode = #tpu.pipeline_mode<synchronous>, transform_indices = @transform_1, window_bounds = array<i64: 36, 8>}, {pipeline_mode = #tpu.pipeline_mode<synchronous>, transform_indices = @transform_2, window_bounds = array<i64: 1, 8>}, {transform_indices = @transform_3, window_bounds = array<i64: 256, 8>}]} {
    %c0 = arith.constant 0 : index
    %c0_0 = arith.constant 0 : index
    %0 = vector.load %arg1[%c0, %c0_0] : memref<256x36xbf16, #tpu.memory_space<vmem>>, vector<256x36xbf16>
    %c0_1 = arith.constant 0 : index
    %c0_2 = arith.constant 0 : index
    %1 = vector.load %arg2[%c0_1, %c0_2] : memref<36x8xbf16, #tpu.memory_space<vmem>>, vector<36x8xbf16>
    %cst = arith.constant dense<0.000000e+00> : vector<256x8xf32>
    %2 = tpu.matmul %0, %1, %cst {dimension_numbers = #tpu.dot_dimension_numbers<[1], [0], [0], [1], [0, 0, 1, 1], [], []>} : vector<256x36xbf16>, vector<36x8xbf16>, vector<256x8xf32> -> vector<256x8xf32>
    %c0_3 = arith.constant 0 : index
    %c0_4 = arith.constant 0 : index
    %3 = vector.load %arg3[%c0_3, %c0_4] : memref<1x8xf32, #tpu.memory_space<vmem>>, vector<1x8xf32>
    %4 = vector.broadcast %3 : vector<1x8xf32> to vector<256x8xf32>
    %5 = arith.addf %2, %4 : vector<256x8xf32>
    %cst_5 = arith.constant 0.000000e+00 : f32
    %6 = vector.broadcast %cst_5 : f32 to vector<256x8xf32>
    %7 = arith.cmpf ogt, %5, %6 : vector<256x8xf32>
    %cst_6 = arith.constant 1.000000e-01 : f32
    %8 = vector.broadcast %cst_6 : f32 to vector<256x8xf32>
    %9 = arith.mulf %8, %5 : vector<256x8xf32>
    %10 = arith.select %7, %5, %9 : vector<256x8xi1>, vector<256x8xf32>
    %11 = arith.truncf %10 : vector<256x8xf32> to vector<256x8xbf16>
    %c0_7 = arith.constant 0 : index
    %c0_8 = arith.constant 0 : index
    %12 = vector.load %arg4[%c0_7, %c0_8] : memref<256x8xbf16, #tpu.memory_space<vmem>>, vector<256x8xbf16>
    tpu.vector_store %arg4[%c0_7, %c0_8], %11 {strides = array<i32>} : memref<256x8xbf16, #tpu.memory_space<vmem>>, vector<256x8xbf16>,
    return
  }
  func.func @transform_0(%arg0: i32) -> (i32, i32) {
    %c0_i32 = arith.constant 0 : i32
    %c0_i32_0 = arith.constant 0 : i32
    return %arg0, %c0_i32 : i32, i32
  }
  func.func @transform_1(%arg0: i32) -> (i32, i32) {
    %c0_i32 = arith.constant 0 : i32
    %c0_i32_0 = arith.constant 0 : i32
    %c0_i32_1 = arith.constant 0 : i32
    return %c0_i32, %c0_i32_0 : i32, i32
  }
  func.func @transform_2(%arg0: i32) -> (i32, i32) {
    %c0_i32 = arith.constant 0 : i32
    %c0_i32_0 = arith.constant 0 : i32
    %c0_i32_1 = arith.constant 0 : i32
    return %c0_i32, %c0_i32_0 : i32, i32
  }
  func.func @transform_3(%arg0: i32) -> (i32, i32) {
    %c0_i32 = arith.constant 0 : i32
    %c0_i32_0 = arith.constant 0 : i32
    return %arg0, %c0_i32 : i32, i32
  }
}

module attributes {stable_mosaic.version = 11 : i64} {
  func.func @kernel(%arg0: i32, %arg1: memref<64x72xbf16, #tpu.memory_space<vmem>>, %arg2: memref<72x16xbf16, #tpu.memory_space<vmem>>, %arg3: memref<1x16xf32, #tpu.memory_space<vmem>>, %arg4: memref<64x16xbf16, #tpu.memory_space<vmem>>) attributes {dimension_semantics = [#tpu.dimension_semantics<parallel>], iteration_bounds = array<i64: 2>, scalar_prefetch = 0 : i64, scratch_operands = 0 : i64, tpu.core_type = #tpu.core_type<tc>, window_params = [{transform_indices = @transform_0, window_bounds = array<i64: 64, 72>}, {pipeline_mode = #tpu.pipeline_mode<synchronous>, transform_indices = @transform_1, window_bounds = array<i64: 72, 16>}, {pipeline_mode = #tpu.pipeline_mode<synchronous>, transform_indices = @transform_2, window_bounds = array<i64: 1, 16>}, {transform_indices = @transform_3, window_bounds = array<i64: 64, 16>}]} {
    %c0 = arith.constant 0 : index
    %c0_0 = arith.constant 0 : index
    %0 = vector.load %arg1[%c0, %c0_0] : memref<64x72xbf16, #tpu.memory_space<vmem>>, vector<64x72xbf16>
    %c0_1 = arith.constant 0 : index
    %c0_2 = arith.constant 0 : index
    %1 = vector.load %arg2[%c0_1, %c0_2] : memref<72x16xbf16, #tpu.memory_space<vmem>>, vector<72x16xbf16>
    %cst = arith.constant dense<0.000000e+00> : vector<64x16xf32>
    %2 = tpu.matmul %0, %1, %cst {dimension_numbers = #tpu.dot_dimension_numbers<[1], [0], [0], [1], [0, 0, 1, 1], [], []>} : vector<64x72xbf16>, vector<72x16xbf16>, vector<64x16xf32> -> vector<64x16xf32>
    %c0_3 = arith.constant 0 : index
    %c0_4 = arith.constant 0 : index
    %3 = vector.load %arg3[%c0_3, %c0_4] : memref<1x16xf32, #tpu.memory_space<vmem>>, vector<1x16xf32>
    %4 = vector.broadcast %3 : vector<1x16xf32> to vector<64x16xf32>
    %5 = arith.addf %2, %4 : vector<64x16xf32>
    %cst_5 = arith.constant 0.000000e+00 : f32
    %6 = vector.broadcast %cst_5 : f32 to vector<64x16xf32>
    %7 = arith.cmpf ogt, %5, %6 : vector<64x16xf32>
    %cst_6 = arith.constant 1.000000e-01 : f32
    %8 = vector.broadcast %cst_6 : f32 to vector<64x16xf32>
    %9 = arith.mulf %8, %5 : vector<64x16xf32>
    %10 = arith.select %7, %5, %9 : vector<64x16xi1>, vector<64x16xf32>
    %11 = arith.truncf %10 : vector<64x16xf32> to vector<64x16xbf16>
    %c0_7 = arith.constant 0 : index
    %c0_8 = arith.constant 0 : index
    %12 = vector.load %arg4[%c0_7, %c0_8] : memref<64x16xbf16, #tpu.memory_space<vmem>>, vector<64x16xbf16>
    tpu.vector_store %arg4[%c0_7, %c0_8], %11 {strides = array<i32>} : memref<64x16xbf16, #tpu.memory_space<vmem>>, vector<64x16xbf16>,
    return
  }
  func.func @transform_0(%arg0: i32) -> (i32, i32) {
    %c0_i32 = arith.constant 0 : i32
    %c0_i32_0 = arith.constant 0 : i32
    return %arg0, %c0_i32 : i32, i32
  }
  func.func @transform_1(%arg0: i32) -> (i32, i32) {
    %c0_i32 = arith.constant 0 : i32
    %c0_i32_0 = arith.constant 0 : i32
    %c0_i32_1 = arith.constant 0 : i32
    return %c0_i32, %c0_i32_0 : i32, i32
  }
  func.func @transform_2(%arg0: i32) -> (i32, i32) {
    %c0_i32 = arith.constant 0 : i32
    %c0_i32_0 = arith.constant 0 : i32
    %c0_i32_1 = arith.constant 0 : i32
    return %c0_i32, %c0_i32_0 : i32, i32
  }
  func.func @transform_3(%arg0: i32) -> (i32, i32) {
    %c0_i32 = arith.constant 0 : i32
    %c0_i32_0 = arith.constant 0 : i32
    return %arg0, %c0_i32 : i32, i32
  }
}

module attributes {stable_mosaic.version = 11 : i64} {
  func.func @kernel(%arg0: i32, %arg1: memref<16x144xbf16, #tpu.memory_space<vmem>>, %arg2: memref<144x32xbf16, #tpu.memory_space<vmem>>, %arg3: memref<1x32xf32, #tpu.memory_space<vmem>>, %arg4: memref<16x32xbf16, #tpu.memory_space<vmem>>) attributes {dimension_semantics = [#tpu.dimension_semantics<parallel>], iteration_bounds = array<i64: 2>, scalar_prefetch = 0 : i64, scratch_operands = 0 : i64, tpu.core_type = #tpu.core_type<tc>, window_params = [{transform_indices = @transform_0, window_bounds = array<i64: 16, 144>}, {pipeline_mode = #tpu.pipeline_mode<synchronous>, transform_indices = @transform_1, window_bounds = array<i64: 144, 32>}, {pipeline_mode = #tpu.pipeline_mode<synchronous>, transform_indices = @transform_2, window_bounds = array<i64: 1, 32>}, {transform_indices = @transform_3, window_bounds = array<i64: 16, 32>}]} {
    %c0 = arith.constant 0 : index
    %c0_0 = arith.constant 0 : index
    %0 = vector.load %arg1[%c0, %c0_0] : memref<16x144xbf16, #tpu.memory_space<vmem>>, vector<16x144xbf16>
    %c0_1 = arith.constant 0 : index
    %c0_2 = arith.constant 0 : index
    %1 = vector.load %arg2[%c0_1, %c0_2] : memref<144x32xbf16, #tpu.memory_space<vmem>>, vector<144x32xbf16>
    %cst = arith.constant dense<0.000000e+00> : vector<16x32xf32>
    %2 = tpu.matmul %0, %1, %cst {dimension_numbers = #tpu.dot_dimension_numbers<[1], [0], [0], [1], [0, 0, 1, 1], [], []>} : vector<16x144xbf16>, vector<144x32xbf16>, vector<16x32xf32> -> vector<16x32xf32>
    %c0_3 = arith.constant 0 : index
    %c0_4 = arith.constant 0 : index
    %3 = vector.load %arg3[%c0_3, %c0_4] : memref<1x32xf32, #tpu.memory_space<vmem>>, vector<1x32xf32>
    %4 = vector.broadcast %3 : vector<1x32xf32> to vector<16x32xf32>
    %5 = arith.addf %2, %4 : vector<16x32xf32>
    %cst_5 = arith.constant 0.000000e+00 : f32
    %6 = vector.broadcast %cst_5 : f32 to vector<16x32xf32>
    %7 = arith.cmpf ogt, %5, %6 : vector<16x32xf32>
    %cst_6 = arith.constant 1.000000e-01 : f32
    %8 = vector.broadcast %cst_6 : f32 to vector<16x32xf32>
    %9 = arith.mulf %8, %5 : vector<16x32xf32>
    %10 = arith.select %7, %5, %9 : vector<16x32xi1>, vector<16x32xf32>
    %11 = arith.truncf %10 : vector<16x32xf32> to vector<16x32xbf16>
    %c0_7 = arith.constant 0 : index
    %c0_8 = arith.constant 0 : index
    %12 = vector.load %arg4[%c0_7, %c0_8] : memref<16x32xbf16, #tpu.memory_space<vmem>>, vector<16x32xbf16>
    tpu.vector_store %arg4[%c0_7, %c0_8], %11 {strides = array<i32>} : memref<16x32xbf16, #tpu.memory_space<vmem>>, vector<16x32xbf16>,
    return
  }
  func.func @transform_0(%arg0: i32) -> (i32, i32) {
    %c0_i32 = arith.constant 0 : i32
    %c0_i32_0 = arith.constant 0 : i32
    return %arg0, %c0_i32 : i32, i32
  }
  func.func @transform_1(%arg0: i32) -> (i32, i32) {
    %c0_i32 = arith.constant 0 : i32
    %c0_i32_0 = arith.constant 0 : i32
    %c0_i32_1 = arith.constant 0 : i32
    return %c0_i32, %c0_i32_0 : i32, i32
  }
  func.func @transform_2(%arg0: i32) -> (i32, i32) {
    %c0_i32 = arith.constant 0 : i32
    %c0_i32_0 = arith.constant 0 : i32
    %c0_i32_1 = arith.constant 0 : i32
    return %c0_i32, %c0_i32_0 : i32, i32
  }
  func.func @transform_3(%arg0: i32) -> (i32, i32) {
    %c0_i32 = arith.constant 0 : i32
    %c0_i32_0 = arith.constant 0 : i32
    return %arg0, %c0_i32 : i32, i32
  }
}

module attributes {stable_mosaic.version = 11 : i64} {
  func.func @kernel(%arg0: i32, %arg1: memref<16x288xbf16, #tpu.memory_space<vmem>>, %arg2: memref<288x64xbf16, #tpu.memory_space<vmem>>, %arg3: memref<1x64xf32, #tpu.memory_space<vmem>>, %arg4: memref<16x64xbf16, #tpu.memory_space<vmem>>) attributes {dimension_semantics = [#tpu.dimension_semantics<parallel>], iteration_bounds = array<i64: 1>, scalar_prefetch = 0 : i64, scratch_operands = 0 : i64, tpu.core_type = #tpu.core_type<tc>, window_params = [{transform_indices = @transform_0, window_bounds = array<i64: 16, 288>}, {pipeline_mode = #tpu.pipeline_mode<synchronous>, transform_indices = @transform_1, window_bounds = array<i64: 288, 64>}, {pipeline_mode = #tpu.pipeline_mode<synchronous>, transform_indices = @transform_2, window_bounds = array<i64: 1, 64>}, {transform_indices = @transform_3, window_bounds = array<i64: 16, 64>}]} {
    %c0 = arith.constant 0 : index
    %c0_0 = arith.constant 0 : index
    %0 = vector.load %arg1[%c0, %c0_0] : memref<16x288xbf16, #tpu.memory_space<vmem>>, vector<16x288xbf16>
    %c0_1 = arith.constant 0 : index
    %c0_2 = arith.constant 0 : index
    %1 = vector.load %arg2[%c0_1, %c0_2] : memref<288x64xbf16, #tpu.memory_space<vmem>>, vector<288x64xbf16>
    %cst = arith.constant dense<0.000000e+00> : vector<16x64xf32>
    %2 = tpu.matmul %0, %1, %cst {dimension_numbers = #tpu.dot_dimension_numbers<[1], [0], [0], [1], [0, 0, 1, 1], [], []>} : vector<16x288xbf16>, vector<288x64xbf16>, vector<16x64xf32> -> vector<16x64xf32>
    %c0_3 = arith.constant 0 : index
    %c0_4 = arith.constant 0 : index
    %3 = vector.load %arg3[%c0_3, %c0_4] : memref<1x64xf32, #tpu.memory_space<vmem>>, vector<1x64xf32>
    %4 = vector.broadcast %3 : vector<1x64xf32> to vector<16x64xf32>
    %5 = arith.addf %2, %4 : vector<16x64xf32>
    %cst_5 = arith.constant 0.000000e+00 : f32
    %6 = vector.broadcast %cst_5 : f32 to vector<16x64xf32>
    %7 = arith.cmpf ogt, %5, %6 : vector<16x64xf32>
    %cst_6 = arith.constant 1.000000e-01 : f32
    %8 = vector.broadcast %cst_6 : f32 to vector<16x64xf32>
    %9 = arith.mulf %8, %5 : vector<16x64xf32>
    %10 = arith.select %7, %5, %9 : vector<16x64xi1>, vector<16x64xf32>
    %11 = arith.truncf %10 : vector<16x64xf32> to vector<16x64xbf16>
    %c0_7 = arith.constant 0 : index
    %c0_8 = arith.constant 0 : index
    %12 = vector.load %arg4[%c0_7, %c0_8] : memref<16x64xbf16, #tpu.memory_space<vmem>>, vector<16x64xbf16>
    tpu.vector_store %arg4[%c0_7, %c0_8], %11 {strides = array<i32>} : memref<16x64xbf16, #tpu.memory_space<vmem>>, vector<16x64xbf16>,
    return
  }
  func.func @transform_0(%arg0: i32) -> (i32, i32) {
    %c0_i32 = arith.constant 0 : i32
    %c0_i32_0 = arith.constant 0 : i32
    return %arg0, %c0_i32 : i32, i32
  }
  func.func @transform_1(%arg0: i32) -> (i32, i32) {
    %c0_i32 = arith.constant 0 : i32
    %c0_i32_0 = arith.constant 0 : i32
    %c0_i32_1 = arith.constant 0 : i32
    return %c0_i32, %c0_i32_0 : i32, i32
  }
  func.func @transform_2(%arg0: i32) -> (i32, i32) {
    %c0_i32 = arith.constant 0 : i32
    %c0_i32_0 = arith.constant 0 : i32
    %c0_i32_1 = arith.constant 0 : i32
    return %c0_i32, %c0_i32_0 : i32, i32
  }
  func.func @transform_3(%arg0: i32) -> (i32, i32) {
    %c0_i32 = arith.constant 0 : i32
    %c0_i32_0 = arith.constant 0 : i32
    return %arg0, %c0_i32 : i32, i32
  }
}

module attributes {stable_mosaic.version = 11 : i64} {
  func.func @kernel(%arg0: i32, %arg1: memref<16x576xbf16, #tpu.memory_space<vmem>>, %arg2: memref<576x64xbf16, #tpu.memory_space<vmem>>, %arg3: memref<1x64xf32, #tpu.memory_space<vmem>>, %arg4: memref<16x64xbf16, #tpu.memory_space<vmem>>) attributes {dimension_semantics = [#tpu.dimension_semantics<parallel>], iteration_bounds = array<i64: 1>, scalar_prefetch = 0 : i64, scratch_operands = 0 : i64, tpu.core_type = #tpu.core_type<tc>, window_params = [{transform_indices = @transform_0, window_bounds = array<i64: 16, 576>}, {pipeline_mode = #tpu.pipeline_mode<synchronous>, transform_indices = @transform_1, window_bounds = array<i64: 576, 64>}, {pipeline_mode = #tpu.pipeline_mode<synchronous>, transform_indices = @transform_2, window_bounds = array<i64: 1, 64>}, {transform_indices = @transform_3, window_bounds = array<i64: 16, 64>}]} {
    %c0 = arith.constant 0 : index
    %c0_0 = arith.constant 0 : index
    %0 = vector.load %arg1[%c0, %c0_0] : memref<16x576xbf16, #tpu.memory_space<vmem>>, vector<16x576xbf16>
    %c0_1 = arith.constant 0 : index
    %c0_2 = arith.constant 0 : index
    %1 = vector.load %arg2[%c0_1, %c0_2] : memref<576x64xbf16, #tpu.memory_space<vmem>>, vector<576x64xbf16>
    %cst = arith.constant dense<0.000000e+00> : vector<16x64xf32>
    %2 = tpu.matmul %0, %1, %cst {dimension_numbers = #tpu.dot_dimension_numbers<[1], [0], [0], [1], [0, 0, 1, 1], [], []>} : vector<16x576xbf16>, vector<576x64xbf16>, vector<16x64xf32> -> vector<16x64xf32>
    %c0_3 = arith.constant 0 : index
    %c0_4 = arith.constant 0 : index
    %3 = vector.load %arg3[%c0_3, %c0_4] : memref<1x64xf32, #tpu.memory_space<vmem>>, vector<1x64xf32>
    %4 = vector.broadcast %3 : vector<1x64xf32> to vector<16x64xf32>
    %5 = arith.addf %2, %4 : vector<16x64xf32>
    %cst_5 = arith.constant 0.000000e+00 : f32
    %6 = vector.broadcast %cst_5 : f32 to vector<16x64xf32>
    %7 = arith.cmpf ogt, %5, %6 : vector<16x64xf32>
    %cst_6 = arith.constant 1.000000e-01 : f32
    %8 = vector.broadcast %cst_6 : f32 to vector<16x64xf32>
    %9 = arith.mulf %8, %5 : vector<16x64xf32>
    %10 = arith.select %7, %5, %9 : vector<16x64xi1>, vector<16x64xf32>
    %11 = arith.truncf %10 : vector<16x64xf32> to vector<16x64xbf16>
    %c0_7 = arith.constant 0 : index
    %c0_8 = arith.constant 0 : index
    %12 = vector.load %arg4[%c0_7, %c0_8] : memref<16x64xbf16, #tpu.memory_space<vmem>>, vector<16x64xbf16>
    tpu.vector_store %arg4[%c0_7, %c0_8], %11 {strides = array<i32>} : memref<16x64xbf16, #tpu.memory_space<vmem>>, vector<16x64xbf16>,
    return
  }
  func.func @transform_0(%arg0: i32) -> (i32, i32) {
    %c0_i32 = arith.constant 0 : i32
    %c0_i32_0 = arith.constant 0 : i32
    return %arg0, %c0_i32 : i32, i32
  }
  func.func @transform_1(%arg0: i32) -> (i32, i32) {
    %c0_i32 = arith.constant 0 : i32
    %c0_i32_0 = arith.constant 0 : i32
    %c0_i32_1 = arith.constant 0 : i32
    return %c0_i32, %c0_i32_0 : i32, i32
  }
  func.func @transform_2(%arg0: i32) -> (i32, i32) {
    %c0_i32 = arith.constant 0 : i32
    %c0_i32_0 = arith.constant 0 : i32
    %c0_i32_1 = arith.constant 0 : i32
    return %c0_i32, %c0_i32_0 : i32, i32
  }
  func.func @transform_3(%arg0: i32) -> (i32, i32) {
    %c0_i32 = arith.constant 0 : i32
    %c0_i32_0 = arith.constant 0 : i32
    return %arg0, %c0_i32 : i32, i32
  }
}

module attributes {stable_mosaic.version = 11 : i64} {
  func.func @kernel(%arg0: i32, %arg1: memref<16x64xbf16, #tpu.memory_space<vmem>>, %arg2: memref<64x64xbf16, #tpu.memory_space<vmem>>, %arg3: memref<1x64xf32, #tpu.memory_space<vmem>>, %arg4: memref<16x64xbf16, #tpu.memory_space<vmem>>) attributes {dimension_semantics = [#tpu.dimension_semantics<parallel>], iteration_bounds = array<i64: 1>, scalar_prefetch = 0 : i64, scratch_operands = 0 : i64, tpu.core_type = #tpu.core_type<tc>, window_params = [{transform_indices = @transform_0, window_bounds = array<i64: 16, 64>}, {pipeline_mode = #tpu.pipeline_mode<synchronous>, transform_indices = @transform_1, window_bounds = array<i64: 64, 64>}, {pipeline_mode = #tpu.pipeline_mode<synchronous>, transform_indices = @transform_2, window_bounds = array<i64: 1, 64>}, {transform_indices = @transform_3, window_bounds = array<i64: 16, 64>}]} {
    %c0 = arith.constant 0 : index
    %c0_0 = arith.constant 0 : index
    %0 = vector.load %arg1[%c0, %c0_0] : memref<16x64xbf16, #tpu.memory_space<vmem>>, vector<16x64xbf16>
    %c0_1 = arith.constant 0 : index
    %c0_2 = arith.constant 0 : index
    %1 = vector.load %arg2[%c0_1, %c0_2] : memref<64x64xbf16, #tpu.memory_space<vmem>>, vector<64x64xbf16>
    %cst = arith.constant dense<0.000000e+00> : vector<16x64xf32>
    %2 = tpu.matmul %0, %1, %cst {dimension_numbers = #tpu.dot_dimension_numbers<[1], [0], [0], [1], [0, 0, 1, 1], [], []>} : vector<16x64xbf16>, vector<64x64xbf16>, vector<16x64xf32> -> vector<16x64xf32>
    %c0_3 = arith.constant 0 : index
    %c0_4 = arith.constant 0 : index
    %3 = vector.load %arg3[%c0_3, %c0_4] : memref<1x64xf32, #tpu.memory_space<vmem>>, vector<1x64xf32>
    %4 = vector.broadcast %3 : vector<1x64xf32> to vector<16x64xf32>
    %5 = arith.addf %2, %4 : vector<16x64xf32>
    %cst_5 = arith.constant 0.000000e+00 : f32
    %6 = vector.broadcast %cst_5 : f32 to vector<16x64xf32>
    %7 = arith.cmpf ogt, %5, %6 : vector<16x64xf32>
    %cst_6 = arith.constant 1.000000e-01 : f32
    %8 = vector.broadcast %cst_6 : f32 to vector<16x64xf32>
    %9 = arith.mulf %8, %5 : vector<16x64xf32>
    %10 = arith.select %7, %5, %9 : vector<16x64xi1>, vector<16x64xf32>
    %11 = arith.truncf %10 : vector<16x64xf32> to vector<16x64xbf16>
    %c0_7 = arith.constant 0 : index
    %c0_8 = arith.constant 0 : index
    %12 = vector.load %arg4[%c0_7, %c0_8] : memref<16x64xbf16, #tpu.memory_space<vmem>>, vector<16x64xbf16>
    tpu.vector_store %arg4[%c0_7, %c0_8], %11 {strides = array<i32>} : memref<16x64xbf16, #tpu.memory_space<vmem>>, vector<16x64xbf16>,
    return
  }
  func.func @transform_0(%arg0: i32) -> (i32, i32) {
    %c0_i32 = arith.constant 0 : i32
    %c0_i32_0 = arith.constant 0 : i32
    return %arg0, %c0_i32 : i32, i32
  }
  func.func @transform_1(%arg0: i32) -> (i32, i32) {
    %c0_i32 = arith.constant 0 : i32
    %c0_i32_0 = arith.constant 0 : i32
    %c0_i32_1 = arith.constant 0 : i32
    return %c0_i32, %c0_i32_0 : i32, i32
  }
  func.func @transform_2(%arg0: i32) -> (i32, i32) {
    %c0_i32 = arith.constant 0 : i32
    %c0_i32_0 = arith.constant 0 : i32
    %c0_i32_1 = arith.constant 0 : i32
    return %c0_i32, %c0_i32_0 : i32, i32
  }
  func.func @transform_3(%arg0: i32) -> (i32, i32) {
    %c0_i32 = arith.constant 0 : i32
    %c0_i32_0 = arith.constant 0 : i32
    return %arg0, %c0_i32 : i32, i32
  }
}

module attributes {stable_mosaic.version = 11 : i64} {
  func.func @kernel(%arg0: i32, %arg1: memref<16x64xbf16, #tpu.memory_space<vmem>>, %arg2: memref<64x32xbf16, #tpu.memory_space<vmem>>, %arg3: memref<1x32xf32, #tpu.memory_space<vmem>>, %arg4: memref<16x32xbf16, #tpu.memory_space<vmem>>) attributes {dimension_semantics = [#tpu.dimension_semantics<parallel>], iteration_bounds = array<i64: 1>, scalar_prefetch = 0 : i64, scratch_operands = 0 : i64, tpu.core_type = #tpu.core_type<tc>, window_params = [{transform_indices = @transform_0, window_bounds = array<i64: 16, 64>}, {pipeline_mode = #tpu.pipeline_mode<synchronous>, transform_indices = @transform_1, window_bounds = array<i64: 64, 32>}, {pipeline_mode = #tpu.pipeline_mode<synchronous>, transform_indices = @transform_2, window_bounds = array<i64: 1, 32>}, {transform_indices = @transform_3, window_bounds = array<i64: 16, 32>}]} {
    %c0 = arith.constant 0 : index
    %c0_0 = arith.constant 0 : index
    %0 = vector.load %arg1[%c0, %c0_0] : memref<16x64xbf16, #tpu.memory_space<vmem>>, vector<16x64xbf16>
    %c0_1 = arith.constant 0 : index
    %c0_2 = arith.constant 0 : index
    %1 = vector.load %arg2[%c0_1, %c0_2] : memref<64x32xbf16, #tpu.memory_space<vmem>>, vector<64x32xbf16>
    %cst = arith.constant dense<0.000000e+00> : vector<16x32xf32>
    %2 = tpu.matmul %0, %1, %cst {dimension_numbers = #tpu.dot_dimension_numbers<[1], [0], [0], [1], [0, 0, 1, 1], [], []>} : vector<16x64xbf16>, vector<64x32xbf16>, vector<16x32xf32> -> vector<16x32xf32>
    %c0_3 = arith.constant 0 : index
    %c0_4 = arith.constant 0 : index
    %3 = vector.load %arg3[%c0_3, %c0_4] : memref<1x32xf32, #tpu.memory_space<vmem>>, vector<1x32xf32>
    %4 = vector.broadcast %3 : vector<1x32xf32> to vector<16x32xf32>
    %5 = arith.addf %2, %4 : vector<16x32xf32>
    %cst_5 = arith.constant 0.000000e+00 : f32
    %6 = vector.broadcast %cst_5 : f32 to vector<16x32xf32>
    %7 = arith.cmpf ogt, %5, %6 : vector<16x32xf32>
    %cst_6 = arith.constant 1.000000e-01 : f32
    %8 = vector.broadcast %cst_6 : f32 to vector<16x32xf32>
    %9 = arith.mulf %8, %5 : vector<16x32xf32>
    %10 = arith.select %7, %5, %9 : vector<16x32xi1>, vector<16x32xf32>
    %11 = arith.truncf %10 : vector<16x32xf32> to vector<16x32xbf16>
    %c0_7 = arith.constant 0 : index
    %c0_8 = arith.constant 0 : index
    %12 = vector.load %arg4[%c0_7, %c0_8] : memref<16x32xbf16, #tpu.memory_space<vmem>>, vector<16x32xbf16>
    tpu.vector_store %arg4[%c0_7, %c0_8], %11 {strides = array<i32>} : memref<16x32xbf16, #tpu.memory_space<vmem>>, vector<16x32xbf16>,
    return
  }
  func.func @transform_0(%arg0: i32) -> (i32, i32) {
    %c0_i32 = arith.constant 0 : i32
    %c0_i32_0 = arith.constant 0 : i32
    return %arg0, %c0_i32 : i32, i32
  }
  func.func @transform_1(%arg0: i32) -> (i32, i32) {
    %c0_i32 = arith.constant 0 : i32
    %c0_i32_0 = arith.constant 0 : i32
    %c0_i32_1 = arith.constant 0 : i32
    return %c0_i32, %c0_i32_0 : i32, i32
  }
  func.func @transform_2(%arg0: i32) -> (i32, i32) {
    %c0_i32 = arith.constant 0 : i32
    %c0_i32_0 = arith.constant 0 : i32
    %c0_i32_1 = arith.constant 0 : i32
    return %c0_i32, %c0_i32_0 : i32, i32
  }
  func.func @transform_3(%arg0: i32) -> (i32, i32) {
    %c0_i32 = arith.constant 0 : i32
    %c0_i32_0 = arith.constant 0 : i32
    return %arg0, %c0_i32 : i32, i32
  }
}

module attributes {stable_mosaic.version = 11 : i64} {
  func.func @kernel(%arg0: i32, %arg1: memref<16x64xbf16, #tpu.memory_space<vmem>>, %arg2: memref<64x32xbf16, #tpu.memory_space<vmem>>, %arg3: memref<1x32xf32, #tpu.memory_space<vmem>>, %arg4: memref<16x32xbf16, #tpu.memory_space<vmem>>, %arg5: memref<16x32xbf16, #tpu.memory_space<vmem>>) attributes {dimension_semantics = [#tpu.dimension_semantics<parallel>], iteration_bounds = array<i64: 1>, scalar_prefetch = 0 : i64, scratch_operands = 0 : i64, tpu.core_type = #tpu.core_type<tc>, window_params = [{transform_indices = @transform_0, window_bounds = array<i64: 16, 64>}, {pipeline_mode = #tpu.pipeline_mode<synchronous>, transform_indices = @transform_1, window_bounds = array<i64: 64, 32>}, {pipeline_mode = #tpu.pipeline_mode<synchronous>, transform_indices = @transform_2, window_bounds = array<i64: 1, 32>}, {transform_indices = @transform_3, window_bounds = array<i64: 16, 32>}, {transform_indices = @transform_4, window_bounds = array<i64: 16, 32>}]} {
    %c0 = arith.constant 0 : index
    %c0_0 = arith.constant 0 : index
    %0 = vector.load %arg1[%c0, %c0_0] : memref<16x64xbf16, #tpu.memory_space<vmem>>, vector<16x64xbf16>
    %c0_1 = arith.constant 0 : index
    %c0_2 = arith.constant 0 : index
    %1 = vector.load %arg2[%c0_1, %c0_2] : memref<64x32xbf16, #tpu.memory_space<vmem>>, vector<64x32xbf16>
    %cst = arith.constant dense<0.000000e+00> : vector<16x32xf32>
    %2 = tpu.matmul %0, %1, %cst {dimension_numbers = #tpu.dot_dimension_numbers<[1], [0], [0], [1], [0, 0, 1, 1], [], []>} : vector<16x64xbf16>, vector<64x32xbf16>, vector<16x32xf32> -> vector<16x32xf32>
    %c0_3 = arith.constant 0 : index
    %c0_4 = arith.constant 0 : index
    %3 = vector.load %arg3[%c0_3, %c0_4] : memref<1x32xf32, #tpu.memory_space<vmem>>, vector<1x32xf32>
    %4 = vector.broadcast %3 : vector<1x32xf32> to vector<16x32xf32>
    %5 = arith.addf %2, %4 : vector<16x32xf32>
    %c0_5 = arith.constant 0 : index
    %c0_6 = arith.constant 0 : index
    %6 = vector.load %arg4[%c0_5, %c0_6] : memref<16x32xbf16, #tpu.memory_space<vmem>>, vector<16x32xbf16>
    %7 = arith.extf %6 : vector<16x32xbf16> to vector<16x32xf32>
    %8 = arith.addf %5, %7 : vector<16x32xf32>
    %9 = arith.truncf %8 : vector<16x32xf32> to vector<16x32xbf16>
    %c0_7 = arith.constant 0 : index
    %c0_8 = arith.constant 0 : index
    %10 = vector.load %arg5[%c0_7, %c0_8] : memref<16x32xbf16, #tpu.memory_space<vmem>>, vector<16x32xbf16>
    tpu.vector_store %arg5[%c0_7, %c0_8], %9 {strides = array<i32>} : memref<16x32xbf16, #tpu.memory_space<vmem>>, vector<16x32xbf16>,
    return
  }
  func.func @transform_0(%arg0: i32) -> (i32, i32) {
    %c0_i32 = arith.constant 0 : i32
    %c0_i32_0 = arith.constant 0 : i32
    return %arg0, %c0_i32 : i32, i32
  }
  func.func @transform_1(%arg0: i32) -> (i32, i32) {
    %c0_i32 = arith.constant 0 : i32
    %c0_i32_0 = arith.constant 0 : i32
    %c0_i32_1 = arith.constant 0 : i32
    return %c0_i32, %c0_i32_0 : i32, i32
  }
  func.func @transform_2(%arg0: i32) -> (i32, i32) {
    %c0_i32 = arith.constant 0 : i32
    %c0_i32_0 = arith.constant 0 : i32
    %c0_i32_1 = arith.constant 0 : i32
    return %c0_i32, %c0_i32_0 : i32, i32
  }
  func.func @transform_3(%arg0: i32) -> (i32, i32) {
    %c0_i32 = arith.constant 0 : i32
    %c0_i32_0 = arith.constant 0 : i32
    return %arg0, %c0_i32 : i32, i32
  }
  func.func @transform_4(%arg0: i32) -> (i32, i32) {
    %c0_i32 = arith.constant 0 : i32
    %c0_i32_0 = arith.constant 0 : i32
    return %arg0, %c0_i32 : i32, i32
  }
}

module attributes {stable_mosaic.version = 11 : i64} {
  func.func @kernel(%arg0: i32, %arg1: memref<16x32xbf16, #tpu.memory_space<vmem>>, %arg2: memref<32x32xbf16, #tpu.memory_space<vmem>>, %arg3: memref<1x32xf32, #tpu.memory_space<vmem>>, %arg4: memref<16x32xbf16, #tpu.memory_space<vmem>>) attributes {dimension_semantics = [#tpu.dimension_semantics<parallel>], iteration_bounds = array<i64: 1>, scalar_prefetch = 0 : i64, scratch_operands = 0 : i64, tpu.core_type = #tpu.core_type<tc>, window_params = [{transform_indices = @transform_0, window_bounds = array<i64: 16, 32>}, {pipeline_mode = #tpu.pipeline_mode<synchronous>, transform_indices = @transform_1, window_bounds = array<i64: 32, 32>}, {pipeline_mode = #tpu.pipeline_mode<synchronous>, transform_indices = @transform_2, window_bounds = array<i64: 1, 32>}, {transform_indices = @transform_3, window_bounds = array<i64: 16, 32>}]} {
    %c0 = arith.constant 0 : index
    %c0_0 = arith.constant 0 : index
    %0 = vector.load %arg1[%c0, %c0_0] : memref<16x32xbf16, #tpu.memory_space<vmem>>, vector<16x32xbf16>
    %c0_1 = arith.constant 0 : index
    %c0_2 = arith.constant 0 : index
    %1 = vector.load %arg2[%c0_1, %c0_2] : memref<32x32xbf16, #tpu.memory_space<vmem>>, vector<32x32xbf16>
    %cst = arith.constant dense<0.000000e+00> : vector<16x32xf32>
    %2 = tpu.matmul %0, %1, %cst {dimension_numbers = #tpu.dot_dimension_numbers<[1], [0], [0], [1], [0, 0, 1, 1], [], []>} : vector<16x32xbf16>, vector<32x32xbf16>, vector<16x32xf32> -> vector<16x32xf32>
    %c0_3 = arith.constant 0 : index
    %c0_4 = arith.constant 0 : index
    %3 = vector.load %arg3[%c0_3, %c0_4] : memref<1x32xf32, #tpu.memory_space<vmem>>, vector<1x32xf32>
    %4 = vector.broadcast %3 : vector<1x32xf32> to vector<16x32xf32>
    %5 = arith.addf %2, %4 : vector<16x32xf32>
    %cst_5 = arith.constant 0.000000e+00 : f32
    %6 = vector.broadcast %cst_5 : f32 to vector<16x32xf32>
    %7 = arith.cmpf ogt, %5, %6 : vector<16x32xf32>
    %cst_6 = arith.constant 1.000000e-01 : f32
    %8 = vector.broadcast %cst_6 : f32 to vector<16x32xf32>
    %9 = arith.mulf %8, %5 : vector<16x32xf32>
    %10 = arith.select %7, %5, %9 : vector<16x32xi1>, vector<16x32xf32>
    %11 = arith.truncf %10 : vector<16x32xf32> to vector<16x32xbf16>
    %c0_7 = arith.constant 0 : index
    %c0_8 = arith.constant 0 : index
    %12 = vector.load %arg4[%c0_7, %c0_8] : memref<16x32xbf16, #tpu.memory_space<vmem>>, vector<16x32xbf16>
    tpu.vector_store %arg4[%c0_7, %c0_8], %11 {strides = array<i32>} : memref<16x32xbf16, #tpu.memory_space<vmem>>, vector<16x32xbf16>,
    return
  }
  func.func @transform_0(%arg0: i32) -> (i32, i32) {
    %c0_i32 = arith.constant 0 : i32
    %c0_i32_0 = arith.constant 0 : i32
    return %arg0, %c0_i32 : i32, i32
  }
  func.func @transform_1(%arg0: i32) -> (i32, i32) {
    %c0_i32 = arith.constant 0 : i32
    %c0_i32_0 = arith.constant 0 : i32
    %c0_i32_1 = arith.constant 0 : i32
    return %c0_i32, %c0_i32_0 : i32, i32
  }
  func.func @transform_2(%arg0: i32) -> (i32, i32) {
    %c0_i32 = arith.constant 0 : i32
    %c0_i32_0 = arith.constant 0 : i32
    %c0_i32_1 = arith.constant 0 : i32
    return %c0_i32, %c0_i32_0 : i32, i32
  }
  func.func @transform_3(%arg0: i32) -> (i32, i32) {
    %c0_i32 = arith.constant 0 : i32
    %c0_i32_0 = arith.constant 0 : i32
    return %arg0, %c0_i32 : i32, i32
  }
}

module attributes {stable_mosaic.version = 11 : i64} {
  func.func @kernel(%arg0: i32, %arg1: memref<16x32xbf16, #tpu.memory_space<vmem>>, %arg2: memref<32x32xbf16, #tpu.memory_space<vmem>>, %arg3: memref<1x32xf32, #tpu.memory_space<vmem>>, %arg4: memref<16x32xbf16, #tpu.memory_space<vmem>>, %arg5: memref<16x32xbf16, #tpu.memory_space<vmem>>) attributes {dimension_semantics = [#tpu.dimension_semantics<parallel>], iteration_bounds = array<i64: 1>, scalar_prefetch = 0 : i64, scratch_operands = 0 : i64, tpu.core_type = #tpu.core_type<tc>, window_params = [{transform_indices = @transform_0, window_bounds = array<i64: 16, 32>}, {pipeline_mode = #tpu.pipeline_mode<synchronous>, transform_indices = @transform_1, window_bounds = array<i64: 32, 32>}, {pipeline_mode = #tpu.pipeline_mode<synchronous>, transform_indices = @transform_2, window_bounds = array<i64: 1, 32>}, {transform_indices = @transform_3, window_bounds = array<i64: 16, 32>}, {transform_indices = @transform_4, window_bounds = array<i64: 16, 32>}]} {
    %c0 = arith.constant 0 : index
    %c0_0 = arith.constant 0 : index
    %0 = vector.load %arg1[%c0, %c0_0] : memref<16x32xbf16, #tpu.memory_space<vmem>>, vector<16x32xbf16>
    %c0_1 = arith.constant 0 : index
    %c0_2 = arith.constant 0 : index
    %1 = vector.load %arg2[%c0_1, %c0_2] : memref<32x32xbf16, #tpu.memory_space<vmem>>, vector<32x32xbf16>
    %cst = arith.constant dense<0.000000e+00> : vector<16x32xf32>
    %2 = tpu.matmul %0, %1, %cst {dimension_numbers = #tpu.dot_dimension_numbers<[1], [0], [0], [1], [0, 0, 1, 1], [], []>} : vector<16x32xbf16>, vector<32x32xbf16>, vector<16x32xf32> -> vector<16x32xf32>
    %c0_3 = arith.constant 0 : index
    %c0_4 = arith.constant 0 : index
    %3 = vector.load %arg3[%c0_3, %c0_4] : memref<1x32xf32, #tpu.memory_space<vmem>>, vector<1x32xf32>
    %4 = vector.broadcast %3 : vector<1x32xf32> to vector<16x32xf32>
    %5 = arith.addf %2, %4 : vector<16x32xf32>
    %c0_5 = arith.constant 0 : index
    %c0_6 = arith.constant 0 : index
    %6 = vector.load %arg4[%c0_5, %c0_6] : memref<16x32xbf16, #tpu.memory_space<vmem>>, vector<16x32xbf16>
    %7 = arith.extf %6 : vector<16x32xbf16> to vector<16x32xf32>
    %8 = arith.addf %5, %7 : vector<16x32xf32>
    %9 = arith.truncf %8 : vector<16x32xf32> to vector<16x32xbf16>
    %c0_7 = arith.constant 0 : index
    %c0_8 = arith.constant 0 : index
    %10 = vector.load %arg5[%c0_7, %c0_8] : memref<16x32xbf16, #tpu.memory_space<vmem>>, vector<16x32xbf16>
    tpu.vector_store %arg5[%c0_7, %c0_8], %9 {strides = array<i32>} : memref<16x32xbf16, #tpu.memory_space<vmem>>, vector<16x32xbf16>,
    return
  }
  func.func @transform_0(%arg0: i32) -> (i32, i32) {
    %c0_i32 = arith.constant 0 : i32
    %c0_i32_0 = arith.constant 0 : i32
    return %arg0, %c0_i32 : i32, i32
  }
  func.func @transform_1(%arg0: i32) -> (i32, i32) {
    %c0_i32 = arith.constant 0 : i32
    %c0_i32_0 = arith.constant 0 : i32
    %c0_i32_1 = arith.constant 0 : i32
    return %c0_i32, %c0_i32_0 : i32, i32
  }
  func.func @transform_2(%arg0: i32) -> (i32, i32) {
    %c0_i32 = arith.constant 0 : i32
    %c0_i32_0 = arith.constant 0 : i32
    %c0_i32_1 = arith.constant 0 : i32
    return %c0_i32, %c0_i32_0 : i32, i32
  }
  func.func @transform_3(%arg0: i32) -> (i32, i32) {
    %c0_i32 = arith.constant 0 : i32
    %c0_i32_0 = arith.constant 0 : i32
    return %arg0, %c0_i32 : i32, i32
  }
  func.func @transform_4(%arg0: i32) -> (i32, i32) {
    %c0_i32 = arith.constant 0 : i32
    %c0_i32_0 = arith.constant 0 : i32
    return %arg0, %c0_i32 : i32, i32
  }
}

module attributes {stable_mosaic.version = 11 : i64} {
  func.func @_head_decode_kernel(%arg0: i32, %arg1: memref<1x16x32xbf16, #tpu.memory_space<vmem>>, %arg2: memref<1x32x64xbf16, #tpu.memory_space<vmem>>, %arg3: memref<1x1x64xf32, #tpu.memory_space<vmem>>, %arg4: memref<1x64x64xbf16, #tpu.memory_space<vmem>>, %arg5: memref<1x1x64xf32, #tpu.memory_space<vmem>>, %arg6: memref<1x64x75xbf16, #tpu.memory_space<vmem>>, %arg7: memref<1x1x75xf32, #tpu.memory_space<vmem>>, %arg8: memref<1x16x16xf32, #tpu.memory_space<vmem>>, %arg9: memref<1x16x128xf32, #tpu.memory_space<vmem>>) attributes {dimension_semantics = [#tpu.dimension_semantics<parallel>], iteration_bounds = array<i64: 3>, scalar_prefetch = 0 : i64, scratch_operands = 0 : i64, tpu.core_type = #tpu.core_type<tc>, window_params = [{transform_indices = @transform_0, window_bounds = array<i64: 1, 16, 32>}, {transform_indices = @transform_1, window_bounds = array<i64: 1, 32, 64>}, {transform_indices = @transform_2, window_bounds = array<i64: 1, 1, 64>}, {transform_indices = @transform_3, window_bounds = array<i64: 1, 64, 64>}, {transform_indices = @transform_4, window_bounds = array<i64: 1, 1, 64>}, {transform_indices = @transform_5, window_bounds = array<i64: 1, 64, 75>}, {transform_indices = @transform_6, window_bounds = array<i64: 1, 1, 75>}, {transform_indices = @transform_7, window_bounds = array<i64: 1, 16, 16>}, {transform_indices = @transform_8, window_bounds = array<i64: 1, 16, 128>}]} {
    %c0 = arith.constant 0 : index
    %c0_0 = arith.constant 0 : index
    %c0_1 = arith.constant 0 : index
    %0 = vector.load %arg1[%c0, %c0_0, %c0_1] : memref<1x16x32xbf16, #tpu.memory_space<vmem>>, vector<1x16x32xbf16>
    %1 = vector.shape_cast %0 : vector<1x16x32xbf16> to vector<16x32xbf16>
    %c0_2 = arith.constant 0 : index
    %c0_3 = arith.constant 0 : index
    %c0_4 = arith.constant 0 : index
    %2 = vector.load %arg2[%c0_2, %c0_3, %c0_4] : memref<1x32x64xbf16, #tpu.memory_space<vmem>>, vector<1x32x64xbf16>
    %3 = vector.shape_cast %2 : vector<1x32x64xbf16> to vector<32x64xbf16>
    %cst = arith.constant dense<0.000000e+00> : vector<16x64xf32>
    %4 = tpu.matmul %1, %3, %cst {dimension_numbers = #tpu.dot_dimension_numbers<[1], [0], [0], [1], [0, 0, 1, 1], [], []>} : vector<16x32xbf16>, vector<32x64xbf16>, vector<16x64xf32> -> vector<16x64xf32>
    %c0_5 = arith.constant 0 : index
    %c0_6 = arith.constant 0 : index
    %c0_7 = arith.constant 0 : index
    %5 = vector.load %arg3[%c0_5, %c0_6, %c0_7] : memref<1x1x64xf32, #tpu.memory_space<vmem>>, vector<1x1x64xf32>
    %6 = vector.shape_cast %5 : vector<1x1x64xf32> to vector<1x64xf32>
    %7 = vector.broadcast %6 : vector<1x64xf32> to vector<16x64xf32>
    %8 = arith.addf %4, %7 : vector<16x64xf32>
    %cst_8 = arith.constant 0.000000e+00 : f32
    %9 = vector.broadcast %cst_8 : f32 to vector<16x64xf32>
    %10 = arith.cmpf ogt, %8, %9 : vector<16x64xf32>
    %cst_9 = arith.constant 1.000000e-01 : f32
    %11 = vector.broadcast %cst_9 : f32 to vector<16x64xf32>
    %12 = arith.mulf %11, %8 : vector<16x64xf32>
    %13 = arith.select %10, %8, %12 : vector<16x64xi1>, vector<16x64xf32>
    %14 = arith.truncf %13 : vector<16x64xf32> to vector<16x64xbf16>
    %c0_10 = arith.constant 0 : index
    %c0_11 = arith.constant 0 : index
    %c0_12 = arith.constant 0 : index
    %15 = vector.load %arg4[%c0_10, %c0_11, %c0_12] : memref<1x64x64xbf16, #tpu.memory_space<vmem>>, vector<1x64x64xbf16>
    %16 = vector.shape_cast %15 : vector<1x64x64xbf16> to vector<64x64xbf16>
    %cst_13 = arith.constant dense<0.000000e+00> : vector<16x64xf32>
    %17 = tpu.matmul %14, %16, %cst_13 {dimension_numbers = #tpu.dot_dimension_numbers<[1], [0], [0], [1], [0, 0, 1, 1], [], []>} : vector<16x64xbf16>, vector<64x64xbf16>, vector<16x64xf32> -> vector<16x64xf32>
    %c0_14 = arith.constant 0 : index
    %c0_15 = arith.constant 0 : index
    %c0_16 = arith.constant 0 : index
    %18 = vector.load %arg5[%c0_14, %c0_15, %c0_16] : memref<1x1x64xf32, #tpu.memory_space<vmem>>, vector<1x1x64xf32>
    %19 = vector.shape_cast %18 : vector<1x1x64xf32> to vector<1x64xf32>
    %20 = vector.broadcast %19 : vector<1x64xf32> to vector<16x64xf32>
    %21 = arith.addf %17, %20 : vector<16x64xf32>
    %cst_17 = arith.constant 0.000000e+00 : f32
    %22 = vector.broadcast %cst_17 : f32 to vector<16x64xf32>
    %23 = arith.cmpf ogt, %21, %22 : vector<16x64xf32>
    %cst_18 = arith.constant 1.000000e-01 : f32
    %24 = vector.broadcast %cst_18 : f32 to vector<16x64xf32>
    %25 = arith.mulf %24, %21 : vector<16x64xf32>
    %26 = arith.select %23, %21, %25 : vector<16x64xi1>, vector<16x64xf32>
    %27 = arith.truncf %26 : vector<16x64xf32> to vector<16x64xbf16>
    %c0_19 = arith.constant 0 : index
    %c0_20 = arith.constant 0 : index
    %c0_21 = arith.constant 0 : index
    %28 = vector.load %arg6[%c0_19, %c0_20, %c0_21] : memref<1x64x75xbf16, #tpu.memory_space<vmem>>, vector<1x64x75xbf16>
    %29 = vector.shape_cast %28 : vector<1x64x75xbf16> to vector<64x75xbf16>
    %cst_22 = arith.constant dense<0.000000e+00> : vector<16x75xf32>
    %30 = tpu.matmul %27, %29, %cst_22 {dimension_numbers = #tpu.dot_dimension_numbers<[1], [0], [0], [1], [0, 0, 1, 1], [], []>} : vector<16x64xbf16>, vector<64x75xbf16>, vector<16x75xf32> -> vector<16x75xf32>
    %c0_23 = arith.constant 0 : index
    %c0_24 = arith.constant 0 : index
    %c0_25 = arith.constant 0 : index
    %31 = vector.load %arg7[%c0_23, %c0_24, %c0_25] : memref<1x1x75xf32, #tpu.memory_space<vmem>>, vector<1x1x75xf32>
    %32 = vector.shape_cast %31 : vector<1x1x75xf32> to vector<1x75xf32>
    %33 = vector.broadcast %32 : vector<1x75xf32> to vector<16x75xf32>
    %34 = arith.addf %30, %33 : vector<16x75xf32>
    %35 = vector.extract_strided_slice %34 {offsets = [0, 0], sizes = [16, 69], strides = [1, 1]} : vector<16x75xf32> to vector<16x69xf32>
    %36 = arith.negf %35 : vector<16x69xf32>
    %37 = math.exp %36 : vector<16x69xf32>
    %cst_26 = arith.constant 1.000000e+00 : f32
    %38 = vector.broadcast %cst_26 : f32 to vector<16x69xf32>
    %39 = arith.addf %38, %37 : vector<16x69xf32>
    %40 = arith.divf %38, %39 : vector<16x69xf32>
    %41 = vector.extract_strided_slice %34 {offsets = [0, 69], sizes = [16, 6], strides = [1, 1]} : vector<16x75xf32> to vector<16x6xf32>
    %42 = math.exp %41 : vector<16x6xf32>
    %c0_27 = arith.constant 0 : index
    %c0_28 = arith.constant 0 : index
    %c0_29 = arith.constant 0 : index
    %43 = vector.load %arg8[%c0_27, %c0_28, %c0_29] : memref<1x16x16xf32, #tpu.memory_space<vmem>>, vector<1x16x16xf32>
    %44 = vector.shape_cast %43 : vector<1x16x16xf32> to vector<16x16xf32>
    %45 = vector.extract_strided_slice %44 {offsets = [0, 0], sizes = [16, 1], strides = [1, 1]} : vector<16x16xf32> to vector<16x1xf32>
    %46 = vector.extract_strided_slice %44 {offsets = [0, 1], sizes = [16, 1], strides = [1, 1]} : vector<16x16xf32> to vector<16x1xf32>
    %47 = vector.extract_strided_slice %44 {offsets = [0, 2], sizes = [16, 1], strides = [1, 1]} : vector<16x16xf32> to vector<16x1xf32>
    %48 = vector.extract_strided_slice %40 {offsets = [0, 63], sizes = [16, 1], strides = [1, 1]} : vector<16x69xf32> to vector<16x1xf32>
    %49 = arith.mulf %48, %47 : vector<16x1xf32>
    %50 = arith.addf %49, %45 : vector<16x1xf32>
    %51 = vector.extract_strided_slice %40 {offsets = [0, 64], sizes = [16, 1], strides = [1, 1]} : vector<16x69xf32> to vector<16x1xf32>
    %52 = arith.mulf %51, %47 : vector<16x1xf32>
    %53 = arith.addf %52, %46 : vector<16x1xf32>
    %54 = vector.extract_strided_slice %42 {offsets = [0, 0], sizes = [16, 1], strides = [1, 1]} : vector<16x6xf32> to vector<16x1xf32>
    %55 = vector.extract_strided_slice %44 {offsets = [0, 4], sizes = [16, 1], strides = [1, 1]} : vector<16x16xf32> to vector<16x1xf32>
    %56 = arith.mulf %54, %55 : vector<16x1xf32>
    %57 = vector.extract_strided_slice %42 {offsets = [0, 1], sizes = [16, 1], strides = [1, 1]} : vector<16x6xf32> to vector<16x1xf32>
    %58 = vector.extract_strided_slice %44 {offsets = [0, 5], sizes = [16, 1], strides = [1, 1]} : vector<16x16xf32> to vector<16x1xf32>
    %59 = arith.mulf %57, %58 : vector<16x1xf32>
    %60 = vector.extract_strided_slice %40 {offsets = [0, 60], sizes = [16, 1], strides = [1, 1]} : vector<16x69xf32> to vector<16x1xf32>
    %61 = vector.extract_strided_slice %40 {offsets = [0, 0], sizes = [16, 20], strides = [1, 1]} : vector<16x69xf32> to vector<16x20xf32>
    %62 = vector.broadcast %60 : vector<16x1xf32> to vector<16x20xf32>
    %63 = arith.mulf %62, %61 : vector<16x20xf32>
    %64 = math.sqrt %63 : vector<16x20xf32>
    %cst_30 = arith.constant 5.000000e-01 : f32
    %65 = vector.broadcast %cst_30 : f32 to vector<16x1xf32>
    %66 = arith.mulf %65, %56 : vector<16x1xf32>
    %67 = arith.subf %50, %66 : vector<16x1xf32>
    %cst_31 = arith.constant 5.000000e-01 : f32
    %68 = vector.broadcast %cst_31 : f32 to vector<16x1xf32>
    %69 = arith.mulf %68, %59 : vector<16x1xf32>
    %70 = arith.subf %53, %69 : vector<16x1xf32>
    %cst_32 = arith.constant 5.000000e-01 : f32
    %71 = vector.broadcast %cst_32 : f32 to vector<16x1xf32>
    %72 = arith.mulf %71, %56 : vector<16x1xf32>
    %73 = arith.addf %50, %72 : vector<16x1xf32>
    %cst_33 = arith.constant 5.000000e-01 : f32
    %74 = vector.broadcast %cst_33 : f32 to vector<16x1xf32>
    %75 = arith.mulf %74, %59 : vector<16x1xf32>
    %76 = arith.addf %53, %75 : vector<16x1xf32>
    %77 = tpu.concatenate %67, %70, %73, %76, %64 in 1 : vector<16x1xf32>, vector<16x1xf32>, vector<16x1xf32>, vector<16x1xf32>, vector<16x20xf32> -> vector<16x24xf32>
    %78 = vector.extract_strided_slice %40 {offsets = [0, 65], sizes = [16, 1], strides = [1, 1]} : vector<16x69xf32> to vector<16x1xf32>
    %79 = arith.mulf %78, %47 : vector<16x1xf32>
    %80 = arith.addf %79, %45 : vector<16x1xf32>
    %81 = vector.extract_strided_slice %40 {offsets = [0, 66], sizes = [16, 1], strides = [1, 1]} : vector<16x69xf32> to vector<16x1xf32>
    %82 = arith.mulf %81, %47 : vector<16x1xf32>
    %83 = arith.addf %82, %46 : vector<16x1xf32>
    %84 = vector.extract_strided_slice %42 {offsets = [0, 2], sizes = [16, 1], strides = [1, 1]} : vector<16x6xf32> to vector<16x1xf32>
    %85 = vector.extract_strided_slice %44 {offsets = [0, 6], sizes = [16, 1], strides = [1, 1]} : vector<16x16xf32> to vector<16x1xf32>
    %86 = arith.mulf %84, %85 : vector<16x1xf32>
    %87 = vector.extract_strided_slice %42 {offsets = [0, 3], sizes = [16, 1], strides = [1, 1]} : vector<16x6xf32> to vector<16x1xf32>
    %88 = vector.extract_strided_slice %44 {offsets = [0, 7], sizes = [16, 1], strides = [1, 1]} : vector<16x16xf32> to vector<16x1xf32>
    %89 = arith.mulf %87, %88 : vector<16x1xf32>
    %90 = vector.extract_strided_slice %40 {offsets = [0, 61], sizes = [16, 1], strides = [1, 1]} : vector<16x69xf32> to vector<16x1xf32>
    %91 = vector.extract_strided_slice %40 {offsets = [0, 20], sizes = [16, 20], strides = [1, 1]} : vector<16x69xf32> to vector<16x20xf32>
    %92 = vector.broadcast %90 : vector<16x1xf32> to vector<16x20xf32>
    %93 = arith.mulf %92, %91 : vector<16x20xf32>
    %94 = math.sqrt %93 : vector<16x20xf32>
    %cst_34 = arith.constant 5.000000e-01 : f32
    %95 = vector.broadcast %cst_34 : f32 to vector<16x1xf32>
    %96 = arith.mulf %95, %86 : vector<16x1xf32>
    %97 = arith.subf %80, %96 : vector<16x1xf32>
    %cst_35 = arith.constant 5.000000e-01 : f32
    %98 = vector.broadcast %cst_35 : f32 to vector<16x1xf32>
    %99 = arith.mulf %98, %89 : vector<16x1xf32>
    %100 = arith.subf %83, %99 : vector<16x1xf32>
    %cst_36 = arith.constant 5.000000e-01 : f32
    %101 = vector.broadcast %cst_36 : f32 to vector<16x1xf32>
    %102 = arith.mulf %101, %86 : vector<16x1xf32>
    %103 = arith.addf %80, %102 : vector<16x1xf32>
    %cst_37 = arith.constant 5.000000e-01 : f32
    %104 = vector.broadcast %cst_37 : f32 to vector<16x1xf32>
    %105 = arith.mulf %104, %89 : vector<16x1xf32>
    %106 = arith.addf %83, %105 : vector<16x1xf32>
    %107 = tpu.concatenate %97, %100, %103, %106, %94 in 1 : vector<16x1xf32>, vector<16x1xf32>, vector<16x1xf32>, vector<16x1xf32>, vector<16x20xf32> -> vector<16x24xf32>
    %108 = vector.extract_strided_slice %40 {offsets = [0, 67], sizes = [16, 1], strides = [1, 1]} : vector<16x69xf32> to vector<16x1xf32>
    %109 = arith.mulf %108, %47 : vector<16x1xf32>
    %110 = arith.addf %109, %45 : vector<16x1xf32>
    %111 = vector.extract_strided_slice %40 {offsets = [0, 68], sizes = [16, 1], strides = [1, 1]} : vector<16x69xf32> to vector<16x1xf32>
    %112 = arith.mulf %111, %47 : vector<16x1xf32>
    %113 = arith.addf %112, %46 : vector<16x1xf32>
    %114 = vector.extract_strided_slice %42 {offsets = [0, 4], sizes = [16, 1], strides = [1, 1]} : vector<16x6xf32> to vector<16x1xf32>
    %115 = vector.extract_strided_slice %44 {offsets = [0, 8], sizes = [16, 1], strides = [1, 1]} : vector<16x16xf32> to vector<16x1xf32>
    %116 = arith.mulf %114, %115 : vector<16x1xf32>
    %117 = vector.extract_strided_slice %42 {offsets = [0, 5], sizes = [16, 1], strides = [1, 1]} : vector<16x6xf32> to vector<16x1xf32>
    %118 = vector.extract_strided_slice %44 {offsets = [0, 9], sizes = [16, 1], strides = [1, 1]} : vector<16x16xf32> to vector<16x1xf32>
    %119 = arith.mulf %117, %118 : vector<16x1xf32>
    %120 = vector.extract_strided_slice %40 {offsets = [0, 62], sizes = [16, 1], strides = [1, 1]} : vector<16x69xf32> to vector<16x1xf32>
    %121 = vector.extract_strided_slice %40 {offsets = [0, 40], sizes = [16, 20], strides = [1, 1]} : vector<16x69xf32> to vector<16x20xf32>
    %122 = vector.broadcast %120 : vector<16x1xf32> to vector<16x20xf32>
    %123 = arith.mulf %122, %121 : vector<16x20xf32>
    %124 = math.sqrt %123 : vector<16x20xf32>
    %cst_38 = arith.constant 5.000000e-01 : f32
    %125 = vector.broadcast %cst_38 : f32 to vector<16x1xf32>
    %126 = arith.mulf %125, %116 : vector<16x1xf32>
    %127 = arith.subf %110, %126 : vector<16x1xf32>
    %cst_39 = arith.constant 5.000000e-01 : f32
    %128 = vector.broadcast %cst_39 : f32 to vector<16x1xf32>
    %129 = arith.mulf %128, %119 : vector<16x1xf32>
    %130 = arith.subf %113, %129 : vector<16x1xf32>
    %cst_40 = arith.constant 5.000000e-01 : f32
    %131 = vector.broadcast %cst_40 : f32 to vector<16x1xf32>
    %132 = arith.mulf %131, %116 : vector<16x1xf32>
    %133 = arith.addf %110, %132 : vector<16x1xf32>
    %cst_41 = arith.constant 5.000000e-01 : f32
    %134 = vector.broadcast %cst_41 : f32 to vector<16x1xf32>
    %135 = arith.mulf %134, %119 : vector<16x1xf32>
    %136 = arith.addf %113, %135 : vector<16x1xf32>
    %137 = tpu.concatenate %127, %130, %133, %136, %124 in 1 : vector<16x1xf32>, vector<16x1xf32>, vector<16x1xf32>, vector<16x1xf32>, vector<16x20xf32> -> vector<16x24xf32>
    %cst_42 = arith.constant 0.000000e+00 : f32
    %138 = vector.broadcast %cst_42 : f32 to vector<16x56xf32>
    %139 = tpu.concatenate %77, %107, %137, %138 in 1 : vector<16x24xf32>, vector<16x24xf32>, vector<16x24xf32>, vector<16x56xf32> -> vector<16x128xf32>
    %c0_43 = arith.constant 0 : index
    %c0_44 = arith.constant 0 : index
    %c0_45 = arith.constant 0 : index
    %140 = vector.load %arg9[%c0_43, %c0_44, %c0_45] : memref<1x16x128xf32, #tpu.memory_space<vmem>>, vector<1x16x128xf32>
    %141 = vector.shape_cast %140 : vector<1x16x128xf32> to vector<16x128xf32>
    %142 = vector.shape_cast %139 : vector<16x128xf32> to vector<1x16x128xf32>
    tpu.vector_store %arg9[%c0_43, %c0_44, %c0_45], %142 {strides = array<i32>} : memref<1x16x128xf32, #tpu.memory_space<vmem>>, vector<1x16x128xf32>,
    return
  }
  func.func @transform_0(%arg0: i32) -> (i32, i32, i32) {
    %c0_i32 = arith.constant 0 : i32
    %c0_i32_0 = arith.constant 0 : i32
    %c0_i32_1 = arith.constant 0 : i32
    return %arg0, %c0_i32, %c0_i32_0 : i32, i32, i32
  }
  func.func @transform_1(%arg0: i32) -> (i32, i32, i32) {
    %c0_i32 = arith.constant 0 : i32
    %c0_i32_0 = arith.constant 0 : i32
    %c0_i32_1 = arith.constant 0 : i32
    return %arg0, %c0_i32, %c0_i32_0 : i32, i32, i32
  }
  func.func @transform_2(%arg0: i32) -> (i32, i32, i32) {
    %c0_i32 = arith.constant 0 : i32
    %c0_i32_0 = arith.constant 0 : i32
    %c0_i32_1 = arith.constant 0 : i32
    return %arg0, %c0_i32, %c0_i32_0 : i32, i32, i32
  }
  func.func @transform_3(%arg0: i32) -> (i32, i32, i32) {
    %c0_i32 = arith.constant 0 : i32
    %c0_i32_0 = arith.constant 0 : i32
    %c0_i32_1 = arith.constant 0 : i32
    return %arg0, %c0_i32, %c0_i32_0 : i32, i32, i32
  }
  func.func @transform_4(%arg0: i32) -> (i32, i32, i32) {
    %c0_i32 = arith.constant 0 : i32
    %c0_i32_0 = arith.constant 0 : i32
    %c0_i32_1 = arith.constant 0 : i32
    return %arg0, %c0_i32, %c0_i32_0 : i32, i32, i32
  }
  func.func @transform_5(%arg0: i32) -> (i32, i32, i32) {
    %c0_i32 = arith.constant 0 : i32
    %c0_i32_0 = arith.constant 0 : i32
    %c0_i32_1 = arith.constant 0 : i32
    return %arg0, %c0_i32, %c0_i32_0 : i32, i32, i32
  }
  func.func @transform_6(%arg0: i32) -> (i32, i32, i32) {
    %c0_i32 = arith.constant 0 : i32
    %c0_i32_0 = arith.constant 0 : i32
    %c0_i32_1 = arith.constant 0 : i32
    return %arg0, %c0_i32, %c0_i32_0 : i32, i32, i32
  }
  func.func @transform_7(%arg0: i32) -> (i32, i32, i32) {
    %c0_i32 = arith.constant 0 : i32
    %c0_i32_0 = arith.constant 0 : i32
    %c0_i32_1 = arith.constant 0 : i32
    return %arg0, %c0_i32, %c0_i32_0 : i32, i32, i32
  }
  func.func @transform_8(%arg0: i32) -> (i32, i32, i32) {
    %c0_i32 = arith.constant 0 : i32
    %c0_i32_0 = arith.constant 0 : i32
    %c0_i32_1 = arith.constant 0 : i32
    return %arg0, %c0_i32, %c0_i32_0 : i32, i32, i32
  }
}

</mosaic_0001>

<bundles_post_ra>
// kernel: yolov3_mcunet_forward.12
= control target key start
LH: loop header
LB: loop body
LE: loop exit
PB: predicated region body
PF: predicated region fallthrough
CT: control target
= control target key end

     0   :  { %s1072_s12 = smov 0   ;;  %s1244_s0 = inlined_call_operand.vmem [shape: bf16[512,36], index: 0, kind: input, shape index: {}]   ;;  %s1245_s1 = inlined_call_operand.vmem [shape: bf16[36,8], index: 1, kind: input, shape index: {}]   ;;  %s1246_s2 = inlined_call_operand.vmem [shape: f32[1,8], index: 2, kind: input, shape index: {}]   ;;  %s1247_s3 = inlined_call_operand.vmem [shape: bf16[512,8], index: 3, kind: output, shape index: {}]  }
   0x1 LB: > { %s841_s13 = sadd.s32 4294967295, %s1050_s12   ;;  %p845_p0 = scmp.ge.s32.totalorder %s1050_s12, 1  ;;  %s1050_s12 = sphi %s1072_s12, %s13_s12  }
   0x2   : > { %p138_p1 = scmp.lt.s32.totalorder %s1050_s12, 3 }
   0x4   : > { %p139_p2 = pnand %p845_p0, %p138_p1 }
   0x5   : > { %s846_s18 = sshll.u32 (!%p139_p2), %s841_s13, 5 }
   0x6   : > { %142 = sbr.rel (%p139_p2) target bundleno = 264 (0x108), region = 32  ;;  %p163_p3 = scmp.lt.s32.totalorder (!%p139_p2), %s846_s18, 63 }
   0xb   : > { %v1025_v0 = vld [vmem:[%s1245_s1 + $0x10] ss:$0 sps:$4 sm:$0x33]   ;;  %vm363_vm0 = vcmask 1041408   ;;  %v1026_v1 = vld [vmem:[%s1245_s1 + $0x8] sm:$0xff]   ;;  %v1027_v3 = vld [vmem:[%s1245_s1] sm:$0xff]  }
   0xc   : > { %1015 = vmatprep.subr.msk.bf16.mxu0 %vm363_vm0, %v1025_v0  ;;  %1016 = vmatprep.subr.msk.bf16.mxu1 %vm363_vm0, %v1025_v0  ;;  %v365_v2 = vsel %vm363_vm0, %v1025_v0, 0  ;;  %s1249_s18 = smov (!%p163_p3, %s846_s18), 63  ;;  %vm314_vm1 = vcmask 293888   ;;  %v1134_v20 = vld [vmem:[%s1246_s2] ss:$0 sm:$0xff]  ;;  %vm752_vm4 = vcmask 60416  }
   0xd   : > { %972 = vmatpush3.bf16.msra.mxu0 %v365_v2  ;;  %1012 = vmatpush3.bf16.msra.mxu1 %v365_v2  ;;  %s847_s21 = sshll.u32 %s1249_s18, 2 }
   0xe   : > { %973 = vmatprep.subr.bf16.mxu0 %v1026_v1  ;;  %1010 = vmatprep.subr.bf16.mxu1 %v1026_v1  ;;  %s1097_s24 = scalar_lea.vmem %s1244_s0, %s847_s21  ;;  %s1145_s29 = scalar_lea.vmem %s1247_s3, %s847_s21 }
   0xf   : > { %v1028_v4 = vld [vmem:[%s1097_s24] sm:$0xff]   ;;  %v1030_v6 = vld [vmem:[%s1097_s24 + $0x8] sm:$0xff]   ;;  %v1032_v8 = vld [vmem:[%s1097_s24 + $0x10] sm:$0xff]  }
  0x10   : > { %v1029_v5 = vld [vmem:[%s1097_s24 + $0x40] sm:$0xff]   ;;  %977 = vmatprep.mubr.msk.bf16.mxu0 %vm314_vm1, %v1028_v4  ;;  %v1031_v7 = vld [vmem:[%s1097_s24 + $0x48] sm:$0xff]   ;;  %v1033_v9 = vld [vmem:[%s1097_s24 + $0x50] sm:$0xff]  }
  0x11   : > { %974 = vmatpush3.bf16.msra.mxu0 %v1026_v1  ;;  %1013 = vmatpush3.bf16.msra.mxu1 %v1026_v1  ;;  %v1034_v10 = vld [vmem:[%s1097_s24 + $0x18] sm:$0xff]   ;;  %v1036_v12 = vld [vmem:[%s1097_s24 + $0x20] sm:$0xff]   ;;  %v1038_v14 = vld [vmem:[%s1097_s24 + $0x28] sm:$0xff]  }
  0x12   : > { %975 = vmatprep.subr.bf16.mxu0 %v1027_v3  ;;  %1011 = vmatprep.subr.bf16.mxu1 %v1027_v3  ;;  %v1035_v11 = vld [vmem:[%s1097_s24 + $0x58] sm:$0xff]   ;;  %v1037_v13 = vld [vmem:[%s1097_s24 + $0x60] sm:$0xff]   ;;  %v1039_v15 = vld [vmem:[%s1097_s24 + $0x68] sm:$0xff]  }
  0x13   : > { %993 = vmatprep.mubr.msk.bf16.mxu1 %vm314_vm1, %v1029_v5  ;;  %v1040_v16 = vld [vmem:[%s1097_s24 + $0x30] sm:$0xff]   ;;  %v1042_v18 = vld [vmem:[%s1097_s24 + $0x38] sm:$0xff]  }
  0x14   : > { %v1041_v17 = vld [vmem:[%s1097_s24 + $0x70] sm:$0xff]   ;;  %v1043_v19 = vld [vmem:[%s1097_s24 + $0x78] sm:$0xff]  }
  0x15   : > { %976 = vmatpush3.bf16.msra.mxu0 %v1027_v3  ;;  %1014 = vmatpush3.bf16.msra.mxu1 %v1027_v3 }
  0x18   : > { %978 = vmatmul.mubr.msk.bf16.vlgmr.msra.gmra.mxu0 %vm314_vm1, %v1030_v6  ;;  %994 = vmatmul.mubr.msk.bf16.vlgmr.msra.gmra.mxu1 %vm314_vm1, %v1031_v7 }
  0x19   : > { %981 = vmatprep.mubr.msk.bf16.mxu0 %vm314_vm1, %v1032_v8  ;;  %997 = vmatprep.mubr.msk.bf16.mxu1 %vm314_vm1, %v1033_v9 }
  0x20   : > { %982 = vmatmul.mubr.msk.bf16.gmra.mxu0 %vm314_vm1, %v1034_v10  ;;  %998 = vmatmul.mubr.msk.bf16.gmra.mxu1 %vm314_vm1, %v1035_v11 }
  0x21   : > { %985 = vmatprep.mubr.msk.bf16.mxu0 %vm314_vm1, %v1036_v12  ;;  %1001 = vmatprep.mubr.msk.bf16.mxu1 %vm314_vm1, %v1037_v13 }
  0x28   : > { %986 = vmatmul.mubr.msk.bf16.gmra.mxu0 %vm314_vm1, %v1038_v14  ;;  %1002 = vmatmul.mubr.msk.bf16.gmra.mxu1 %vm314_vm1, %v1039_v15 }
  0x29   : > { %989 = vmatprep.mubr.msk.bf16.mxu0 %vm314_vm1, %v1040_v16  ;;  %1005 = vmatprep.mubr.msk.bf16.mxu1 %vm314_vm1, %v1041_v17 }
  0x30   : > { %990 = vmatmul.mubr.msk.bf16.gmra.mxu0 %vm314_vm1, %v1042_v18  ;;  %1006 = vmatmul.mubr.msk.bf16.gmra.mxu1 %vm314_vm1, %v1043_v19 }
  0xd8   : > { %v979_v21 = vpop.f32.mrf.mxu0  ;;  %v995_v22 = vpop.f32.mrf.mxu1 }
  0xd9   : > { %v410_v23 = vadd.f32 %v979_v21, %v1134_v20  ;;  %v474_v24 = vadd.f32 %v995_v22, %v1134_v20 }
  0xda   : > { %v401_v25 = vpop.f32.mrf.mxu0  ;;  %v465_v26 = vpop.f32.mrf.mxu1 }
  0xdb   : > { %vm530_vm2 = vcmp.gt.f32.partialorder %v410_v23, 0.0  ;;  %v562_v27 = vmul.f32 0.1, %v410_v23  ;;  %vm546_vm3 = vcmp.gt.f32.partialorder %v474_v24, 0.0  ;;  %v578_v28 = vmul.f32 0.1, %v474_v24 }
  0xdc   : > { %v402_v29 = vadd.f32 %v1134_v20, %v401_v25  ;;  %v466_v30 = vadd.f32 %v1134_v20, %v465_v26  ;;  %v980_v31 = vpop.f32.mrf.mxu0  ;;  %v996_v32 = vpop.f32.mrf.mxu1 }
  0xdd   : > { %v594_v33 = vsel %vm530_vm2, %v410_v23, %v562_v27  ;;  %v610_v34 = vsel %vm546_vm3, %v474_v24, %v578_v28  ;;  %v413_v35 = vadd.f32 %v980_v31, %v1134_v20  ;;  %v477_v36 = vadd.f32 %v996_v32, %v1134_v20 }
  0xde   : > { %v922_v37 = vpack.c.bf16 %v594_v33, %v594_v33  ;;  %v938_v38 = vpack.c.bf16 %v610_v34, %v610_v34  ;;  %vm528_vm5 = vcmp.gt.f32.partialorder %v402_v29, 0.0  ;;  %v560_v39 = vmul.f32 0.1, %v402_v29  ;;  %v404_v40 = vpop.f32.mrf.mxu0  ;;  %v468_v41 = vpop.f32.mrf.mxu1 }
  0xdf   : > { %vm544_vm6 = vcmp.gt.f32.partialorder %v466_v30, 0.0  ;;  %v576_v42 = vmul.f32 0.1, %v466_v30  ;;  %vm531_vm7 = vcmp.gt.f32.partialorder %v413_v35, 0.0  ;;  %v563_v43 = vmul.f32 0.1, %v413_v35 }
  0xe0   : > { %755 = vst.msk [vmem:[%s1145_s29 + $0x8] sm:$0xf] %vm752_vm4, %v922_v37  ;;  %771 = vst.msk [vmem:[%s1145_s29 + $0x48] sm:$0xf] %vm752_vm4, %v938_v38  ;;  %v592_v44 = vsel %vm528_vm5, %v402_v29, %v560_v39  ;;  %vm547_vm8 = vcmp.gt.f32.partialorder %v477_v36, 0.0  ;;  %v405_v46 = vadd.f32 %v1134_v20, %v404_v40  ;;  %v983_v47 = vpop.f32.mrf.mxu0  ;;  %v999_v48 = vpop.f32.mrf.mxu1  ;;  %v469_v52 = vadd.f32 %v1134_v20, %v468_v41 }
  0xe1   : > { %v579_v45 = vmul.f32 0.1, %v477_v36  ;;  %v920_v49 = vpack.c.bf16 %v592_v44, %v592_v44  ;;  %v608_v50 = vsel %vm544_vm6, %v466_v30, %v576_v42  ;;  %v595_v51 = vsel %vm531_vm7, %v413_v35, %v563_v43 }
  0xe2   : > { %v936_v53 = vpack.c.bf16 %v608_v50, %v608_v50  ;;  %v923_v54 = vpack.c.bf16 %v595_v51, %v595_v51  ;;  %vm529_vm9 = vcmp.gt.f32.partialorder %v405_v46, 0.0  ;;  %v417_v56 = vpop.f32.mrf.mxu0  ;;  %v481_v57 = vpop.f32.mrf.mxu1  ;;  %v561_v59 = vmul.f32 0.1, %v405_v46 }
  0xe3   : > { %v611_v55 = vsel %vm547_vm8, %v477_v36, %v579_v45  ;;  %753 = vst.msk [vmem:[%s1145_s29] sm:$0xf] %vm752_vm4, %v920_v49  ;;  %vm545_vm10 = vcmp.gt.f32.partialorder %v469_v52, 0.0  ;;  %v577_v60 = vmul.f32 0.1, %v469_v52  ;;  %v426_v61 = vadd.f32 %v983_v47, %v1134_v20 }
  0xe4   : > { %v939_v58 = vpack.c.bf16 %v611_v55, %v611_v55  ;;  %769 = vst.msk [vmem:[%s1145_s29 + $0x40] sm:$0xf] %vm752_vm4, %v936_v53  ;;  %756 = vst.msk [vmem:[%s1145_s29 + $0xc] sm:$0xf] %vm752_vm4, %v923_v54  ;;  %v490_v62 = vadd.f32 %v999_v48, %v1134_v20  ;;  %v418_v63 = vadd.f32 %v1134_v20, %v417_v56  ;;  %v984_v1 = vpop.f32.mrf.mxu0  ;;  %v1000_v2 = vpop.f32.mrf.mxu1 }
  0xe5   : > { %v482_v0 = vadd.f32 %v1134_v20, %v481_v57  ;;  %v593_v3 = vsel %vm529_vm9, %v405_v46, %v561_v59  ;;  %v609_v4 = vsel %vm545_vm10, %v469_v52, %v577_v60  ;;  %v429_v5 = vadd.f32 %v984_v1, %v1134_v20 }
  0xe6   : > { %772 = vst.msk [vmem:[%s1145_s29 + $0x4c] sm:$0xf] %vm752_vm4, %v939_v58  ;;  %v493_v6 = vadd.f32 %v1000_v2, %v1134_v20  ;;  %v921_v7 = vpack.c.bf16 %v593_v3, %v593_v3  ;;  %v937_v8 = vpack.c.bf16 %v609_v4, %v609_v4  ;;  %vm534_vm11 = vcmp.gt.f32.partialorder %v426_v61, 0.0  ;;  %v420_v10 = vpop.f32.mrf.mxu0  ;;  %v484_v11 = vpop.f32.mrf.mxu1 }
  0xe7   : > { %v566_v9 = vmul.f32 0.1, %v426_v61  ;;  %vm550_vm12 = vcmp.gt.f32.partialorder %v490_v62, 0.0  ;;  %v582_v12 = vmul.f32 0.1, %v490_v62  ;;  %vm532_vm13 = vcmp.gt.f32.partialorder %v418_v63, 0.0 }
  0xe8   : > { %v564_v13 = vmul.f32 0.1, %v418_v63  ;;  %754 = vst.msk [vmem:[%s1145_s29 + $0x4] sm:$0xf] %vm752_vm4, %v921_v7  ;;  %770 = vst.msk [vmem:[%s1145_s29 + $0x44] sm:$0xf] %vm752_vm4, %v937_v8  ;;  %v987_v16 = vpop.f32.mrf.mxu0  ;;  %v1003_v17 = vpop.f32.mrf.mxu1  ;;  %v421_v31 = vadd.f32 %v1134_v20, %v420_v10  ;;  %v485_v33 = vadd.f32 %v1134_v20, %v484_v11 }
  0xe9   : > { %v598_v14 = vsel %vm534_vm11, %v426_v61, %v566_v9  ;;  %vm548_vm14 = vcmp.gt.f32.partialorder %v482_v0, 0.0  ;;  %v580_v15 = vmul.f32 0.1, %v482_v0  ;;  %vm535_vm15 = vcmp.gt.f32.partialorder %v429_v5, 0.0 }
  0xea   : > { %v926_v18 = vpack.c.bf16 %v598_v14, %v598_v14  ;;  %v614_v19 = vsel %vm550_vm12, %v490_v62, %v582_v12  ;;  %v596_v21 = vsel %vm532_vm13, %v418_v63, %v564_v13  ;;  %v567_v22 = vmul.f32 0.1, %v429_v5  ;;  %v433_v26 = vpop.f32.mrf.mxu0  ;;  %v497_v27 = vpop.f32.mrf.mxu1 }
  0xeb   : > { %v942_v23 = vpack.c.bf16 %v614_v19, %v614_v19  ;;  %v924_v24 = vpack.c.bf16 %v596_v21, %v596_v21  ;;  %v612_v25 = vsel %vm548_vm14, %v482_v0, %v580_v15  ;;  %vm551_vm0 = vcmp.gt.f32.partialorder %v493_v6, 0.0 }
  0xec   : > { %759 = vst.msk [vmem:[%s1145_s29 + $0x18] sm:$0xf] %vm752_vm4, %v926_v18  ;;  %v940_v28 = vpack.c.bf16 %v612_v25, %v612_v25  ;;  %v599_v29 = vsel %vm535_vm15, %v429_v5, %v567_v22  ;;  %v583_v30 = vmul.f32 0.1, %v493_v6  ;;  %v442_v34 = vadd.f32 %v987_v16, %v1134_v20  ;;  %v988_v36 = vpop.f32.mrf.mxu0  ;;  %v1004_v37 = vpop.f32.mrf.mxu1 }
  0xed   : > { %775 = vst.msk [vmem:[%s1145_s29 + $0x58] sm:$0xf] %vm752_vm4, %v942_v23  ;;  %757 = vst.msk [vmem:[%s1145_s29 + $0x10] sm:$0xf] %vm752_vm4, %v924_v24  ;;  %v927_v32 = vpack.c.bf16 %v599_v29, %v599_v29  ;;  %v506_v35 = vadd.f32 %v1003_v17, %v1134_v20  ;;  %vm533_vm1 = vcmp.gt.f32.partialorder %v421_v31, 0.0  ;;  %v434_v40 = vadd.f32 %v1134_v20, %v433_v26 }
  0xee   : > { %773 = vst.msk [vmem:[%s1145_s29 + $0x50] sm:$0xf] %vm752_vm4, %v940_v28  ;;  %v615_v38 = vsel %vm551_vm0, %v493_v6, %v583_v30  ;;  %v565_v39 = vmul.f32 0.1, %v421_v31  ;;  %vm549_vm2 = vcmp.gt.f32.partialorder %v485_v33, 0.0  ;;  %vm538_vm3 = vcmp.gt.f32.partialorder %v442_v34, 0.0  ;;  %v436_v43 = vpop.f32.mrf.mxu0  ;;  %v500_v44 = vpop.f32.mrf.mxu1 }
  0xef   : > { %760 = vst.msk [vmem:[%s1145_s29 + $0x1c] sm:$0xf] %vm752_vm4, %v927_v32  ;;  %v943_v41 = vpack.c.bf16 %v615_v38, %v615_v38  ;;  %v581_v42 = vmul.f32 0.1, %v485_v33  ;;  %v570_v46 = vmul.f32 0.1, %v442_v34  ;;  %v498_v56 = vadd.f32 %v1134_v20, %v497_v27 }
  0xf0   : > { %v597_v45 = vsel %vm533_vm1, %v421_v31, %v565_v39  ;;  %vm554_vm5 = vcmp.gt.f32.partialorder %v506_v35, 0.0  ;;  %v586_v47 = vmul.f32 0.1, %v506_v35  ;;  %vm536_vm6 = vcmp.gt.f32.partialorder %v434_v40, 0.0  ;;  %v991_v51 = vpop.f32.mrf.mxu0  ;;  %v1007_v52 = vpop.f32.mrf.mxu1 }
  0xf1   : > { %776 = vst.msk [vmem:[%s1145_s29 + $0x5c] sm:$0xf] %vm752_vm4, %v943_v41  ;;  %v925_v48 = vpack.c.bf16 %v597_v45, %v597_v45  ;;  %v613_v49 = vsel %vm549_vm2, %v485_v33, %v581_v42  ;;  %v568_v50 = vmul.f32 0.1, %v434_v40  ;;  %v602_v54 = vsel %vm538_vm3, %v442_v34, %v570_v46 }
  0xf2   : > { %v941_v53 = vpack.c.bf16 %v613_v49, %v613_v49  ;;  %v618_v55 = vsel %vm554_vm5, %v506_v35, %v586_v47  ;;  %v930_v57 = vpack.c.bf16 %v602_v54, %v602_v54  ;;  %v445_v60 = vadd.f32 %v988_v36, %v1134_v20  ;;  %v449_v61 = vpop.f32.mrf.mxu0  ;;  %v513_v1 = vpop.f32.mrf.mxu1 }
  0xf3   : > { %758 = vst.msk [vmem:[%s1145_s29 + $0x14] sm:$0xf] %vm752_vm4, %v925_v48  ;;  %v946_v58 = vpack.c.bf16 %v618_v55, %v618_v55  ;;  %v600_v59 = vsel %vm536_vm6, %v434_v40, %v568_v50  ;;  %vm552_vm7 = vcmp.gt.f32.partialorder %v498_v56, 0.0  ;;  %v584_v63 = vmul.f32 0.1, %v498_v56 }
  0xf4   : > { %774 = vst.msk [vmem:[%s1145_s29 + $0x54] sm:$0xf] %vm752_vm4, %v941_v53  ;;  %v928_v62 = vpack.c.bf16 %v600_v59, %v600_v59  ;;  %v509_v0 = vadd.f32 %v1004_v37, %v1134_v20  ;;  %763 = vst.msk [vmem:[%s1145_s29 + $0x28] sm:$0xf] %vm752_vm4, %v930_v57  ;;  %vm539_vm8 = vcmp.gt.f32.partialorder %v445_v60, 0.0  ;;  %v437_v3 = vadd.f32 %v1134_v20, %v436_v43  ;;  %v992_v11 = vpop.f32.mrf.mxu0  ;;  %v1008_v15 = vpop.f32.mrf.mxu1 }
  0xf5   : > { %779 = vst.msk [vmem:[%s1145_s29 + $0x68] sm:$0xf] %vm752_vm4, %v946_v58  ;;  %v571_v2 = vmul.f32 0.1, %v445_v60  ;;  %v501_v4 = vadd.f32 %v1134_v20, %v500_v44  ;;  %v616_v5 = vsel %vm552_vm7, %v498_v56, %v584_v63  ;;  %v458_v7 = vadd.f32 %v991_v51, %v1134_v20 }
  0xf6   : > { %761 = vst.msk [vmem:[%s1145_s29 + $0x20] sm:$0xf] %vm752_vm4, %v928_v62  ;;  %vm555_vm9 = vcmp.gt.f32.partialorder %v509_v0, 0.0  ;;  %v587_v6 = vmul.f32 0.1, %v509_v0  ;;  %v944_v8 = vpack.c.bf16 %v616_v5, %v616_v5  ;;  %vm537_vm10 = vcmp.gt.f32.partialorder %v437_v3, 0.0  ;;  %v452_v28 = vpop.f32.mrf.mxu0  ;;  %v516_v31 = vpop.f32.mrf.mxu1 }
  0xf7   : > { %v603_v9 = vsel %vm539_vm8, %v445_v60, %v571_v2  ;;  %v569_v10 = vmul.f32 0.1, %v437_v3  ;;  %vm553_vm11 = vcmp.gt.f32.partialorder %v501_v4, 0.0  ;;  %v585_v14 = vmul.f32 0.1, %v501_v4 }
  0xf8   : > { %v931_v12 = vpack.c.bf16 %v603_v9, %v603_v9  ;;  %v619_v13 = vsel %vm555_vm9, %v509_v0, %v587_v6  ;;  %777 = vst.msk [vmem:[%s1145_s29 + $0x60] sm:$0xf] %vm752_vm4, %v944_v8  ;;  %vm542_vm12 = vcmp.gt.f32.partialorder %v458_v7, 0.0  ;;  %v574_v18 = vmul.f32 0.1, %v458_v7 }
  0xf9   : > { %v947_v16 = vpack.c.bf16 %v619_v13, %v619_v13  ;;  %v601_v17 = vsel %vm537_vm10, %v437_v3, %v569_v10  ;;  %v617_v21 = vsel %vm553_vm11, %v501_v4, %v585_v14  ;;  %v522_v22 = vadd.f32 %v1007_v52, %v1134_v20 }
  0xfa   : > { %764 = vst.msk [vmem:[%s1145_s29 + $0x2c] sm:$0xf] %vm752_vm4, %v931_v12  ;;  %v929_v19 = vpack.c.bf16 %v601_v17, %v601_v17  ;;  %v450_v23 = vadd.f32 %v1134_v20, %v449_v61  ;;  %v945_v24 = vpack.c.bf16 %v617_v21, %v617_v21  ;;  %v606_v25 = vsel %vm542_vm12, %v458_v7, %v574_v18 }
  0xfb   : > { %780 = vst.msk [vmem:[%s1145_s29 + $0x6c] sm:$0xf] %vm752_vm4, %v947_v16  ;;  %v514_v26 = vadd.f32 %v1134_v20, %v513_v1  ;;  %v461_v27 = vadd.f32 %v992_v11, %v1134_v20  ;;  %v934_v29 = vpack.c.bf16 %v606_v25, %v606_v25  ;;  %vm558_vm13 = vcmp.gt.f32.partialorder %v522_v22, 0.0 }
  0xfc   : > { %762 = vst.msk [vmem:[%s1145_s29 + $0x24] sm:$0xf] %vm752_vm4, %v929_v19  ;;  %v590_v30 = vmul.f32 0.1, %v522_v22  ;;  %vm540_vm14 = vcmp.gt.f32.partialorder %v450_v23, 0.0  ;;  %v525_v36 = vadd.f32 %v1008_v15, %v1134_v20  ;;  %v453_v37 = vadd.f32 %v1134_v20, %v452_v28 }
  0xfd   : > { %778 = vst.msk [vmem:[%s1145_s29 + $0x64] sm:$0xf] %vm752_vm4, %v945_v24  ;;  %v572_v32 = vmul.f32 0.1, %v450_v23  ;;  %vm556_vm15 = vcmp.gt.f32.partialorder %v514_v26, 0.0  ;;  %vm543_vm0 = vcmp.gt.f32.partialorder %v461_v27, 0.0  ;;  %v517_v41 = vadd.f32 %v1134_v20, %v516_v31 }
  0xfe   : > { %v588_v33 = vmul.f32 0.1, %v514_v26  ;;  %767 = vst.msk [vmem:[%s1145_s29 + $0x38] sm:$0xf] %vm752_vm4, %v934_v29  ;;  %v622_v34 = vsel %vm558_vm13, %v522_v22, %v590_v30  ;;  %v575_v35 = vmul.f32 0.1, %v461_v27 }
  0xff   : > { %v950_v38 = vpack.c.bf16 %v622_v34, %v622_v34  ;;  %v604_v39 = vsel %vm540_vm14, %v450_v23, %v572_v32  ;;  %vm559_vm1 = vcmp.gt.f32.partialorder %v525_v36, 0.0  ;;  %v591_v46 = vmul.f32 0.1, %v525_v36 }
 0x100   : > { %v620_v40 = vsel %vm556_vm15, %v514_v26, %v588_v33  ;;  %v932_v42 = vpack.c.bf16 %v604_v39, %v604_v39  ;;  %v607_v44 = vsel %vm543_vm0, %v461_v27, %v575_v35  ;;  %vm541_vm2 = vcmp.gt.f32.partialorder %v453_v37, 0.0 }
 0x101   : > { %v948_v43 = vpack.c.bf16 %v620_v40, %v620_v40  ;;  %783 = vst.msk [vmem:[%s1145_s29 + $0x78] sm:$0xf] %vm752_vm4, %v950_v38  ;;  %v935_v45 = vpack.c.bf16 %v607_v44, %v607_v44  ;;  %v573_v47 = vmul.f32 0.1, %v453_v37  ;;  %vm557_vm3 = vcmp.gt.f32.partialorder %v517_v41, 0.0 }
 0x102   : > { %765 = vst.msk [vmem:[%s1145_s29 + $0x30] sm:$0xf] %vm752_vm4, %v932_v42  ;;  %v589_v48 = vmul.f32 0.1, %v517_v41  ;;  %v623_v20 = vsel %vm559_vm1, %v525_v36, %v591_v46 }
 0x103   : > { %781 = vst.msk [vmem:[%s1145_s29 + $0x70] sm:$0xf] %vm752_vm4, %v948_v43  ;;  %768 = vst.msk [vmem:[%s1145_s29 + $0x3c] sm:$0xf] %vm752_vm4, %v935_v45  ;;  %v605_v49 = vsel %vm541_vm2, %v453_v37, %v573_v47  ;;  %v951_v50 = vpack.c.bf16 %v623_v20, %v623_v20 }
 0x104   : > { %v933_v51 = vpack.c.bf16 %v605_v49, %v605_v49  ;;  %v621_v52 = vsel %vm557_vm3, %v517_v41, %v589_v48 }
 0x105   : > { %v949_v53 = vpack.c.bf16 %v621_v52, %v621_v52  ;;  %784 = vst.msk [vmem:[%s1145_s29 + $0x7c] sm:$0xf] %vm752_vm4, %v951_v50 }
 0x106   : > { %766 = vst.msk [vmem:[%s1145_s29 + $0x34] sm:$0xf] %vm752_vm4, %v933_v51 }
 0x107   : > { %782 = vst.msk [vmem:[%s1145_s29 + $0x74] sm:$0xf] %vm752_vm4, %v949_v53 }
 0x108 PF: > { %s13_s12 = sadd.s32 1, %s1050_s12  }
 0x109   : > { %p10_p4 = scmp.ge.s32.totalorder %s13_s12, 4  }
 0x10b   :  { %12 = sbr.rel (!%p10_p4) target bundleno = 1 (0x1), region = 62 }

// kernel: yolov3_mcunet_forward.13
= control target key start
LH: loop header
LB: loop body
LE: loop exit
PB: predicated region body
PF: predicated region fallthrough
CT: control target
= control target key end

     0   :  { %s574_s12 = smov 0   ;;  %s638_s0 = inlined_call_operand.vmem [shape: bf16[128,72], index: 0, kind: input, shape index: {}]   ;;  %s639_s1 = inlined_call_operand.vmem [shape: bf16[72,16], index: 1, kind: input, shape index: {}]   ;;  %s640_s2 = inlined_call_operand.vmem [shape: f32[1,16], index: 2, kind: input, shape index: {}]   ;;  %s641_s3 = inlined_call_operand.vmem [shape: bf16[128,16], index: 3, kind: output, shape index: {}]  }
   0x1 LB: > { %s449_s13 = sadd.s32 4294967295, %s552_s12   ;;  %p453_p0 = scmp.ge.s32.totalorder %s552_s12, 1  ;;  %s552_s12 = sphi %s574_s12, %s13_s12  }
   0x2   : > { %p138_p1 = scmp.lt.s32.totalorder %s552_s12, 3 }
   0x4   : > { %p139_p2 = pnand %p453_p0, %p138_p1 }
   0x5   : > { %s454_s18 = sshll.u32 (!%p139_p2), %s449_s13, 3 }
   0x6   : > { %142 = sbr.rel (%p139_p2) target bundleno = 241 (0xf1), region = 32  ;;  %p163_p3 = scmp.lt.s32.totalorder (!%p139_p2), %s454_s18, 15 }
   0xb   : > { %v537_v0 = vld [vmem:[%s639_s1 + $0x20] ss:$0 sps:$4 sm:$0xff]   ;;  %vm259_vm0 = vcmask 1043456   ;;  %v538_v1 = vld [vmem:[%s639_s1 + $0x18] sm:$0xff]   ;;  %v539_v3 = vld [vmem:[%s639_s1 + $0x10] sm:$0xff]   ;;  %s643_s18 = smov (!%p163_p3, %s454_s18), 15 }
   0xc   : > { %527 = vmatprep.subr.msk.bf16.mxu0 %vm259_vm0, %v537_v0  ;;  %528 = vmatprep.subr.msk.bf16.mxu1 %vm259_vm0, %v537_v0  ;;  %v261_v2 = vsel %vm259_vm0, %v537_v0, 0  ;;  %v540_v4 = vld [vmem:[%s639_s1 + $0x8] sm:$0xff]   ;;  %s455_s23 = sshll.u32 %s643_s18, 2  ;;  %vm246_vm1 = vcmask 588800   ;;  %v541_v7 = vld [vmem:[%s639_s1] sm:$0xff]   ;;  %vm384_vm4 = vcmask 125952  }
   0xd   : > { %500 = vmatpush3.bf16.msra.mxu0 %v261_v2  ;;  %522 = vmatpush3.bf16.msra.mxu1 %v261_v2  ;;  %s166_s26 = scalar_lea.vmem %s638_s0, %s455_s23  ;;  %v458_v10 = vld [vmem:[%s640_s2] ss:$0 sm:$0xff]  ;;  %s617_s6 = scalar_lea.vmem %s641_s3, %s455_s23 }
   0xe   : > { %501 = vmatprep.subr.bf16.mxu0 %v538_v1  ;;  %518 = vmatprep.subr.bf16.mxu1 %v538_v1  ;;  %v542_v5 = vld [vmem:[%s166_s26] sm:$0xff]   ;;  %v543_v6 = vld [vmem:[%s166_s26 + $0x10] sm:$0xff]   ;;  %v544_v8 = vld [vmem:[%s166_s26 + $0x8] sm:$0xff]  }
   0xf   : > { %509 = vmatprep.mubr.msk.bf16.mxu0 %vm246_vm1, %v542_v5  ;;  %513 = vmatprep.mubr.msk.bf16.mxu1 %vm246_vm1, %v543_v6  ;;  %v545_v9 = vld [vmem:[%s166_s26 + $0x18] sm:$0xff]  }
  0x11   : > { %502 = vmatpush3.bf16.msra.mxu0 %v538_v1  ;;  %523 = vmatpush3.bf16.msra.mxu1 %v538_v1 }
  0x12   : > { %503 = vmatprep.subr.bf16.mxu0 %v539_v3  ;;  %519 = vmatprep.subr.bf16.mxu1 %v539_v3 }
  0x15   : > { %504 = vmatpush3.bf16.msra.mxu0 %v539_v3  ;;  %524 = vmatpush3.bf16.msra.mxu1 %v539_v3 }
  0x16   : > { %505 = vmatprep.subr.bf16.mxu0 %v540_v4  ;;  %520 = vmatprep.subr.bf16.mxu1 %v540_v4 }
  0x19   : > { %506 = vmatpush3.bf16.msra.mxu0 %v540_v4  ;;  %525 = vmatpush3.bf16.msra.mxu1 %v540_v4 }
  0x1a   : > { %507 = vmatprep.subr.bf16.mxu0 %v541_v7  ;;  %521 = vmatprep.subr.bf16.mxu1 %v541_v7 }
  0x1d   : > { %508 = vmatpush3.bf16.msra.mxu0 %v541_v7  ;;  %526 = vmatpush3.bf16.msra.mxu1 %v541_v7 }
  0x20   : > { %510 = vmatmul.mubr.msk.bf16.vlgmr.msra.gmra.mxu0 %vm246_vm1, %v544_v8  ;;  %514 = vmatmul.mubr.msk.bf16.vlgmr.msra.gmra.mxu1 %vm246_vm1, %v545_v9 }
  0xe0   : > { %v511_v11 = vpop.f32.mrf.mxu0  ;;  %v515_v12 = vpop.f32.mrf.mxu1 }
  0xe1   : > { %v306_v13 = vadd.f32 %v511_v11, %v458_v10  ;;  %v322_v14 = vadd.f32 %v515_v12, %v458_v10 }
  0xe2   : > { %v297_v15 = vpop.f32.mrf.mxu0  ;;  %v313_v16 = vpop.f32.mrf.mxu1 }
  0xe3   : > { %vm330_vm2 = vcmp.gt.f32.partialorder %v306_v13, 0.0  ;;  %v338_v17 = vmul.f32 0.1, %v306_v13  ;;  %vm334_vm3 = vcmp.gt.f32.partialorder %v322_v14, 0.0  ;;  %v342_v18 = vmul.f32 0.1, %v322_v14 }
  0xe4   : > { %v298_v19 = vadd.f32 %v458_v10, %v297_v15  ;;  %v314_v20 = vadd.f32 %v458_v10, %v313_v16  ;;  %v512_v21 = vpop.f32.mrf.mxu0  ;;  %v516_v22 = vpop.f32.mrf.mxu1 }
  0xe5   : > { %v346_v23 = vsel %vm330_vm2, %v306_v13, %v338_v17  ;;  %v350_v24 = vsel %vm334_vm3, %v322_v14, %v342_v18  ;;  %v309_v25 = vadd.f32 %v512_v21, %v458_v10  ;;  %v325_v26 = vadd.f32 %v516_v22, %v458_v10 }
  0xe6   : > { %v484_v27 = vpack.c.bf16 %v346_v23, %v346_v23  ;;  %v488_v28 = vpack.c.bf16 %v350_v24, %v350_v24  ;;  %vm328_vm5 = vcmp.gt.f32.partialorder %v298_v19, 0.0  ;;  %v336_v29 = vmul.f32 0.1, %v298_v19  ;;  %v300_v30 = vpop.f32.mrf.mxu0  ;;  %v316_v31 = vpop.f32.mrf.mxu1 }
  0xe7   : > { %vm332_vm6 = vcmp.gt.f32.partialorder %v314_v20, 0.0  ;;  %v340_v32 = vmul.f32 0.1, %v314_v20  ;;  %vm331_vm7 = vcmp.gt.f32.partialorder %v309_v25, 0.0  ;;  %v339_v33 = vmul.f32 0.1, %v309_v25 }
  0xe8   : > { %387 = vst.msk [vmem:[%s617_s6 + $0x8] sm:$0xf] %vm384_vm4, %v484_v27  ;;  %391 = vst.msk [vmem:[%s617_s6 + $0x18] sm:$0xf] %vm384_vm4, %v488_v28  ;;  %v344_v34 = vsel %vm328_vm5, %v298_v19, %v336_v29  ;;  %vm335_vm8 = vcmp.gt.f32.partialorder %v325_v26, 0.0  ;;  %v301_v36 = vadd.f32 %v458_v10, %v300_v30  ;;  %v317_v40 = vadd.f32 %v458_v10, %v316_v31 }
  0xe9   : > { %v343_v35 = vmul.f32 0.1, %v325_v26  ;;  %v482_v37 = vpack.c.bf16 %v344_v34, %v344_v34  ;;  %v348_v38 = vsel %vm332_vm6, %v314_v20, %v340_v32  ;;  %v347_v39 = vsel %vm331_vm7, %v309_v25, %v339_v33 }
  0xea   : > { %v486_v41 = vpack.c.bf16 %v348_v38, %v348_v38  ;;  %v485_v42 = vpack.c.bf16 %v347_v39, %v347_v39  ;;  %vm329_vm9 = vcmp.gt.f32.partialorder %v301_v36, 0.0  ;;  %v337_v45 = vmul.f32 0.1, %v301_v36 }
  0xeb   : > { %v351_v43 = vsel %vm335_vm8, %v325_v26, %v343_v35  ;;  %385 = vst.msk [vmem:[%s617_s6] sm:$0xf] %vm384_vm4, %v482_v37  ;;  %vm333_vm10 = vcmp.gt.f32.partialorder %v317_v40, 0.0  ;;  %v341_v46 = vmul.f32 0.1, %v317_v40 }
  0xec   : > { %v489_v44 = vpack.c.bf16 %v351_v43, %v351_v43  ;;  %389 = vst.msk [vmem:[%s617_s6 + $0x10] sm:$0xf] %vm384_vm4, %v486_v41  ;;  %388 = vst.msk [vmem:[%s617_s6 + $0xc] sm:$0xf] %vm384_vm4, %v485_v42  ;;  %v345_v47 = vsel %vm329_vm9, %v301_v36, %v337_v45 }
  0xed   : > { %v349_v48 = vsel %vm333_vm10, %v317_v40, %v341_v46  ;;  %v483_v49 = vpack.c.bf16 %v345_v47, %v345_v47 }
  0xee   : > { %392 = vst.msk [vmem:[%s617_s6 + $0x1c] sm:$0xf] %vm384_vm4, %v489_v44  ;;  %v487_v50 = vpack.c.bf16 %v349_v48, %v349_v48 }
  0xef   : > { %386 = vst.msk [vmem:[%s617_s6 + $0x4] sm:$0xf] %vm384_vm4, %v483_v49 }
  0xf0   : > { %390 = vst.msk [vmem:[%s617_s6 + $0x14] sm:$0xf] %vm384_vm4, %v487_v50 }
  0xf1 PF: > { %s13_s12 = sadd.s32 1, %s552_s12  }
  0xf2   : > { %p10_p4 = scmp.ge.s32.totalorder %s13_s12, 4  }
  0xf4   :  { %12 = sbr.rel (!%p10_p4) target bundleno = 1 (0x1), region = 62 }

// kernel: yolov3_mcunet_forward.14
= control target key start
LH: loop header
LB: loop body
LE: loop exit
PB: predicated region body
PF: predicated region fallthrough
CT: control target
= control target key end

     0   :  { %s466_s12 = smov 0   ;;  %s517_s0 = inlined_call_operand.vmem [shape: bf16[32,144], index: 0, kind: input, shape index: {}]   ;;  %s518_s1 = inlined_call_operand.vmem [shape: bf16[144,32], index: 1, kind: input, shape index: {}]   ;;  %s519_s2 = inlined_call_operand.vmem [shape: f32[1,32], index: 2, kind: input, shape index: {}]   ;;  %s520_s3 = inlined_call_operand.vmem [shape: bf16[32,32], index: 3, kind: output, shape index: {}]  }
   0x1 LB: > { %s386_s13 = sadd.s32 4294967295, %s443_s12   ;;  %p390_p0 = scmp.ge.s32.totalorder %s443_s12, 1  ;;  %s443_s12 = sphi %s466_s12, %s13_s12  }
   0x2   : > { %p139_p1 = scmp.lt.s32.totalorder %s443_s12, 3 }
   0x4   : > { %p140_p2 = pnand %p390_p0, %p139_p1 }
   0x5   : > { %s391_s16 = sshll.u32 (!%p140_p2), %s386_s13, 1 }
   0x6   : > { %143 = sbr.rel (%p140_p2) target bundleno = 253 (0xfd), region = 32  ;;  %p165_p3 = scmp.lt.s32.totalorder (!%p140_p2), %s391_s16, 3 }
   0xb   : > { %v425_v0 = vld [vmem:[%s518_s1 + $0x38] sm:$0xff]   ;;  %v445_v1 = vmov 0   ;;  %v426_v2 = vld [vmem:[%s518_s1 + $0x30] sm:$0xff]   ;;  %s522_s16 = smov (!%p165_p3, %s391_s16), 3  ;;  %v427_v3 = vld [vmem:[%s518_s1 + $0x28] sm:$0xff]   ;;  %vm268_vm0 = vcmask 130048  }
   0xc   : > { %272 = vmatprep.subr.bf16.mxu0 %v445_v1  ;;  %s413_s21 = sshll.u32 %s522_s16, 3  ;;  %v428_v4 = vld [vmem:[%s518_s1 + $0x20] sm:$0xff]   ;;  %v429_v6 = vld [vmem:[%s518_s1 + $0x18] sm:$0xff]   ;;  %v430_v7 = vld [vmem:[%s518_s1 + $0x10] sm:$0xff]   ;;  %s395_s13 = sshll.u32 %s522_s16, 2  ;;  %vm327_vm2 = vcmask 257024  }
   0xd   : > { %273 = vmatpush1.bf16.msra.mxu0 %v425_v0  ;;  %s169_s24 = scalar_lea.vmem %s517_s0, %s413_s21  ;;  %v431_v8 = vld [vmem:[%s518_s1 + $0x8] sm:$0xff]   ;;  %v432_v9 = vld [vmem:[%s518_s1] sm:$0xff]   ;;  %s175_s17 = scalar_lea.vmem %s520_s3, %s395_s13 }
   0xe   : > { %274 = vmatprep.subr.bf16.mxu0 %v445_v1  ;;  %v436_v5 = vld [vmem:[%s169_s24 + $0x4] ss:$8 sps:$4 sm:$0xff]   ;;  %v434_v11 = vld [vmem:[%s169_s24] ss:$8 sps:$4 sm:$0xff]  }
   0xf   : > { %408 = vmatprep.mubr.msk.bf16.mxu0 %vm268_vm0, %v436_v5  ;;  %v433_v10 = vld [vmem:[%s518_s1 + $0x40] sm:$0xff]  }
  0x10   : > { %v396_v12 = vld [vmem:[%s519_s2] ss:$0 sm:$0xff] }
  0x11   : > { %275 = vmatpush1.bf16.msra.mxu0 %v426_v2 }
  0x12   : > { %276 = vmatprep.subr.bf16.mxu0 %v445_v1 }
  0x15   : > { %277 = vmatpush1.bf16.msra.mxu0 %v427_v3 }
  0x16   : > { %278 = vmatprep.subr.bf16.mxu0 %v445_v1 }
  0x19   : > { %279 = vmatpush1.bf16.msra.mxu0 %v428_v4 }
  0x1a   : > { %280 = vmatprep.subr.bf16.mxu0 %v445_v1 }
  0x1d   : > { %281 = vmatpush1.bf16.msra.mxu0 %v429_v6 }
  0x1e   : > { %282 = vmatprep.subr.bf16.mxu0 %v445_v1 }
  0x21   : > { %283 = vmatpush1.bf16.msra.mxu0 %v430_v7 }
  0x22   : > { %284 = vmatprep.subr.bf16.mxu0 %v445_v1 }
  0x25   : > { %285 = vmatpush1.bf16.msra.mxu0 %v431_v8 }
  0x26   : > { %286 = vmatprep.subr.bf16.mxu0 %v445_v1 }
  0x29   : > { %287 = vmatpush1.bf16.msra.mxu0 %v432_v9 }
  0x2a   : > { %302 = vmatprep.subr.bf16.mxu0 %v445_v1 }
  0x2d   : > { %303 = vmatpush2.bf16.msra.mxu0 %v433_v10 }
  0x30   : > { %305 = vmatmul.mubr.bf16.vlgmr.msra.gmra.mxu0 %v434_v11 }
  0xf0   : > { %v306_v13 = vpop.f32.mrf.mxu0 }
  0xf1   : > { %v307_v14 = vadd.f32 %v396_v12, %v306_v13 }
  0xf2   : > { %v308_v15 = vpop.f32.mrf.mxu0 }
  0xf3   : > { %vm313_vm1 = vcmp.gt.f32.partialorder %v307_v14, 0.0  ;;  %v315_v16 = vmul.f32 0.1, %v307_v14 }
  0xf4   : > { %v309_v17 = vpop.f32.mrf.mxu0 }
  0xf5   : > { %v317_v18 = vsel %vm313_vm1, %v307_v14, %v315_v16  ;;  %v310_v19 = vadd.f32 %v396_v12, %v309_v17 }
  0xf6   : > { %v414_v20 = vpack.c.bf16 %v317_v18, %v317_v18  ;;  %v311_v21 = vpop.f32.mrf.mxu0 }
  0xf7   : > { %vm314_vm3 = vcmp.gt.f32.partialorder %v310_v19, 0.0  ;;  %v316_v22 = vmul.f32 0.1, %v310_v19 }
  0xf8   : > { %328 = vst.msk [vmem:[%s175_s17] sm:$0xf] %vm327_vm2, %v414_v20 }
  0xf9   : > { %v318_v23 = vsel %vm314_vm3, %v310_v19, %v316_v22 }
  0xfa   : > { %v415_v24 = vpack.c.bf16 %v318_v23, %v318_v23 }
  0xfc   : > { %329 = vst.msk [vmem:[%s175_s17 + $0x4] sm:$0xf] %vm327_vm2, %v415_v24 }
  0xfd PF: > { %s13_s12 = sadd.s32 1, %s443_s12  }
  0xfe   : > { %p10_p4 = scmp.ge.s32.totalorder %s13_s12, 4  }
 0x100   :  { %12 = sbr.rel (!%p10_p4) target bundleno = 1 (0x1), region = 62 }

// kernel: yolov3_mcunet_forward.15
= control target key start
LH: loop header
LB: loop body
LE: loop exit
PB: predicated region body
PF: predicated region fallthrough
CT: control target
= control target key end

     0   :  { %v376_v1 = vmov 0.0   ;;  %vm377_vm0 = vmmov 0   ;;  %vm185_vm1 = vcmask 261120   ;;  %vm285_vm3 = vcmask 519168   ;;  %s470_s1 = inlined_call_operand.vmem [shape: bf16[288,64], index: 1, kind: input, shape index: {}]   ;;  %s471_s0 = inlined_call_operand.vmem [shape: bf16[16,288], index: 0, kind: input, shape index: {}]   ;;  %s472_s2 = inlined_call_operand.vmem [shape: f32[1,64], index: 2, kind: input, shape index: {}]   ;;  %s473_s3 = inlined_call_operand.vmem [shape: bf16[16,64], index: 3, kind: output, shape index: {}]  }
   0x1   :  { %v354_v0 = vld [vmem:[%s470_s1 + $0x78] sm:$0xff]   ;;  %344 = vmatprep.subr.bf16.mxu1 %v376_v1  ;;  %348 = vmatprep.mubr.msk.bf16.mxu1 %vm377_vm0, %v376_v1  ;;  %v356_v3 = vld [vmem:[%s470_s1 + $0x70] sm:$0xff]   ;;  %v358_v5 = vld [vmem:[%s470_s1 + $0x68] sm:$0xff]  }
   0x2   :  { %v355_v2 = vld [vmem:[%s470_s1 + $0x38] sm:$0xff]   ;;  %319 = vmatprep.subr.bf16.mxu0 %v354_v0  ;;  %v357_v4 = vld [vmem:[%s470_s1 + $0x30] sm:$0xff]   ;;  %v359_v6 = vld [vmem:[%s470_s1 + $0x28] sm:$0xff]  }
   0x3   :  { %320 = vmatpush3.bf16.msra.mxu0 %v355_v2  ;;  %v360_v7 = vld [vmem:[%s470_s1 + $0x60] sm:$0xff]   ;;  %v362_v9 = vld [vmem:[%s470_s1 + $0x58] sm:$0xff]   ;;  %v368_v10 = vld [vmem:[%s470_s1 + $0x88] sm:$0xff]  }
   0x4   :  { %321 = vmatprep.subr.bf16.mxu0 %v356_v3  ;;  %v361_v8 = vld [vmem:[%s470_s1 + $0x20] sm:$0xff]   ;;  %v363_v11 = vld [vmem:[%s470_s1 + $0x18] sm:$0xff]   ;;  %v364_v12 = vld [vmem:[%s470_s1 + $0x50] sm:$0xff]   ;;  %345 = vmatpush3.bf16.msra.mxu1 %v368_v10 }
   0x5   :  { %346 = vmatprep.subr.bf16.mxu1 %v376_v1  ;;  %v371_v13 = vld [vmem:[%s470_s1 + $0x80] sm:$0xff]   ;;  %v365_v14 = vld [vmem:[%s470_s1 + $0x10] sm:$0xff]   ;;  %v366_v16 = vld [vmem:[%s470_s1 + $0x48] sm:$0xff]  }
   0x6   :  { %v374_v15 = vld [vmem:[%s471_s0 + $0x4] ss:$12 sps:$4 sm:$0xff]   ;;  %v375_v17 = vld [vmem:[%s471_s0 + $0x8] ss:$12 sps:$4 sm:$0xff]   ;;  %v372_v21 = vld [vmem:[%s471_s0] ss:$12 sps:$4 sm:$0xff]  }
   0x7   :  { %322 = vmatpush3.bf16.msra.mxu0 %v357_v4  ;;  %221 = vmatprep.mubr.bf16.mxu0 %v374_v15  ;;  %v367_v18 = vld [vmem:[%s470_s1 + $0x8] sm:$0xff]   ;;  %v369_v19 = vld [vmem:[%s470_s1 + $0x40] sm:$0xff]  }
   0x8   :  { %323 = vmatprep.subr.bf16.mxu0 %v358_v5  ;;  %347 = vmatpush3.bf16.msra.mxu1 %v371_v13  ;;  %v370_v20 = vld [vmem:[%s470_s1] sm:$0xff]  }
   0x9   :  { %v292_v27 = vld [vmem:[%s472_s2] ss:$0 sm:$0xff] }
   0xb   :  { %324 = vmatpush3.bf16.msra.mxu0 %v359_v6  ;;  %349 = vmatmul.mubr.msk.bf16.vlgmr.msra.gmra.mxu1 %vm185_vm1, %v375_v17 }
   0xc   :  { %325 = vmatprep.subr.bf16.mxu0 %v360_v7 }
   0xf   :  { %326 = vmatpush3.bf16.msra.mxu0 %v361_v8 }
  0x10   :  { %327 = vmatprep.subr.bf16.mxu0 %v362_v9 }
  0x13   :  { %328 = vmatpush3.bf16.msra.mxu0 %v363_v11 }
  0x14   :  { %329 = vmatprep.subr.bf16.mxu0 %v364_v12 }
  0x17   :  { %330 = vmatpush3.bf16.msra.mxu0 %v365_v14 }
  0x18   :  { %331 = vmatprep.subr.bf16.mxu0 %v366_v16 }
  0x1b   :  { %332 = vmatpush3.bf16.msra.mxu0 %v367_v18 }
  0x1c   :  { %333 = vmatprep.subr.bf16.mxu0 %v369_v19 }
  0x1f   :  { %334 = vmatpush3.bf16.msra.mxu0 %v370_v20 }
  0x22   :  { %222 = vmatmul.mubr.bf16.vlgmr.msra.gmra.mxu0 %v372_v21 }
  0xcb   :  { %v264_v22 = vpop.f32.mrf.mxu1 }
  0xcd   :  { %v350_v23 = vpop.f32.mrf.mxu1 }
  0xcf   :  { %v267_v24 = vpop.f32.mrf.mxu1 }
  0xd1   :  { %v351_v25 = vpop.f32.mrf.mxu1 }
  0xe2   :  { %v335_v26 = vpop.f32.mrf.mxu0 }
  0xe4   :  { %v336_v28 = vpop.f32.mrf.mxu0 }
  0xe5   :  { %v337_v29 = vadd.f32 %v336_v28, %v335_v26 }
  0xe6   :  { %v338_v30 = vpop.f32.mrf.mxu0 }
  0xe7   :  { %v224_v31 = vadd.f32 %v337_v29, %v292_v27 }
  0xe8   :  { %v339_v32 = vpop.f32.mrf.mxu0 }
  0xe9   :  { %v265_v33 = vadd.f32 %v264_v22, %v224_v31  ;;  %v340_v34 = vadd.f32 %v339_v32, %v338_v30 }
  0xeb   :  { %vm271_vm2 = vcmp.gt.f32.partialorder %v265_v33, 0.0  ;;  %v273_v35 = vmul.f32 0.1, %v265_v33  ;;  %v227_v36 = vadd.f32 %v340_v34, %v292_v27 }
  0xed   :  { %v275_v37 = vsel %vm271_vm2, %v265_v33, %v273_v35  ;;  %v268_v38 = vadd.f32 %v267_v24, %v227_v36 }
  0xee   :  { %v317_v39 = vpack.c.bf16 %v275_v37, %v275_v37 }
  0xef   :  { %vm272_vm4 = vcmp.gt.f32.partialorder %v268_v38, 0.0  ;;  %v274_v40 = vmul.f32 0.1, %v268_v38 }
  0xf0   :  { %286 = vst.msk [vmem:[%s473_s3] sm:$0xf] %vm285_vm3, %v317_v39 }
  0xf1   :  { %v276_v41 = vsel %vm272_vm4, %v268_v38, %v274_v40 }
  0xf2   :  { %v318_v42 = vpack.c.bf16 %v276_v41, %v276_v41 }
  0xf4   :  { %287 = vst.msk [vmem:[%s473_s3 + $0x4] sm:$0xf] %vm285_vm3, %v318_v42 }

// kernel: yolov3_mcunet_forward.17
= control target key start
LH: loop header
LB: loop body
LE: loop exit
PB: predicated region body
PF: predicated region fallthrough
CT: control target
= control target key end

     0   :  { %v162_v0 = vmov 0.0   ;;  %vm163_vm0 = vmmov 0   ;;  %vm61_vm1 = vcmask 523264   ;;  %vm120_vm3 = vcmask 519168   ;;  %s208_s1 = inlined_call_operand.vmem [shape: bf16[64,64], index: 1, kind: input, shape index: {}]   ;;  %s209_s0 = inlined_call_operand.vmem [shape: bf16[16,64], index: 0, kind: input, shape index: {}]   ;;  %s210_s2 = inlined_call_operand.vmem [shape: f32[1,64], index: 2, kind: input, shape index: {}]   ;;  %s211_s3 = inlined_call_operand.vmem [shape: bf16[16,64], index: 3, kind: output, shape index: {}]  }
   0x1   :  { %143 = vmatprep.subr.bf16.mxu0 %v162_v0  ;;  %v157_v1 = vld [vmem:[%s208_s1 + $0x18] sm:$0xff]   ;;  %151 = vmatprep.mubr.msk.bf16.mxu0 %vm163_vm0, %v162_v0  ;;  %v158_v2 = vld [vmem:[%s208_s1 + $0x10] sm:$0xff]   ;;  %v159_v3 = vld [vmem:[%s208_s1 + $0x8] sm:$0xff]  }
   0x2   :  { %144 = vmatpush3.bf16.msra.mxu0 %v157_v1  ;;  %v160_v4 = vld [vmem:[%s208_s1] sm:$0xff]  }
   0x3   :  { %145 = vmatprep.subr.bf16.mxu0 %v162_v0  ;;  %v161_v5 = vld [vmem:[%s209_s0] sm:$0xff]  }
   0x4   :  { %v127_v6 = vld [vmem:[%s210_s2] ss:$0 sm:$0xff] }
   0x6   :  { %146 = vmatpush3.bf16.msra.mxu0 %v158_v2 }
   0x7   :  { %147 = vmatprep.subr.bf16.mxu0 %v162_v0 }
   0xa   :  { %148 = vmatpush3.bf16.msra.mxu0 %v159_v3 }
   0xb   :  { %149 = vmatprep.subr.bf16.mxu0 %v162_v0 }
   0xe   :  { %150 = vmatpush3.bf16.msra.mxu0 %v160_v4 }
  0x11   :  { %152 = vmatmul.mubr.msk.bf16.vlgmr.msra.gmra.mxu0 %vm61_vm1, %v161_v5 }
  0xd1   :  { %v99_v7 = vpop.f32.mrf.mxu0 }
  0xd2   :  { %v100_v8 = vadd.f32 %v127_v6, %v99_v7 }
  0xd3   :  { %v153_v9 = vpop.f32.mrf.mxu0 }
  0xd4   :  { %vm106_vm2 = vcmp.gt.f32.partialorder %v100_v8, 0.0  ;;  %v108_v10 = vmul.f32 0.1, %v100_v8 }
  0xd5   :  { %v102_v11 = vpop.f32.mrf.mxu0 }
  0xd6   :  { %v110_v12 = vsel %vm106_vm2, %v100_v8, %v108_v10  ;;  %v103_v13 = vadd.f32 %v127_v6, %v102_v11 }
  0xd7   :  { %v136_v14 = vpack.c.bf16 %v110_v12, %v110_v12  ;;  %v154_v15 = vpop.f32.mrf.mxu0 }
  0xd8   :  { %vm107_vm4 = vcmp.gt.f32.partialorder %v103_v13, 0.0  ;;  %v109_v16 = vmul.f32 0.1, %v103_v13 }
  0xd9   :  { %121 = vst.msk [vmem:[%s211_s3] sm:$0xf] %vm120_vm3, %v136_v14 }
  0xda   :  { %v111_v17 = vsel %vm107_vm4, %v103_v13, %v109_v16 }
  0xdb   :  { %v137_v18 = vpack.c.bf16 %v111_v17, %v111_v17 }
  0xdd   :  { %122 = vst.msk [vmem:[%s211_s3 + $0x4] sm:$0xf] %vm120_vm3, %v137_v18 }

// kernel: yolov3_mcunet_forward.16
= control target key start
LH: loop header
LB: loop body
LE: loop exit
PB: predicated region body
PF: predicated region fallthrough
CT: control target
= control target key end

     0   :  { %v642_v33 = vmov 0.0   ;;  %vm643_vm0 = vmmov 0   ;;  %vm341_vm1 = vcmask 523264   ;;  %vm482_vm3 = vcmask 519168   ;;  %s796_s1 = inlined_call_operand.vmem [shape: bf16[576,64], index: 1, kind: input, shape index: {}]   ;;  %s797_s0 = inlined_call_operand.vmem [shape: bf16[16,576], index: 0, kind: input, shape index: {}]   ;;  %s798_s2 = inlined_call_operand.vmem [shape: f32[1,64], index: 2, kind: input, shape index: {}]   ;;  %s799_s3 = inlined_call_operand.vmem [shape: bf16[16,64], index: 3, kind: output, shape index: {}]  }
   0x1   :  { %v599_v0 = vld [vmem:[%s796_s1 + $0x78] sm:$0xff]   ;;  %v603_v4 = vld [vmem:[%s796_s1 + $0x70] sm:$0xff]   ;;  %v607_v8 = vld [vmem:[%s796_s1 + $0x68] sm:$0xff]  }
   0x2   :  { %v600_v1 = vld [vmem:[%s796_s1 + $0x38] sm:$0xff]   ;;  %536 = vmatprep.subr.bf16.mxu0 %v599_v0  ;;  %v604_v5 = vld [vmem:[%s796_s1 + $0x30] sm:$0xff]   ;;  %v608_v9 = vld [vmem:[%s796_s1 + $0x28] sm:$0xff]  }
   0x3   :  { %v601_v2 = vld [vmem:[%s796_s1 + $0xf8] sm:$0xff]   ;;  %537 = vmatpush3.bf16.msra.mxu0 %v600_v1  ;;  %v605_v6 = vld [vmem:[%s796_s1 + $0xf0] sm:$0xff]   ;;  %v609_v10 = vld [vmem:[%s796_s1 + $0xe8] sm:$0xff]  }
   0x4   :  { %v602_v3 = vld [vmem:[%s796_s1 + $0xb8] sm:$0xff]   ;;  %558 = vmatprep.subr.bf16.mxu1 %v601_v2  ;;  %538 = vmatprep.subr.bf16.mxu0 %v603_v4  ;;  %v606_v7 = vld [vmem:[%s796_s1 + $0xb0] sm:$0xff]   ;;  %v610_v11 = vld [vmem:[%s796_s1 + $0xa8] sm:$0xff]  }
   0x5   :  { %559 = vmatpush3.bf16.msra.mxu1 %v602_v3  ;;  %v611_v12 = vld [vmem:[%s796_s1 + $0x60] sm:$0xff]   ;;  %v615_v16 = vld [vmem:[%s796_s1 + $0x58] sm:$0xff]   ;;  %v619_v20 = vld [vmem:[%s796_s1 + $0x50] sm:$0xff]  }
   0x6   :  { %560 = vmatprep.subr.bf16.mxu1 %v605_v6  ;;  %v612_v13 = vld [vmem:[%s796_s1 + $0x20] sm:$0xff]   ;;  %v616_v17 = vld [vmem:[%s796_s1 + $0x18] sm:$0xff]   ;;  %v620_v21 = vld [vmem:[%s796_s1 + $0x10] sm:$0xff]  }
   0x7   :  { %539 = vmatpush3.bf16.msra.mxu0 %v604_v5  ;;  %v613_v14 = vld [vmem:[%s796_s1 + $0xe0] sm:$0xff]   ;;  %v617_v18 = vld [vmem:[%s796_s1 + $0xd8] sm:$0xff]   ;;  %v621_v22 = vld [vmem:[%s796_s1 + $0xd0] sm:$0xff]  }
   0x8   :  { %540 = vmatprep.subr.bf16.mxu0 %v607_v8  ;;  %v614_v15 = vld [vmem:[%s796_s1 + $0xa0] sm:$0xff]   ;;  %v618_v19 = vld [vmem:[%s796_s1 + $0x98] sm:$0xff]   ;;  %v622_v23 = vld [vmem:[%s796_s1 + $0x90] sm:$0xff]  }
   0x9   :  { %561 = vmatpush3.bf16.msra.mxu1 %v606_v7  ;;  %v623_v24 = vld [vmem:[%s796_s1 + $0x48] sm:$0xff]   ;;  %v627_v28 = vld [vmem:[%s796_s1 + $0x40] sm:$0xff]   ;;  %v637_v37 = vld [vmem:[%s796_s1 + $0x118] sm:$0xff]  }
   0xa   :  { %562 = vmatprep.subr.bf16.mxu1 %v609_v10  ;;  %v624_v25 = vld [vmem:[%s796_s1 + $0x8] sm:$0xff]   ;;  %v628_v29 = vld [vmem:[%s796_s1] sm:$0xff]   ;;  %v638_v38 = vld [vmem:[%s796_s1 + $0x110] sm:$0xff]  }
   0xb   :  { %541 = vmatpush3.bf16.msra.mxu0 %v608_v9  ;;  %v625_v26 = vld [vmem:[%s796_s1 + $0xc8] sm:$0xff]   ;;  %v629_v30 = vld [vmem:[%s796_s1 + $0xc0] sm:$0xff]  }
   0xc   :  { %542 = vmatprep.subr.bf16.mxu0 %v611_v12  ;;  %v626_v27 = vld [vmem:[%s796_s1 + $0x88] sm:$0xff]   ;;  %v630_v31 = vld [vmem:[%s797_s0] ss:$20 sps:$4 sm:$0xff]   ;;  %v632_v32 = vld [vmem:[%s797_s0 + $0x4] ss:$20 sps:$4 sm:$0xff]  }
   0xd   :  { %563 = vmatpush3.bf16.msra.mxu1 %v610_v11  ;;  %v633_v34 = vld [vmem:[%s796_s1 + $0x80] sm:$0xff]   ;;  %377 = vmatprep.mubr.bf16.mxu0 %v632_v32  ;;  %v634_v35 = vld [vmem:[%s797_s0 + $0x8] ss:$20 sps:$4 sm:$0xff]  }
   0xe   :  { %564 = vmatprep.subr.bf16.mxu1 %v613_v14  ;;  %v636_v36 = vld [vmem:[%s797_s0 + $0xc] ss:$20 sps:$4 sm:$0xff]   ;;  %v641_v41 = vld [vmem:[%s797_s0 + $0x10] ss:$20 sps:$4 sm:$0xff]  }
   0xf   :  { %543 = vmatpush3.bf16.msra.mxu0 %v612_v13  ;;  %418 = vmatprep.mubr.bf16.mxu1 %v636_v36  ;;  %v639_v39 = vld [vmem:[%s796_s1 + $0x108] sm:$0xff]   ;;  %v640_v40 = vld [vmem:[%s796_s1 + $0x100] sm:$0xff]  }
  0x10   :  { %544 = vmatprep.subr.bf16.mxu0 %v615_v16  ;;  %v489_v48 = vld [vmem:[%s798_s2] ss:$0 sm:$0xff] }
  0x11   :  { %565 = vmatpush3.bf16.msra.mxu1 %v614_v15 }
  0x12   :  { %566 = vmatprep.subr.bf16.mxu1 %v617_v18 }
  0x13   :  { %545 = vmatpush3.bf16.msra.mxu0 %v616_v17 }
  0x14   :  { %546 = vmatprep.subr.bf16.mxu0 %v619_v20 }
  0x15   :  { %567 = vmatpush3.bf16.msra.mxu1 %v618_v19 }
  0x16   :  { %568 = vmatprep.subr.bf16.mxu1 %v621_v22 }
  0x17   :  { %547 = vmatpush3.bf16.msra.mxu0 %v620_v21 }
  0x18   :  { %548 = vmatprep.subr.bf16.mxu0 %v623_v24 }
  0x19   :  { %569 = vmatpush3.bf16.msra.mxu1 %v622_v23 }
  0x1a   :  { %570 = vmatprep.subr.bf16.mxu1 %v625_v26 }
  0x1b   :  { %549 = vmatpush3.bf16.msra.mxu0 %v624_v25 }
  0x1c   :  { %550 = vmatprep.subr.bf16.mxu0 %v627_v28 }
  0x1d   :  { %571 = vmatpush3.bf16.msra.mxu1 %v626_v27 }
  0x1e   :  { %572 = vmatprep.subr.bf16.mxu1 %v629_v30 }
  0x1f   :  { %551 = vmatpush3.bf16.msra.mxu0 %v628_v29 }
  0x20   :  { %585 = vmatprep.subr.bf16.mxu0 %v642_v33 }
  0x21   :  { %573 = vmatpush3.bf16.msra.mxu1 %v633_v34 }
  0x22   :  { %378 = vmatmul.mubr.bf16.vlgmr.msra.gmra.mxu0 %v630_v31 }
  0x23   :  { %593 = vmatprep.mubr.msk.bf16.mxu0 %vm643_vm0, %v642_v33  ;;  %586 = vmatpush3.bf16.msra.mxu0 %v637_v37 }
  0x24   :  { %419 = vmatmul.mubr.bf16.vlgmr.msra.gmra.mxu1 %v634_v35  ;;  %587 = vmatprep.subr.bf16.mxu0 %v642_v33 }
  0x27   :  { %588 = vmatpush3.bf16.msra.mxu0 %v638_v38 }
  0x28   :  { %589 = vmatprep.subr.bf16.mxu0 %v642_v33 }
  0x2b   :  { %590 = vmatpush3.bf16.msra.mxu0 %v639_v39 }
  0x2c   :  { %591 = vmatprep.subr.bf16.mxu0 %v642_v33 }
  0x2f   :  { %592 = vmatpush3.bf16.msra.mxu0 %v640_v40 }
  0x32   :  { %594 = vmatmul.mubr.msk.bf16.vlgmr.msra.gmra.mxu0 %vm341_vm1, %v641_v41 }
  0xe2   :  { %v552_v42 = vpop.f32.mrf.mxu0 }
  0xe4   :  { %v553_v43 = vpop.f32.mrf.mxu0  ;;  %v574_v44 = vpop.f32.mrf.mxu1 }
  0xe5   :  { %v554_v47 = vadd.f32 %v553_v43, %v552_v42 }
  0xe6   :  { %v555_v45 = vpop.f32.mrf.mxu0  ;;  %v575_v46 = vpop.f32.mrf.mxu1 }
  0xe7   :  { %v380_v51 = vadd.f32 %v554_v47, %v489_v48  ;;  %v576_v52 = vadd.f32 %v575_v46, %v574_v44 }
  0xe8   :  { %v556_v49 = vpop.f32.mrf.mxu0  ;;  %v577_v50 = vpop.f32.mrf.mxu1 }
  0xe9   :  { %v557_v53 = vadd.f32 %v556_v49, %v555_v45  ;;  %v421_v57 = vadd.f32 %v576_v52, %v380_v51 }
  0xea   :  { %v578_v54 = vpop.f32.mrf.mxu1 }
  0xeb   :  { %v383_v55 = vadd.f32 %v557_v53, %v489_v48  ;;  %v579_v56 = vadd.f32 %v578_v54, %v577_v50 }
  0xed   :  { %v424_v62 = vadd.f32 %v579_v56, %v383_v55 }
  0xf2   :  { %v461_v58 = vpop.f32.mrf.mxu0 }
  0xf3   :  { %v462_v59 = vadd.f32 %v461_v58, %v421_v57 }
  0xf4   :  { %v595_v60 = vpop.f32.mrf.mxu0 }
  0xf5   :  { %vm468_vm2 = vcmp.gt.f32.partialorder %v462_v59, 0.0  ;;  %v470_v61 = vmul.f32 0.1, %v462_v59 }
  0xf6   :  { %v464_v63 = vpop.f32.mrf.mxu0 }
  0xf7   :  { %v472_v0 = vsel %vm468_vm2, %v462_v59, %v470_v61  ;;  %v465_v1 = vadd.f32 %v464_v63, %v424_v62 }
  0xf8   :  { %v534_v2 = vpack.c.bf16 %v472_v0, %v472_v0  ;;  %v596_v3 = vpop.f32.mrf.mxu0 }
  0xf9   :  { %vm469_vm4 = vcmp.gt.f32.partialorder %v465_v1, 0.0  ;;  %v471_v4 = vmul.f32 0.1, %v465_v1 }
  0xfa   :  { %483 = vst.msk [vmem:[%s799_s3] sm:$0xf] %vm482_vm3, %v534_v2 }
  0xfb   :  { %v473_v5 = vsel %vm469_vm4, %v465_v1, %v471_v4 }
  0xfc   :  { %v535_v6 = vpack.c.bf16 %v473_v5, %v473_v5 }
  0xfe   :  { %484 = vst.msk [vmem:[%s799_s3 + $0x4] sm:$0xf] %vm482_vm3, %v535_v6 }

// kernel: yolov3_mcunet_forward.18
= control target key start
LH: loop header
LB: loop body
LE: loop exit
PB: predicated region body
PF: predicated region fallthrough
CT: control target
= control target key end

     0   :  { %v162_v0 = vmov 0.0   ;;  %vm163_vm0 = vmmov 0   ;;  %vm61_vm1 = vcmask 523264   ;;  %vm120_vm3 = vcmask 257024   ;;  %s208_s1 = inlined_call_operand.vmem [shape: bf16[64,32], index: 1, kind: input, shape index: {}]   ;;  %s209_s0 = inlined_call_operand.vmem [shape: bf16[16,64], index: 0, kind: input, shape index: {}]   ;;  %s210_s2 = inlined_call_operand.vmem [shape: f32[1,32], index: 2, kind: input, shape index: {}]   ;;  %s211_s3 = inlined_call_operand.vmem [shape: bf16[16,32], index: 3, kind: output, shape index: {}]  }
   0x1   :  { %143 = vmatprep.subr.bf16.mxu0 %v162_v0  ;;  %v157_v1 = vld [vmem:[%s208_s1 + $0x18] sm:$0xff]   ;;  %151 = vmatprep.mubr.msk.bf16.mxu0 %vm163_vm0, %v162_v0  ;;  %v158_v2 = vld [vmem:[%s208_s1 + $0x10] sm:$0xff]   ;;  %v159_v3 = vld [vmem:[%s208_s1 + $0x8] sm:$0xff]  }
   0x2   :  { %144 = vmatpush3.bf16.msra.mxu0 %v157_v1  ;;  %v160_v4 = vld [vmem:[%s208_s1] sm:$0xff]  }
   0x3   :  { %145 = vmatprep.subr.bf16.mxu0 %v162_v0  ;;  %v161_v5 = vld [vmem:[%s209_s0] sm:$0xff]  }
   0x4   :  { %v127_v6 = vld [vmem:[%s210_s2] ss:$0 sm:$0xff] }
   0x6   :  { %146 = vmatpush3.bf16.msra.mxu0 %v158_v2 }
   0x7   :  { %147 = vmatprep.subr.bf16.mxu0 %v162_v0 }
   0xa   :  { %148 = vmatpush3.bf16.msra.mxu0 %v159_v3 }
   0xb   :  { %149 = vmatprep.subr.bf16.mxu0 %v162_v0 }
   0xe   :  { %150 = vmatpush3.bf16.msra.mxu0 %v160_v4 }
  0x11   :  { %152 = vmatmul.mubr.msk.bf16.vlgmr.msra.gmra.mxu0 %vm61_vm1, %v161_v5 }
  0xd1   :  { %v99_v7 = vpop.f32.mrf.mxu0 }
  0xd2   :  { %v100_v8 = vadd.f32 %v127_v6, %v99_v7 }
  0xd3   :  { %v153_v9 = vpop.f32.mrf.mxu0 }
  0xd4   :  { %vm106_vm2 = vcmp.gt.f32.partialorder %v100_v8, 0.0  ;;  %v108_v10 = vmul.f32 0.1, %v100_v8 }
  0xd5   :  { %v102_v11 = vpop.f32.mrf.mxu0 }
  0xd6   :  { %v110_v12 = vsel %vm106_vm2, %v100_v8, %v108_v10  ;;  %v103_v13 = vadd.f32 %v127_v6, %v102_v11 }
  0xd7   :  { %v136_v14 = vpack.c.bf16 %v110_v12, %v110_v12  ;;  %v154_v15 = vpop.f32.mrf.mxu0 }
  0xd8   :  { %vm107_vm4 = vcmp.gt.f32.partialorder %v103_v13, 0.0  ;;  %v109_v16 = vmul.f32 0.1, %v103_v13 }
  0xd9   :  { %121 = vst.msk [vmem:[%s211_s3] sm:$0xf] %vm120_vm3, %v136_v14 }
  0xda   :  { %v111_v17 = vsel %vm107_vm4, %v103_v13, %v109_v16 }
  0xdb   :  { %v137_v18 = vpack.c.bf16 %v111_v17, %v111_v17 }
  0xdd   :  { %122 = vst.msk [vmem:[%s211_s3 + $0x4] sm:$0xf] %vm120_vm3, %v137_v18 }

// kernel: yolov3_mcunet_forward.19
= control target key start
LH: loop header
LB: loop body
LE: loop exit
PB: predicated region body
PF: predicated region fallthrough
CT: control target
= control target key end

     0   :  { %v169_v0 = vmov 0.0   ;;  %vm170_vm0 = vmmov 0   ;;  %vm64_vm1 = vcmask 523264   ;;  %vm123_vm2 = vcmask 257024   ;;  %s223_s1 = inlined_call_operand.vmem [shape: bf16[64,32], index: 1, kind: input, shape index: {}]   ;;  %s224_s0 = inlined_call_operand.vmem [shape: bf16[16,64], index: 0, kind: input, shape index: {}]   ;;  %s225_s3 = inlined_call_operand.vmem [shape: bf16[16,32], index: 3, kind: input, shape index: {}]   ;;  %s226_s2 = inlined_call_operand.vmem [shape: f32[1,32], index: 2, kind: input, shape index: {}]   ;;  %s227_s4 = inlined_call_operand.vmem [shape: bf16[16,32], index: 4, kind: output, shape index: {}]  }
   0x1   :  { %150 = vmatprep.subr.bf16.mxu0 %v169_v0  ;;  %v164_v1 = vld [vmem:[%s223_s1 + $0x18] sm:$0xff]   ;;  %158 = vmatprep.mubr.msk.bf16.mxu0 %vm170_vm0, %v169_v0  ;;  %v165_v2 = vld [vmem:[%s223_s1 + $0x10] sm:$0xff]   ;;  %v166_v3 = vld [vmem:[%s223_s1 + $0x8] sm:$0xff]  }
   0x2   :  { %151 = vmatpush3.bf16.msra.mxu0 %v164_v1  ;;  %v167_v4 = vld [vmem:[%s223_s1] sm:$0xff]  }
   0x3   :  { %152 = vmatprep.subr.bf16.mxu0 %v169_v0  ;;  %v168_v5 = vld [vmem:[%s224_s0] sm:$0xff]  }
   0x4   :  { %v142_v6 = vld [vmem:[%s225_s3] sm:$0xff]  }
   0x5   :  { %v130_v7 = vld [vmem:[%s226_s2] ss:$0 sm:$0xff]  ;;  %v143_v8 = vunpack.c.l.bf16 %v142_v6  ;;  %v144_v13 = vunpack.c.h.bf16 %v142_v6 }
   0x6   :  { %153 = vmatpush3.bf16.msra.mxu0 %v165_v2 }
   0x7   :  { %154 = vmatprep.subr.bf16.mxu0 %v169_v0 }
   0xa   :  { %155 = vmatpush3.bf16.msra.mxu0 %v166_v3 }
   0xb   :  { %156 = vmatprep.subr.bf16.mxu0 %v169_v0 }
   0xe   :  { %157 = vmatpush3.bf16.msra.mxu0 %v167_v4 }
  0x11   :  { %159 = vmatmul.mubr.msk.bf16.vlgmr.msra.gmra.mxu0 %vm64_vm1, %v168_v5 }
  0xd1   :  { %v102_v9 = vpop.f32.mrf.mxu0 }
  0xd2   :  { %v103_v10 = vadd.f32 %v130_v7, %v102_v9 }
  0xd3   :  { %v160_v11 = vpop.f32.mrf.mxu0 }
  0xd4   :  { %v113_v12 = vadd.f32 %v143_v8, %v103_v10 }
  0xd5   :  { %v105_v14 = vpop.f32.mrf.mxu0 }
  0xd6   :  { %v139_v15 = vpack.c.bf16 %v113_v12, %v113_v12  ;;  %v106_v16 = vadd.f32 %v130_v7, %v105_v14 }
  0xd7   :  { %v161_v17 = vpop.f32.mrf.mxu0 }
  0xd8   :  { %124 = vst.msk [vmem:[%s227_s4] sm:$0xf] %vm123_vm2, %v139_v15  ;;  %v114_v18 = vadd.f32 %v144_v13, %v106_v16 }
  0xda   :  { %v140_v19 = vpack.c.bf16 %v114_v18, %v114_v18 }
  0xdc   :  { %125 = vst.msk [vmem:[%s227_s4 + $0x4] sm:$0xf] %vm123_vm2, %v140_v19 }

// kernel: yolov3_mcunet_forward.20
= control target key start
LH: loop header
LB: loop body
LE: loop exit
PB: predicated region body
PF: predicated region fallthrough
CT: control target
= control target key end

     0   :  { %v136_v0 = vmov 0.0   ;;  %vm137_vm0 = vmmov 0   ;;  %vm45_vm1 = vcmask 261120   ;;  %vm104_vm3 = vcmask 257024   ;;  %s176_s1 = inlined_call_operand.vmem [shape: bf16[32,32], index: 1, kind: input, shape index: {}]   ;;  %s177_s0 = inlined_call_operand.vmem [shape: bf16[16,32], index: 0, kind: input, shape index: {}]   ;;  %s178_s2 = inlined_call_operand.vmem [shape: f32[1,32], index: 2, kind: input, shape index: {}]   ;;  %s179_s3 = inlined_call_operand.vmem [shape: bf16[16,32], index: 3, kind: output, shape index: {}]  }
   0x1   :  { %123 = vmatprep.subr.bf16.mxu0 %v136_v0  ;;  %v133_v1 = vld [vmem:[%s176_s1 + $0x8] sm:$0xff]   ;;  %127 = vmatprep.mubr.msk.bf16.mxu0 %vm137_vm0, %v136_v0  ;;  %v134_v2 = vld [vmem:[%s176_s1] sm:$0xff]  }
   0x2   :  { %124 = vmatpush3.bf16.msra.mxu0 %v133_v1  ;;  %v135_v3 = vld [vmem:[%s177_s0] sm:$0xff]  }
   0x3   :  { %125 = vmatprep.subr.bf16.mxu0 %v136_v0  ;;  %v111_v4 = vld [vmem:[%s178_s2] ss:$0 sm:$0xff] }
   0x6   :  { %126 = vmatpush3.bf16.msra.mxu0 %v134_v2 }
   0x9   :  { %128 = vmatmul.mubr.msk.bf16.vlgmr.msra.gmra.mxu0 %vm45_vm1, %v135_v3 }
  0xc9   :  { %v83_v5 = vpop.f32.mrf.mxu0 }
  0xca   :  { %v84_v6 = vadd.f32 %v111_v4, %v83_v5 }
  0xcb   :  { %v129_v7 = vpop.f32.mrf.mxu0 }
  0xcc   :  { %vm90_vm2 = vcmp.gt.f32.partialorder %v84_v6, 0.0  ;;  %v92_v8 = vmul.f32 0.1, %v84_v6 }
  0xcd   :  { %v86_v9 = vpop.f32.mrf.mxu0 }
  0xce   :  { %v94_v10 = vsel %vm90_vm2, %v84_v6, %v92_v8  ;;  %v87_v11 = vadd.f32 %v111_v4, %v86_v9 }
  0xcf   :  { %v118_v12 = vpack.c.bf16 %v94_v10, %v94_v10  ;;  %v130_v13 = vpop.f32.mrf.mxu0 }
  0xd0   :  { %vm91_vm4 = vcmp.gt.f32.partialorder %v87_v11, 0.0  ;;  %v93_v14 = vmul.f32 0.1, %v87_v11 }
  0xd1   :  { %105 = vst.msk [vmem:[%s179_s3] sm:$0xf] %vm104_vm3, %v118_v12 }
  0xd2   :  { %v95_v15 = vsel %vm91_vm4, %v87_v11, %v93_v14 }
  0xd3   :  { %v119_v16 = vpack.c.bf16 %v95_v15, %v95_v15 }
  0xd5   :  { %106 = vst.msk [vmem:[%s179_s3 + $0x4] sm:$0xf] %vm104_vm3, %v119_v16 }

// kernel: squeeze.3
= control target key start
LH: loop header
LB: loop body
LE: loop exit
PB: predicated region body
PF: predicated region fallthrough
CT: control target
= control target key end

     0   :  { %s73_s10 = smov 80   ;;  %vm3_vm0 = vcmask 195584   ;;  %s74_s11 = smov 104   ;;  %s163_s0 = inlined_call_operand.vmem [shape: f32[1,16,72], index: 0, kind: input, shape index: {}]   ;;  %s164_s1 = inlined_call_operand.vmem [shape: f32[48,24], index: 1, kind: output, shape index: {}]  }
   0x1   :  { %v31_v0 = vld.sshfl [vmem:[%s163_s0] sm:$0xff pattern:$0x3d2c1b0a]   ;;  %v67_v4 = vld.sshfl [vmem:[%s163_s0 + $0x4] sm:$0xff pattern:$0x54321b0a]  }
   0x2   :  { %v10_v1 = vld.sshfl [vmem:[%s163_s0] sm:$0xff pattern:$0xe3d2c1b0]   ;;  %32 = vrot.lane.b32.xlu1 %v31_v0, %s73_s10  ;;  %v60_v5 = vld.sshfl [vmem:[%s163_s0 + $0x4] sm:$0xff pattern:$0x654321b0]  }
   0x3   :  { %11 = vrot.lane.b32.xlu0 %v10_v1, %s74_s11  ;;  %v2_v2 = vld [vmem:[%s163_s0] sm:$0xff]   ;;  %v54_v3 = vld [vmem:[%s163_s0 + $0x8] sm:$0xff]  }
   0x4   :  { %4 = vst.msk [vmem:[%s164_s1] ss:$3 sm:$0xff] %vm3_vm0, %v2_v2   ;;  %55 = vst.msk [vmem:[%s164_s1 + $0x18] ss:$3 sm:$0xff] %vm3_vm0, %v54_v3  }
   0x6   :  { %45 = vrot.lane.b32.xlu1 %v67_v4, %s73_s10 }
   0x7   :  { %24 = vrot.lane.b32.xlu0 %v60_v5, %s74_s11 }
  0x74   :  { %v33_v6 = vpop.permute.xlu1 %32  }
  0x75   :  { %v12_v7 = vpop.permute.xlu0 %11   ;;  %63 = vst.msk [vmem:[%s164_s1 + $0x20] ss:$-30 sm:$0x3] %vm3_vm0, %v33_v6   ;;  %64 = vst.msk [vmem:[%s164_s1 + $0x5f] ss:$-30 sm:$0xc] %vm3_vm0, %v33_v6  }
  0x76   :  { %65 = vst.msk [vmem:[%s164_s1 + $0x9e] ss:$-30 sm:$0x30] %vm3_vm0, %v33_v6   ;;  %66 = vst.msk [vmem:[%s164_s1 + $0xdd] ss:$-30 sm:$0xc0] %vm3_vm0, %v33_v6  }
  0x77   :  { %56 = vst.msk [vmem:[%s164_s1 + $0x1] ss:$33 sm:$0x3] %vm3_vm0, %v12_v7   ;;  %57 = vst.msk [vmem:[%s164_s1 - $0x3e] ss:$33 sm:$0xc] %vm3_vm0, %v12_v7  }
  0x78   :  { %58 = vst.msk [vmem:[%s164_s1 - $0x7d] ss:$33 sm:$0x30] %vm3_vm0, %v12_v7   ;;  %59 = vst.msk [vmem:[%s164_s1 - $0xbc] ss:$33 sm:$0xc0] %vm3_vm0, %v12_v7   ;;  %v46_v8 = vpop.permute.xlu1 %45  }
  0x79   :  { %v25_v9 = vpop.permute.xlu0 %24   ;;  %68 = vst.msk [vmem:[%s164_s1 + $0x2c] ss:$-30 sm:$0x3] %vm3_vm0, %v46_v8   ;;  %69 = vst.msk [vmem:[%s164_s1 + $0x6b] ss:$-30 sm:$0xc] %vm3_vm0, %v46_v8  }
  0x7a   :  { %70 = vst.msk [vmem:[%s164_s1 + $0x8] ss:$3 sm:$0xf0] %vm3_vm0, %v46_v8   ;;  %61 = vst.msk [vmem:[%s164_s1 + $0xd] ss:$33 sm:$0x3] %vm3_vm0, %v25_v9  }
  0x7b   :  { %62 = vst.msk [vmem:[%s164_s1 + $0xa] ss:$3 sm:$0xfc] %vm3_vm0, %v25_v9  }

// kernel: squeeze.4
= control target key start
LH: loop header
LB: loop body
LE: loop exit
PB: predicated region body
PF: predicated region fallthrough
CT: control target
= control target key end

     0   :  { %vm8_vm0 = vcmask 195584   ;;  %s27_s10 = smov 80   ;;  %s50_s0 = inlined_call_operand.vmem [shape: f32[1,4,72], index: 0, kind: input, shape index: {}]   ;;  %s51_s1 = inlined_call_operand.vmem [shape: f32[12,24], index: 1, kind: output, shape index: {}]  }
   0x1   :  { %v5_v0 = vld [vmem:[%s50_s0] sm:$0xf]  ;;  %s26_s0 = smov 104  }
   0x2   :  { %6 = vst [vmem:[#allocation0] sm:$0xf] %v5_v0 }
   0x9   :  { %v10_v1 = vld [vmem:[#allocation0] sm:$0xf]  }
   0xa   :  { %v7_v2 = vld [vmem:[#allocation0] sm:$0xf]   ;;  %11 = vrot.lane.b32.xlu0 %v10_v1, %s26_s0 }
   0xb   :  { %9 = vst.msk [vmem:[%s51_s1] ss:$3 sm:$0xf] %vm8_vm0, %v7_v2   ;;  %v16_v3 = vld [vmem:[#allocation0] sm:$0xf]  }
   0xe   :  { %17 = vrot.lane.b32.xlu0 %v16_v3, %s27_s10 }
  0x7c   :  { %v12_v4 = vpop.permute.xlu0 %11  }
  0x7d   :  { %22 = vst.msk [vmem:[%s51_s1 + $0x1] ss:$3 sm:$0xf] %vm8_vm0, %v12_v4  }
  0x80   :  { %v18_v5 = vpop.permute.xlu0 %17  }
  0x81   :  { %23 = vst.msk [vmem:[%s51_s1 + $0x2] ss:$3 sm:$0xf] %vm8_vm0, %v18_v5  }

// kernel: squeeze.5
= control target key start
LH: loop header
LB: loop body
LE: loop exit
PB: predicated region body
PF: predicated region fallthrough
CT: control target
= control target key end

     0   :  { %vm8_vm0 = vcmask 195584   ;;  %s33_s8 = smov 80   ;;  %s50_s0 = inlined_call_operand.vmem [shape: f32[72], index: 0, kind: input, shape index: {}]   ;;  %s51_s1 = inlined_call_operand.vmem [shape: f32[3,24], index: 1, kind: output, shape index: {}]  }
   0x1   :  { %v5_v0 = vld [vmem:[%s50_s0] sm:$0x1]  ;;  %s32_s0 = smov 104  }
   0x2   :  { %6 = vst [vmem:[#allocation1] sm:$0x1] %v5_v0 }
   0x9   :  { %v10_v1 = vld [vmem:[#allocation1] sm:$0x1]  }
   0xa   :  { %v7_v2 = vld [vmem:[#allocation1] sm:$0x1]   ;;  %11 = vrot.lane.b32.xlu0 %v10_v1, %s32_s0 }
   0xb   :  { %9 = vst.msk [vmem:[#allocation0] sm:$0x1] %vm8_vm0, %v7_v2   ;;  %v16_v3 = vld [vmem:[#allocation1] sm:$0x1]  }
   0xe   :  { %17 = vrot.lane.b32.xlu0 %v16_v3, %s33_s8 }
  0x7c   :  { %v12_v4 = vpop.permute.xlu0 %11  }
  0x7d   :  { %15 = vst.msk [vmem:[#allocation0 + $0x1] sm:$0x1] %vm8_vm0, %v12_v4  }
  0x80   :  { %v18_v5 = vpop.permute.xlu0 %17  }
  0x81   :  { %21 = vst.msk [vmem:[#allocation0 + $0x2] sm:$0x1] %vm8_vm0, %v18_v5  }
  0x88   :  { %v26_v6 = vld [vmem:[#allocation0] sm:$0xf] }
  0x89   :  { %29 = vst [vmem:[%s51_s1] sm:$0xf] %v26_v6 }

// kernel: yolov3_mcunet_forward.21
= control target key start
LH: loop header
LB: loop body
LE: loop exit
PB: predicated region body
PF: predicated region fallthrough
CT: control target
= control target key end

     0   :  { %v143_v0 = vmov 0.0   ;;  %vm144_vm0 = vmmov 0   ;;  %vm48_vm1 = vcmask 261120   ;;  %vm107_vm2 = vcmask 257024   ;;  %s191_s1 = inlined_call_operand.vmem [shape: bf16[32,32], index: 1, kind: input, shape index: {}]   ;;  %s192_s0 = inlined_call_operand.vmem [shape: bf16[16,32], index: 0, kind: input, shape index: {}]   ;;  %s193_s3 = inlined_call_operand.vmem [shape: bf16[16,32], index: 3, kind: input, shape index: {}]   ;;  %s194_s2 = inlined_call_operand.vmem [shape: f32[1,32], index: 2, kind: input, shape index: {}]   ;;  %s195_s4 = inlined_call_operand.vmem [shape: bf16[16,32], index: 4, kind: output, shape index: {}]  }
   0x1   :  { %130 = vmatprep.subr.bf16.mxu0 %v143_v0  ;;  %v140_v1 = vld [vmem:[%s191_s1 + $0x8] sm:$0xff]   ;;  %134 = vmatprep.mubr.msk.bf16.mxu0 %vm144_vm0, %v143_v0  ;;  %v141_v2 = vld [vmem:[%s191_s1] sm:$0xff]  }
   0x2   :  { %131 = vmatpush3.bf16.msra.mxu0 %v140_v1  ;;  %v142_v3 = vld [vmem:[%s192_s0] sm:$0xff]  }
   0x3   :  { %132 = vmatprep.subr.bf16.mxu0 %v143_v0  ;;  %v124_v4 = vld [vmem:[%s193_s3] sm:$0xff]  }
   0x4   :  { %v114_v5 = vld [vmem:[%s194_s2] ss:$0 sm:$0xff]  ;;  %v125_v6 = vunpack.c.l.bf16 %v124_v4  ;;  %v126_v11 = vunpack.c.h.bf16 %v124_v4 }
   0x6   :  { %133 = vmatpush3.bf16.msra.mxu0 %v141_v2 }
   0x9   :  { %135 = vmatmul.mubr.msk.bf16.vlgmr.msra.gmra.mxu0 %vm48_vm1, %v142_v3 }
  0xc9   :  { %v86_v7 = vpop.f32.mrf.mxu0 }
  0xca   :  { %v87_v8 = vadd.f32 %v114_v5, %v86_v7 }
  0xcb   :  { %v136_v9 = vpop.f32.mrf.mxu0 }
  0xcc   :  { %v97_v10 = vadd.f32 %v125_v6, %v87_v8 }
  0xcd   :  { %v89_v12 = vpop.f32.mrf.mxu0 }
  0xce   :  { %v121_v13 = vpack.c.bf16 %v97_v10, %v97_v10  ;;  %v90_v14 = vadd.f32 %v114_v5, %v89_v12 }
  0xcf   :  { %v137_v15 = vpop.f32.mrf.mxu0 }
  0xd0   :  { %108 = vst.msk [vmem:[%s195_s4] sm:$0xf] %vm107_vm2, %v121_v13  ;;  %v98_v16 = vadd.f32 %v126_v11, %v90_v14 }
  0xd2   :  { %v122_v17 = vpack.c.bf16 %v98_v16, %v98_v16 }
  0xd4   :  { %109 = vst.msk [vmem:[%s195_s4 + $0x4] sm:$0xf] %vm107_vm2, %v122_v17 }

// kernel: yolov3_mcunet_forward.23
= control target key start
LH: loop header
LB: loop body
LE: loop exit
PB: predicated region body
PF: predicated region fallthrough
CT: control target
= control target key end

     0   :  { %s1413_s27 = smov 0   ;;  %s1664_s0 = inlined_call_operand.vmem [shape: bf16[3,16,32], index: 0, kind: input, shape index: {}]   ;;  %s1665_s1 = inlined_call_operand.vmem [shape: bf16[3,32,64], index: 1, kind: input, shape index: {}]   ;;  %s1666_s2 = inlined_call_operand.vmem [shape: f32[3,1,64], index: 2, kind: input, shape index: {}]   ;;  %s1667_s3 = inlined_call_operand.vmem [shape: bf16[3,64,64], index: 3, kind: input, shape index: {}]   ;;  %s1668_s4 = inlined_call_operand.vmem [shape: f32[3,1,64], index: 4, kind: input, shape index: {}]   ;;  %s1669_s5 = inlined_call_operand.vmem [shape: bf16[3,64,75], index: 5, kind: input, shape index: {}]   ;;  %s1670_s6 = inlined_call_operand.vmem [shape: f32[3,1,75], index: 6, kind: input, shape index: {}]   ;;  %s1671_s7 = inlined_call_operand.vmem [shape: f32[3,16,16], index: 7, kind: input, shape index: {}]   ;;  %s1672_s8 = inlined_call_operand.vmem [shape: f32[3,16,128], index: 8, kind: output, shape index: {}]  }
   0x1 LB: > { %s1186_s28 = sadd.s32 4294967295, %s1348_s27   ;;  %p1190_p0 = scmp.ge.s32.totalorder %s1348_s27, 1  ;;  %s1348_s27 = sphi %s1413_s27, %s18_s27  }
   0x2   : > { %p326_p1 = scmp.lt.s32.totalorder %s1348_s27, 4 }
   0x4   : > { %p327_p2 = pnand %p1190_p0, %p326_p1 }
   0x5   : > { %p389_p3 = scmp.lt.s32.totalorder (!%p327_p2), %s1186_s28, 2  ;;  %s1352_s9 = smov (!%p327_p2), 65  }
   0x6   : > { %330 = sbr.rel (%p327_p2) target bundleno = 1082 (0x43a), region = 52  ;;  %s1357_s16 = smov (!%p327_p2), 64  }
   0x7   : > { %s1358_s17 = smov (!%p327_p2), 66   ;;  %s1360_s19 = smov (!%p327_p2), 122  }
   0x8   : > { %s1361_s20 = smov (!%p327_p2), 62   ;;  %s1363_s22 = smov (!%p327_p2), 112  }
   0x9   : > { %s1364_s23 = smov (!%p327_p2), 92   ;;  %s1366_s25 = smov (!%p327_p2), 24  }
   0xa   : > { %s1367_s26 = smov (!%p327_p2), 48  }
   0xb   : > { %v1350_v0 = vmov 0.0   ;;  %vm1351_vm0 = vmmov 0   ;;  %s1674_s28 = smov (!%p389_p3, %s1186_s28), 2  ;;  %vm459_vm1 = vcmask 261120   ;;  %vm550_vm4 = vcmask 523264  }
   0xc   : > { %1243 = vmatprep.subr.bf16.mxu0 %v1350_v0  ;;  %1247 = vmatprep.mubr.msk.bf16.mxu0 %vm1351_vm0, %v1350_v0  ;;  %s1426_s29 = sshll.u32 %s1674_s28, 4  ;;  %s1224_s30 = sshll.u32 %s1674_s28, 3  ;;  %v1353_v38 = vmov 62   ;;  %v1354_v39 = vmov 61   ;;  %v1356_v58 = vmov 60  }
   0xd   : > { %1251 = vmatprep.subr.bf16.mxu1 %v1350_v0  ;;  %1259 = vmatprep.mubr.msk.bf16.mxu1 %vm1351_vm0, %v1350_v0  ;;  %s398_s11 = scalar_lea.vmem %s1665_s1, %s1426_s29  ;;  %s1226_s12 = sshll.u32 %s1674_s28, 5 }
   0xe   : > { %v1307_v1 = vld [vmem:[%s398_s11 + $0x8] sm:$0xff]   ;;  %s393_s15 = scalar_lea.vmem %s1664_s0, %s1224_s30  ;;  %s406_s18 = scalar_lea.vmem %s1667_s3, %s1226_s12  ;;  %v1308_v2 = vld [vmem:[%s398_s11] sm:$0xff]   ;;  %1302 = vset.pattern.permute.xlu0 %v1353_v38  ;;  %1301 = vset.pattern.permute.xlu1 %v1354_v39 }
   0xf   : > { %1244 = vmatpush3.bf16.msra.mxu0 %v1307_v1  ;;  %v1310_v3 = vld [vmem:[%s406_s18 + $0x18] sm:$0xff]   ;;  %v1309_v4 = vld [vmem:[%s393_s15] sm:$0xff]   ;;  %s1443_s21 = scalar_lea.vmem %s1669_s5, %s1226_s12  ;;  %v1311_v5 = vld [vmem:[%s406_s18 + $0x10] sm:$0xff]   ;;  %s401_s24 = scalar_lea.vmem %s1666_s2, %s1674_s28 }
  0x10   : > { %1245 = vmatprep.subr.bf16.mxu0 %v1350_v0  ;;  %1252 = vmatpush3.bf16.msra.mxu1 %v1310_v3  ;;  %v1312_v6 = vld [vmem:[%s406_s18 + $0x8] sm:$0xff]   ;;  %v1313_v7 = vld [vmem:[%s406_s18] sm:$0xff]   ;;  %v1314_v8 = vld [vmem:[%s1443_s21 + $0x18] sm:$0xff]   ;;  %s422_s30 = scalar_lea.vmem %s1671_s7, %s1426_s29  ;;  %s409_s12 = scalar_lea.vmem %s1668_s4, %s1674_s28 }
  0x11   : > { %1253 = vmatprep.subr.bf16.mxu1 %v1350_v0  ;;  %v1203_v9 = vld [vmem:[%s401_s24] ss:$0 sm:$0xff]  ;;  %v1315_v21 = vld [vmem:[%s1443_s21 + $0x10] sm:$0xff]   ;;  %v1316_v22 = vld [vmem:[%s1443_s21 + $0x8] sm:$0xff]   ;;  %s417_s15 = scalar_lea.vmem %s1670_s6, %s1674_s28  ;;  %s1355_s28 = smov 63  }
  0x12   : > { %v1317_v23 = vld [vmem:[%s1443_s21] sm:$0xff]   ;;  %v1463_v25 = vld [vmem:[%s422_s30 + $0x8] sm:$0xff]  ;;  %s1359_s18 = smov 67   ;;  %s1362_s21 = smov 61  }
  0x13   : > { %1246 = vmatpush3.bf16.msra.mxu0 %v1308_v2  ;;  %v1459_v24 = vld [vmem:[%s422_s30] sm:$0xff]  ;;  %s1365_s24 = smov 4   ;;  %s427_s10 = scalar_lea.vmem %s1672_s8, %s1426_s29 }
  0x14   : > { %1263 = vmatprep.subr.bf16.mxu0 %v1350_v0  ;;  %1254 = vmatpush3.bf16.msra.mxu1 %v1311_v5  ;;  %v1208_v26 = vld [vmem:[%s409_s12] ss:$0 sm:$0xff] }
  0x15   : > { %1255 = vmatprep.subr.bf16.mxu1 %v1350_v0  ;;  %731 = vrot.lane.b32.xlu0 %v1459_v24, %s1352_s9  ;;  %v1214_v40 = vld [vmem:[%s417_s15] ss:$0 sm:$0xff] }
  0x16   : > { %1248 = vmatmul.mubr.msk.bf16.vlgmr.msra.gmra.mxu0 %vm459_vm1, %v1309_v4 }
  0x17   : > { %1271 = vmatprep.mubr.msk.bf16.mxu0 %vm1351_vm0, %v1350_v0  ;;  %1264 = vmatpush3.bf16.msra.mxu0 %v1314_v8 }
  0x18   : > { %1256 = vmatpush3.bf16.msra.mxu1 %v1312_v6  ;;  %1265 = vmatprep.subr.bf16.mxu0 %v1350_v0 }
  0x19   : > { %1257 = vmatprep.subr.bf16.mxu1 %v1350_v0  ;;  %733 = vrot.lane.b32.xlu0 %v1463_v25, %s1352_s9 }
  0x1b   : > { %1266 = vmatpush3.bf16.msra.mxu0 %v1315_v21 }
  0x1c   : > { %1258 = vmatpush3.bf16.msra.mxu1 %v1313_v7  ;;  %1267 = vmatprep.subr.bf16.mxu0 %v1350_v0 }
  0x1f   : > { %1268 = vmatpush3.bf16.msra.mxu0 %v1316_v22 }
  0x20   : > { %1269 = vmatprep.subr.bf16.mxu0 %v1350_v0 }
  0x23   : > { %1270 = vmatpush3.bf16.msra.mxu0 %v1317_v23 }
  0x87   : > { %v1485_v57 = vpop.permute.xlu0 %731 }
  0x8b   : > { %v734_v60 = vpop.permute.xlu0 %733 }
  0xd6   : > { %v497_v10 = vpop.f32.mrf.mxu0 }
  0xd7   : > { %v498_v11 = vadd.f32 %v1203_v9, %v497_v10 }
  0xd8   : > { %v1249_v12 = vpop.f32.mrf.mxu0 }
  0xd9   : > { %v506_v14 = vmul.f32 0.1, %v498_v11  ;;  %vm504_vm2 = vcmp.gt.f32.partialorder %v498_v11, 0.0 }
  0xda   : > { %v500_v13 = vpop.f32.mrf.mxu0 }
  0xdb   : > { %v501_v15 = vadd.f32 %v1203_v9, %v500_v13  ;;  %v508_v18 = vsel %vm504_vm2, %v498_v11, %v506_v14 }
  0xdc   : > { %v1250_v16 = vpop.f32.mrf.mxu0 }
  0xdd   : > { %vm505_vm3 = vcmp.gt.f32.partialorder %v501_v15, 0.0  ;;  %v507_v17 = vmul.f32 0.1, %v501_v15 }
  0xdf   : > { %v509_v19 = vsel %vm505_vm3, %v501_v15, %v507_v17  ;;  %vm823_vm3 = vcmask 7168  }
  0xe0   : > { %v510_v20 = vpack.c.bf16 %v509_v19, %v508_v18 }
  0xe2   : > { %1260 = vmatmul.mubr.msk.bf16.vlgmr.msra.gmra.mxu1 %vm550_vm4, %v510_v20 }
 0x1a2   : > { %v588_v27 = vpop.f32.mrf.mxu1 }
 0x1a3   : > { %v589_v28 = vadd.f32 %v1208_v26, %v588_v27 }
 0x1a4   : > { %v1261_v29 = vpop.f32.mrf.mxu1 }
 0x1a5   : > { %v597_v31 = vmul.f32 0.1, %v589_v28  ;;  %vm595_vm5 = vcmp.gt.f32.partialorder %v589_v28, 0.0 }
 0x1a6   : > { %v591_v30 = vpop.f32.mrf.mxu1 }
 0x1a7   : > { %v592_v32 = vadd.f32 %v1208_v26, %v591_v30  ;;  %v599_v35 = vsel %vm595_vm5, %v589_v28, %v597_v31  ;;  %vm829_vm5 = vcmask 23552  }
 0x1a8   : > { %v1262_v33 = vpop.f32.mrf.mxu1 }
 0x1a9   : > { %vm596_vm6 = vcmp.gt.f32.partialorder %v592_v32, 0.0  ;;  %v598_v34 = vmul.f32 0.1, %v592_v32 }
 0x1ab   : > { %v600_v36 = vsel %vm596_vm6, %v592_v32, %v598_v34  ;;  %vm832_vm6 = vcmask 31744  }
 0x1ac   : > { %v601_v37 = vpack.c.bf16 %v600_v36, %v599_v35 }
 0x1ae   : > { %1272 = vmatmul.mubr.msk.bf16.vlgmr.msra.gmra.mxu0 %vm550_vm4, %v601_v37  ;;  %vm826_vm4 = vcmask 15360  }
 0x26e   : > { %v678_v41 = vpop.f32.mrf.mxu0 }
 0x26f   : > { %v679_v42 = vadd.f32 %v1214_v40, %v678_v41 }
 0x270   : > { %v1273_v43 = vpop.f32.mrf.mxu0 }
 0x271   : > { %v1220_v44 = vmul.f32 -1.442695, %v679_v42  ;;  %v697_v56 = vmul.f32 1.442695, %v679_v42 }
 0x272   : > { %v681_v45 = vpop.f32.mrf.mxu0 }
 0x273   : > { %1318 = vpow2.f32 %v1220_v44  ;;  %v682_v46 = vadd.f32 %v1214_v40, %v681_v45 }
 0x274   : > { %v1274_v47 = vpop.f32.mrf.mxu0 }
 0x275   : > { %v1221_v48 = vmul.f32 -1.442695, %v682_v46  ;;  %v699_v53 = vmul.f32 1.442695, %v682_v46 }
 0x277   : > { %1320 = vpow2.f32 %v1221_v48 }
 0x280   : > { %v1319_v49 = vpop.eup %1318 }
 0x281   : > { %v691_v50 = vadd.f32 1.0, %v1319_v49 }
 0x283   : > { %1322 = vrcp.f32 %v691_v50 }
 0x284   : > { %v1321_v51 = vpop.eup %1320 }
 0x285   : > { %v692_v52 = vadd.f32 1.0, %v1321_v51 }
 0x287   : > { %1324 = vrcp.f32 %v692_v52 }
 0x288   : > { %1326 = vpow2.f32 %v699_v53 }
 0x289   : > { %1328 = vpow2.f32 %v697_v56 }
 0x290   : > { %v1476_v54 = vpop.eup %1322 }
 0x291   : > { %950 = vperm.xlu0 %1302, %v1476_v54   ;;  %850 = vperm.xlu1 %1301, %v1476_v54   ;;  %v929_v39 = vmul.f32 %v1476_v54, %v1485_v57 }
 0x294   : > { %v1480_v55 = vpop.eup %1324 }
 0x295   : > { %715 = vrot.lane.b32.xlu0 %v1463_v25, %s1355_s28  ;;  %854 = vperm.xlu1 %1301, %v1480_v55   ;;  %v1327_v59 = vpop.eup %1326 }
 0x296   : > { %1305 = vset.pattern.permute.xlu0 %v1356_v58  ;;  %v738_v61 = vmul.f32 %v1327_v59, %v734_v60  ;;  %v1329_v63 = vpop.eup %1328 }
 0x297   : > { %v737_v0 = vmul.f32 %v1329_v63, %v1485_v57 }
 0x298   : > { %v766_v62 = vmul.f32 0.5, %v738_v61 }
 0x299   : > { %841 = vrot.lane.b32.xlu0 %v1463_v25, %s1357_s16  ;;  %1303 = vset.pattern.permute.xlu1 %v1353_v38  ;;  %v765_v1 = vmul.f32 0.5, %v737_v0 }
 0x29a   : > { %954 = vperm.xlu1 %1303, %v1480_v55  }
 0x29d   : > { %941 = vrot.lane.b32.xlu0 %v1463_v25, %s1358_s17 }
 0x29e   : > { %713 = vrot.lane.b32.xlu1 %v1459_v24, %s1355_s28 }
 0x29f   : > { %1304 = vset.pattern.permute.xlu1 %v1356_v58 }
 0x2a1   : > { %933 = vrot.lane.b32.xlu0 %v1463_v25, %s1359_s18 }
 0x2a2   : > { %839 = vrot.lane.b32.xlu1 %v1459_v24, %s1357_s16 }
 0x2a5   : > { %771 = vrot.lane.b32.xlu0 %v766_v62, %s1360_s19 }
 0x2a6   : > { %939 = vrot.lane.b32.xlu1 %v1459_v24, %s1358_s17 }
 0x2a9   : > { %721 = vrot.lane.b32.xlu0 %v1459_v24, %s1361_s20 }
 0x2aa   : > { %931 = vrot.lane.b32.xlu1 %v1459_v24, %s1359_s18 }
 0x2ad   : > { %746 = vperm.xlu0 %1305, %v1480_v55  }
 0x2ae   : > { %769 = vrot.lane.b32.xlu1 %v765_v1, %s1360_s19 }
 0x2b1   : > { %1306 = vset.pattern.permute.xlu0 %v1353_v38 }
 0x2b2   : > { %741 = vperm.xlu1 %1304, %v1476_v54  }
 0x2b6   : > { %705 = vrot.lane.b32.xlu1 %v1459_v24, %s1362_s21 }
 0x2ba   : > { %707 = vrot.lane.b32.xlu1 %v1463_v25, %s1362_s21 }
 0x2be   : > { %723 = vrot.lane.b32.xlu1 %v1463_v25, %s1361_s20  ;;  %v930_v25 = vmul.f32 %v1480_v55, %v734_v60 }
 0x30c   : > { %v951_v2 = vpop.permute.xlu0 %950  ;;  %v851_v3 = vpop.permute.xlu1 %850 }
 0x30d   : > { %v1545_v36 = vmul.f32 %v1476_v54, %v851_v3  ;;  %v1554_v41 = vmul.f32 %v1476_v54, %v951_v2 }
 0x30f   : > { %vm861_vm11 = vcmp.eq.f32.partialorder %v1545_v36, inf  ;;  %vm863_vm12 = vcmp.eq.f32.partialorder %v1545_v36, 0.0  ;;  %vm961_vm13 = vcmp.eq.f32.partialorder %v1554_v41, inf  ;;  %vm963_vm14 = vcmp.eq.f32.partialorder %v1554_v41, 0.0 }
 0x310   : > { %v1507_v4 = vpop.permute.xlu0 %715  ;;  %v855_v5 = vpop.permute.xlu1 %854 }
 0x311   : > { %v836_v10 = vmul.f32 %v1480_v55, %v1507_v4  ;;  %v1522_v22 = vmul.f32 %v1480_v55, %v855_v5 }
 0x313   : > { %v838_v13 = vadd.f32 %v836_v10, %v734_v60  ;;  %1330 = vrsqrt.f32 %v1522_v22  ;;  %vm868_vm7 = vcmp.eq.f32.partialorder %v1522_v22, inf  ;;  %v871_v63 = vand.u32 2147483648, %v1522_v22 }
 0x314   : > { %v842_v6 = vpop.permute.xlu0 %841  ;;  %vm870_vm8 = vcmp.eq.f32.partialorder %v1522_v22, 0.0 }
 0x315   : > { %v955_v7 = vpop.permute.xlu1 %954  ;;  %v846_v14 = vmul.f32 %v1480_v55, %v842_v6 }
 0x316   : > { %v1534_v29 = vmul.f32 %v1480_v55, %v955_v7 }
 0x317   : > { %v848_v18 = vadd.f32 %v846_v14, %v734_v60 }
 0x318   : > { %v942_v8 = vpop.permute.xlu0 %941  ;;  %1332 = vrsqrt.f32 %v1534_v29  ;;  %vm968_vm9 = vcmp.eq.f32.partialorder %v1534_v29, inf  ;;  %v971_v7 = vand.u32 2147483648, %v1534_v29  ;;  %vm970_vm10 = vcmp.eq.f32.partialorder %v1534_v29, 0.0 }
 0x319   : > { %v1509_v9 = vpop.permute.xlu1 %713  ;;  %v946_v32 = vmul.f32 %v1480_v55, %v942_v8  ;;  %1334 = vrsqrt.f32 %v1545_v36 }
 0x31a   : > { %v835_v19 = vmul.f32 %v1476_v54, %v1509_v9  ;;  %1336 = vrsqrt.f32 %v1554_v41 }
 0x31c   : > { %v934_v11 = vpop.permute.xlu0 %933  ;;  %v837_v23 = vadd.f32 %v835_v19, %v1485_v57 }
 0x31d   : > { %v840_v12 = vpop.permute.xlu1 %839  ;;  %v938_v30 = vadd.f32 %v934_v11, %v930_v25  ;;  %v948_v35 = vadd.f32 %v946_v32, %v934_v11 }
 0x31e   : > { %v845_v24 = vmul.f32 %v1476_v54, %v840_v12 }
 0x320   : > { %v1514_v15 = vpop.permute.xlu0 %771  ;;  %v847_v31 = vadd.f32 %v845_v24, %v1485_v57  ;;  %v1331_v48 = vpop.eup %1330 }
 0x321   : > { %v940_v16 = vpop.permute.xlu1 %939  ;;  %v874_v17 = vsub.f32 %v838_v13, %v1514_v15  ;;  %v876_v21 = vsub.f32 %v848_v18, %v1514_v15  ;;  %v878_v27 = vadd.f32 %v838_v13, %v1514_v15  ;;  %v974_v33 = vsub.f32 %v938_v30, %v1514_v15 }
 0x322   : > { %v976_v38 = vsub.f32 %v948_v35, %v1514_v15  ;;  %v880_v43 = vadd.f32 %v848_v18, %v1514_v15  ;;  %v945_v44 = vmul.f32 %v1476_v54, %v940_v16  ;;  %v978_v50 = vadd.f32 %v938_v30, %v1514_v15 }
 0x323   : > { %885 = vrot.lane.b32.xlu1 %v874_v17, %s1355_s28  ;;  %v867_v52 = vmul.f32 %v1331_v48, %v1522_v22  ;;  %v980_v58 = vadd.f32 %v948_v35, %v1514_v15 }
 0x324   : > { %v1560_v45 = vpop.permute.xlu0 %721 }
 0x325   : > { %v932_v20 = vpop.permute.xlu1 %931  ;;  %v1333_v53 = vpop.eup %1332  ;;  %v869_v61 = vsel %vm868_vm7, %v1522_v22, %v867_v52  ;;  %v727_v25 = vmul.f32 %v1476_v54, %v1560_v45  ;;  %vm1045_vm7 = vcmask 195584  }
 0x326   : > { %v937_v42 = vadd.f32 %v932_v20, %v929_v39  ;;  %v947_v49 = vadd.f32 %v945_v44, %v932_v20  ;;  %v967_v62 = vmul.f32 %v1333_v53, %v1534_v29  ;;  %v1335_v0 = vpop.eup %1334  ;;  %v872_v3 = vsel %vm870_vm8, %v871_v63, %v869_v61 }
 0x327   : > { %893 = vrot.lane.b32.xlu1 %v876_v21, %s1355_s28  ;;  %v860_v8 = vmul.f32 %v1335_v0, %v1545_v36  ;;  %v1337_v10 = vpop.eup %1336  ;;  %v864_v20 = vand.u32 2147483648, %v1545_v36  ;;  %vm1048_vm8 = vcmask 392192  }
 0x328   : > { %v747_v56 = vpop.permute.xlu0 %746  ;;  %v969_v6 = vsel %vm968_vm9, %v1534_v29, %v967_v62  ;;  %v960_v18 = vmul.f32 %v1337_v10, %v1554_v41  ;;  %vm1051_vm9 = vcmask 588800  }
 0x329   : > { %v1528_v26 = vpop.permute.xlu1 %769  ;;  %v1575_v60 = vmul.f32 %v1480_v55, %v747_v56  ;;  %v972_v13 = vsel %vm970_vm10, %v971_v7, %v969_v6  ;;  %v862_v17 = vsel %vm861_vm11, %v1545_v36, %v860_v8 }
 0x32a   : > { %v873_v28 = vsub.f32 %v837_v23, %v1528_v26  ;;  %v875_v34 = vsub.f32 %v847_v31, %v1528_v26  ;;  %v877_v40 = vadd.f32 %v837_v23, %v1528_v26  ;;  %v973_v47 = vsub.f32 %v937_v42, %v1528_v26 }
 0x32b   : > { %901 = vrot.lane.b32.xlu1 %v878_v27, %s1352_s9  ;;  %v975_v51 = vsub.f32 %v947_v49, %v1528_v26  ;;  %v879_v59 = vadd.f32 %v847_v31, %v1528_v26  ;;  %v977_v5 = vadd.f32 %v937_v42, %v1528_v26  ;;  %1338 = vrsqrt.f32 %v1575_v60 }
 0x32c   : > { %883 = vrot.lane.b32.xlu0 %v873_v28, %s1355_s28  ;;  %v979_v14 = vadd.f32 %v947_v49, %v1528_v26  ;;  %v865_v22 = vsel %vm863_vm12, %v864_v20, %v862_v17  ;;  %v962_v23 = vsel %vm961_vm13, %v1554_v41, %v960_v18  ;;  %v729_v31 = vadd.f32 %v727_v25, %v1509_v9 }
 0x32d   : > { %v742_v37 = vpop.permute.xlu1 %741  ;;  %vm760_vm15 = vcmp.eq.f32.partialorder %v1575_v60, inf  ;;  %vm762_vm0 = vcmp.eq.f32.partialorder %v1575_v60, 0.0 }
 0x32e   : > { %v749_v16 = vmul.f32 %v1476_v54, %v742_v37  ;;  %v781_v39 = vadd.f32 %v1528_v26, %v729_v31 }
 0x32f   : > { %985 = vrot.lane.b32.xlu1 %v974_v33, %s1362_s21 }
 0x330   : > { %891 = vrot.lane.b32.xlu0 %v875_v34, %s1355_s28  ;;  %1340 = vrsqrt.f32 %v749_v16  ;;  %v777_v34 = vsub.f32 %v729_v31, %v1528_v26  ;;  %vm753_vm1 = vcmp.eq.f32.partialorder %v749_v16, inf  ;;  %vm755_vm2 = vcmp.eq.f32.partialorder %v749_v16, 0.0 }
 0x331   : > { %v706_v46 = vpop.permute.xlu1 %705 }
 0x332   : > { %v711_v21 = vmul.f32 %v1476_v54, %v706_v46 }
 0x333   : > { %993 = vrot.lane.b32.xlu1 %v976_v38, %s1362_s21 }
 0x334   : > { %899 = vrot.lane.b32.xlu0 %v877_v40, %s1352_s9  ;;  %v719_v27 = vadd.f32 %v1509_v9, %v711_v21  ;;  %v763_v9 = vand.u32 2147483648, %v1575_v60 }
 0x335   : > { %v708_v57 = vpop.permute.xlu1 %707 }
 0x336   : > { %v712_v1 = vmul.f32 %v1480_v55, %v708_v57  ;;  %v775_v32 = vsub.f32 %v719_v27, %v1528_v26  ;;  %v779_v38 = vadd.f32 %v1528_v26, %v719_v27 }
 0x337   : > { %909 = vrot.lane.b32.xlu1 %v880_v43, %s1352_s9 }
 0x338   : > { %983 = vrot.lane.b32.xlu0 %v973_v47, %s1362_s21  ;;  %v720_v11 = vadd.f32 %v1507_v4, %v712_v1  ;;  %v1339_v29 = vpop.eup %1338 }
 0x339   : > { %v724_v2 = vpop.permute.xlu1 %723  ;;  %v759_v33 = vmul.f32 %v1339_v29, %v1575_v60 }
 0x33a   : > { %v728_v12 = vmul.f32 %v1480_v55, %v724_v2  ;;  %v776_v55 = vsub.f32 %v720_v11, %v1514_v15  ;;  %v780_v30 = vadd.f32 %v1514_v15, %v720_v11 }
 0x33b   : > { %1001 = vrot.lane.b32.xlu1 %v978_v50, %s1355_s28  ;;  %v761_v35 = vsel %vm760_vm15, %v1575_v60, %v759_v33 }
 0x33c   : > { %991 = vrot.lane.b32.xlu0 %v975_v51, %s1362_s21  ;;  %v730_v19 = vadd.f32 %v728_v12, %v1507_v4  ;;  %v964_v4 = vand.u32 2147483648, %v1554_v41  ;;  %v764_v37 = vsel %vm762_vm0, %v763_v9, %v761_v35  ;;  %v756_v41 = vand.u32 2147483648, %v749_v16 }
 0x33d   : > { %v1341_v36 = vpop.eup %1340 }
 0x33e   : > { %v778_v24 = vsub.f32 %v730_v19, %v1514_v15  ;;  %v965_v28 = vsel %vm963_vm14, %v964_v4, %v962_v23  ;;  %v782_v54 = vadd.f32 %v1514_v15, %v730_v19  ;;  %v752_v15 = vmul.f32 %v1341_v36, %v749_v16 }
 0x33f   : > { %1009 = vrot.lane.b32.xlu1 %v980_v58, %s1355_s28 }
 0x340   : > { %907 = vrot.lane.b32.xlu0 %v879_v59, %s1352_s9  ;;  %v754_v40 = vsel %vm753_vm1, %v749_v16, %v752_v15 }
 0x341   : > { %v757_v42 = vsel %vm755_vm2, %v756_v41, %v754_v40 }
 0x343   : > { %917 = vrot.lane.b32.xlu1 %v872_v3, %s1363_s22 }
 0x344   : > { %999 = vrot.lane.b32.xlu0 %v977_v5, %s1355_s28 }
 0x347   : > { %1017 = vrot.lane.b32.xlu1 %v972_v13, %s1364_s23 }
 0x348   : > { %1007 = vrot.lane.b32.xlu0 %v979_v14, %s1355_s28 }
 0x34b   : > { %787 = vrot.lane.b32.xlu1 %v776_v55, %s1352_s9 }
 0x34c   : > { %915 = vrot.lane.b32.xlu0 %v865_v22, %s1363_s22 }
 0x34f   : > { %795 = vrot.lane.b32.xlu1 %v778_v24, %s1352_s9 }
 0x350   : > { %1015 = vrot.lane.b32.xlu0 %v965_v28, %s1364_s23 }
 0x353   : > { %803 = vrot.lane.b32.xlu1 %v780_v30, %s1359_s18 }
 0x354   : > { %785 = vrot.lane.b32.xlu0 %v775_v32, %s1352_s9 }
 0x357   : > { %811 = vrot.lane.b32.xlu1 %v782_v54, %s1359_s18 }
 0x358   : > { %793 = vrot.lane.b32.xlu0 %v777_v34, %s1352_s9 }
 0x35b   : > { %819 = vrot.lane.b32.xlu1 %v764_v37, %s1365_s24 }
 0x35c   : > { %801 = vrot.lane.b32.xlu0 %v779_v38, %s1359_s18 }
 0x360   : > { %809 = vrot.lane.b32.xlu0 %v781_v39, %s1359_s18 }
 0x364   : > { %817 = vrot.lane.b32.xlu0 %v757_v42, %s1365_s24 }
 0x395   : > { %v886_v43 = vpop.permute.xlu1 %885 }
 0x399   : > { %v894_v44 = vpop.permute.xlu1 %893 }
 0x39a   : > { %v922_v58 = vsel %vm823_vm3, %v886_v43, %v894_v44 }
 0x39d   : > { %v902_v45 = vpop.permute.xlu1 %901 }
 0x39e   : > { %v884_v46 = vpop.permute.xlu0 %883  ;;  %v924_v59 = vsel %vm826_vm4, %v922_v58, %v902_v45 }
 0x3a1   : > { %v986_v47 = vpop.permute.xlu1 %985 }
 0x3a2   : > { %v892_v48 = vpop.permute.xlu0 %891 }
 0x3a3   : > { %v921_v7 = vsel %vm823_vm3, %v884_v46, %v892_v48 }
 0x3a5   : > { %v994_v49 = vpop.permute.xlu1 %993 }
 0x3a6   : > { %v900_v50 = vpop.permute.xlu0 %899  ;;  %v1022_v0 = vsel %vm823_vm3, %v986_v47, %v994_v49 }
 0x3a7   : > { %v923_v8 = vsel %vm826_vm4, %v921_v7, %v900_v50 }
 0x3a9   : > { %v910_v51 = vpop.permute.xlu1 %909 }
 0x3aa   : > { %v984_v52 = vpop.permute.xlu0 %983  ;;  %v926_v60 = vsel %vm829_vm5, %v924_v59, %v910_v51 }
 0x3ad   : > { %v1002_v53 = vpop.permute.xlu1 %1001 }
 0x3ae   : > { %v992_v26 = vpop.permute.xlu0 %991  ;;  %v1024_v1 = vsel %vm826_vm4, %v1022_v0, %v1002_v53 }
 0x3af   : > { %v1021_v14 = vsel %vm823_vm3, %v984_v52, %v992_v26 }
 0x3b1   : > { %v1010_v56 = vpop.permute.xlu1 %1009 }
 0x3b2   : > { %v908_v57 = vpop.permute.xlu0 %907  ;;  %v1026_v2 = vsel %vm829_vm5, %v1024_v1, %v1010_v56 }
 0x3b3   : > { %v925_v11 = vsel %vm829_vm5, %v923_v8, %v908_v57 }
 0x3b5   : > { %v918_v61 = vpop.permute.xlu1 %917 }
 0x3b6   : > { %v1000_v62 = vpop.permute.xlu0 %999  ;;  %v928_v63 = vsel %vm832_vm6, %v926_v60, %v918_v61 }
 0x3b7   : > { %1033 = vrot.lane.b32.xlu1 %v928_v63, %s1366_s25  ;;  %v1023_v16 = vsel %vm826_vm4, %v1021_v14, %v1000_v62 }
 0x3b9   : > { %v1018_v3 = vpop.permute.xlu1 %1017 }
 0x3ba   : > { %v1008_v5 = vpop.permute.xlu0 %1007  ;;  %v1028_v6 = vsel %vm832_vm6, %v1026_v2, %v1018_v3 }
 0x3bb   : > { %1041 = vrot.lane.b32.xlu1 %v1028_v6, %s1367_s26  ;;  %v1025_v18 = vsel %vm829_vm5, %v1023_v16, %v1008_v5 }
 0x3bd   : > { %v788_v10 = vpop.permute.xlu1 %787 }
 0x3be   : > { %v916_v12 = vpop.permute.xlu0 %915 }
 0x3bf   : > { %v927_v13 = vsel %vm832_vm6, %v925_v11, %v916_v12 }
 0x3c0   : > { %1031 = vrot.lane.b32.xlu0 %v927_v13, %s1366_s25 }
 0x3c1   : > { %v796_v17 = vpop.permute.xlu1 %795 }
 0x3c2   : > { %v1016_v19 = vpop.permute.xlu0 %1015  ;;  %v825_v20 = vsel %vm823_vm3, %v788_v10, %v796_v17 }
 0x3c3   : > { %v1027_v55 = vsel %vm832_vm6, %v1025_v18, %v1016_v19 }
 0x3c4   : > { %1039 = vrot.lane.b32.xlu0 %v1027_v55, %s1367_s26 }
 0x3c5   : > { %v804_v21 = vpop.permute.xlu1 %803 }
 0x3c6   : > { %v828_v22 = vsel %vm826_vm4, %v825_v20, %v804_v21  ;;  %v786_v23 = vpop.permute.xlu0 %785 }
 0x3c9   : > { %v812_v24 = vpop.permute.xlu1 %811 }
 0x3ca   : > { %v831_v4 = vsel %vm829_vm5, %v828_v22, %v812_v24  ;;  %v794_v25 = vpop.permute.xlu0 %793 }
 0x3cb   : > { %v824_v28 = vsel %vm823_vm3, %v786_v23, %v794_v25 }
 0x3cd   : > { %v820_v27 = vpop.permute.xlu1 %819 }
 0x3ce   : > { %v834_v29 = vsel %vm832_vm6, %v831_v4, %v820_v27  ;;  %v802_v30 = vpop.permute.xlu0 %801 }
 0x3cf   : > { %v827_v31 = vsel %vm826_vm4, %v824_v28, %v802_v30 }
 0x3d2   : > { %v810_v32 = vpop.permute.xlu0 %809 }
 0x3d3   : > { %v830_v33 = vsel %vm829_vm5, %v827_v31, %v810_v32 }
 0x3d6   : > { %v818_v54 = vpop.permute.xlu0 %817 }
 0x3d7   : > { %v833_v34 = vsel %vm832_vm6, %v830_v33, %v818_v54 }
 0x429   : > { %v1034_v35 = vpop.permute.xlu1 %1033 }
 0x42a   : > { %v1047_v9 = vsel %vm1045_vm7, %v834_v29, %v1034_v35 }
 0x42d   : > { %v1042_v36 = vpop.permute.xlu1 %1041 }
 0x42e   : > { %v1050_v37 = vsel %vm1048_vm8, %v1047_v9, %v1042_v36 }
 0x42f   : > { %v1053_v38 = vsel %vm1051_vm9, %v1050_v37, 0.0 }
 0x430   : > { %1055 = vst [vmem:[%s427_s10 + $0x8] sm:$0xff] %v1053_v38 }
 0x432   : > { %v1032_v15 = vpop.permute.xlu0 %1031 }
 0x433   : > { %v1046_v39 = vsel %vm1045_vm7, %v833_v34, %v1032_v15 }
 0x436   : > { %v1040_v40 = vpop.permute.xlu0 %1039 }
 0x437   : > { %v1049_v41 = vsel %vm1048_vm8, %v1046_v39, %v1040_v40 }
 0x438   : > { %v1052_v42 = vsel %vm1051_vm9, %v1049_v41, 0.0 }
 0x439   : > { %1054 = vst [vmem:[%s427_s10] sm:$0xff] %v1052_v42 }
 0x43a PF: > { %s18_s27 = sadd.s32 1, %s1348_s27  }
 0x43b   : > { %p15_p4 = scmp.ge.s32.totalorder %s18_s27, 5  }
 0x43d   :  { %17 = sbr.rel (!%p15_p4) target bundleno = 1 (0x1), region = 103 }

</bundles_post_ra>
